<compile_context>
chip_gen: v7x
topology: tpu7x:2x2x1
jax: 0.10.0
libtpu: 0.0.40
codegen_flags: <defaults>
</compile_context>

<pallas_src>
import functools

import jax
import jax.numpy as jnp
from jax import lax
from jax.experimental import pallas as pl
from jax.experimental.pallas import tpu as pltpu

LN_EPS = 1e-5
VMEM_LIMIT_BYTES = 32 * 1024 * 1024

# Row indices of the packed per-layer bias / LayerNorm array vecs[16, D].
(BQ_S, BK_S, BV_S, BQ_C, BK_C, BV_C,
 BO_S, BO_C, B2, G1, BE1, G2, BE2, G3, BE3) = range(15)

LAYER_PARAM_ORDER = ("wqkv_s", "wo_s", "wq_c", "wkv_c", "wo_c", "w1", "w2", "vecs", "b1")


def _layer_norm(z, gamma, beta):
    mu = jnp.mean(z, axis=-1, keepdims=True)
    var = jnp.mean((z - mu) ** 2, axis=-1, keepdims=True)
    return (z - mu) * lax.rsqrt(var + LN_EPS) * gamma + beta


# ----------------------------------------------------------------------------- kernels


def decoder_layer_kernel(x_ref, cross_ref,
                         wqkv_s_ref, wo_s_ref, wq_c_ref, wkv_c_ref, wo_c_ref,
                         w1_ref, w2_ref, vecs_ref, b1_ref,
                         o_ref, *, n_heads):
    x = x_ref[...].astype(jnp.float32)           # [L, D] residual stream (f32)
    cr = cross_ref[...].astype(jnp.float32)      # [S, D]
    vec = vecs_ref[...]                          # [16, D] packed biases / LN params (f32)

    L, D = x.shape
    H = n_heads
    dh = D // H
    scale = 1.0 / (dh ** 0.5)

    def mm(a, w):  # bf16 MXU operands, f32 accumulation
        return jnp.dot(a.astype(jnp.bfloat16), w, preferred_element_type=jnp.float32)

    def mha(q, k, v, wo):
        # q [L, D] (softmax scale already folded into q), k/v [S, D], wo [D, D] bf16.
        # Head outputs are folded straight into the output projection; no concatenate.
        qb = q.astype(jnp.bfloat16)
        kb = k.astype(jnp.bfloat16)
        vb = v.astype(jnp.bfloat16)
        out = None
        for h in range(H):                        # static unrolled loop, static slices
            lo, hi = h * dh, (h + 1) * dh
            s = lax.dot_general(qb[:, lo:hi], kb[:, lo:hi],
                                (((1,), (1,)), ((), ())),
                                preferred_element_type=jnp.float32)      # [L, S]
            s = s - jnp.max(s, axis=-1, keepdims=True)
            p = jnp.exp(s)
            p = p * pl.reciprocal(jnp.sum(p, axis=-1, keepdims=True), approx=True)
            oh = jnp.dot(p.astype(jnp.bfloat16), vb[:, lo:hi],
                         preferred_element_type=jnp.float32)             # [L, dh]
            contrib = jnp.dot(oh.astype(jnp.bfloat16), wo[lo:hi, :],
                              preferred_element_type=jnp.float32)        # [L, D]
            out = contrib if out is None else out + contrib
        return out

    # ---- self attention (fused QKV projection) ----
    qkv = mm(x, wqkv_s_ref[...])                                         # [L, 3D]
    q = (qkv[:, 0:D] + vec[BQ_S:BQ_S + 1]) * scale
    k = qkv[:, D:2 * D] + vec[BK_S:BK_S + 1]
    v = qkv[:, 2 * D:3 * D] + vec[BV_S:BV_S + 1]
    attn = mha(q, k, v, wo_s_ref[...]) + vec[BO_S:BO_S + 1]
    x1 = _layer_norm(x + attn, vec[G1:G1 + 1], vec[BE1:BE1 + 1])

    # ---- cross attention (fused KV projection of `cross`) ----
    qc = (mm(x1, wq_c_ref[...]) + vec[BQ_C:BQ_C + 1]) * scale
    kv = mm(cr, wkv_c_ref[...])                                          # [S, 2D]
    kc = kv[:, 0:D] + vec[BK_C:BK_C + 1]
    vc = kv[:, D:2 * D] + vec[BV_C:BV_C + 1]
    attnc = mha(qc, kc, vc, wo_c_ref[...]) + vec[BO_C:BO_C + 1]
    x2 = _layer_norm(x1 + attnc, vec[G2:G2 + 1], vec[BE2:BE2 + 1])

    # ---- FFN: Conv1d(k=1) layers are per-position matmuls over the channel axis ----
    hdd = jnp.maximum(mm(x2, w1_ref[...]) + b1_ref[...], 0.0)            # relu
    y = mm(hdd, w2_ref[...]) + vec[B2:B2 + 1]
    out = _layer_norm(x2 + y, vec[G3:G3 + 1], vec[BE3:BE3 + 1])

    o_ref[...] = out.astype(o_ref.dtype)


def norm_proj_kernel(x_ref, gb_ref, wp_ref, bp_ref, o_ref):
    x = x_ref[...].astype(jnp.float32)
    gb = gb_ref[...]                                                     # [2, D]: gamma, beta
    xn = _layer_norm(x, gb[0:1], gb[1:2])
    y = jnp.dot(xn.astype(jnp.bfloat16), wp_ref[...],
                preferred_element_type=jnp.float32) + bp_ref[...]
    o_ref[...] = y.astype(o_ref.dtype)


# ----------------------------------------------------------------------------- wrappers


def _const_spec(shape):
    # Constant index_map: block fetched once, revisited every grid step (no re-DMA).
    n = len(shape)
    return pl.BlockSpec(shape, lambda b, _n=n: (0,) * _n)


def decoder_layer(x, cross, lp, n_heads):
    B, L, D = x.shape
    S = cross.shape[1]
    in_specs = ([pl.BlockSpec((pl.Squeezed(), L, D), lambda b: (b, 0, 0)),
                 pl.BlockSpec((pl.Squeezed(), S, D), lambda b: (b, 0, 0))]
                + [_const_spec(lp[name].shape) for name in LAYER_PARAM_ORDER])
    kernel = functools.partial(decoder_layer_kernel, n_heads=n_heads)
    return pl.pallas_call(
        kernel,
        out_shape=jax.ShapeDtypeStruct((B, L, D), x.dtype),
        grid_spec=pltpu.PrefetchScalarGridSpec(
            num_scalar_prefetch=0,
            grid=(B,),
            in_specs=in_specs,
            out_specs=pl.BlockSpec((pl.Squeezed(), L, D), lambda b: (b, 0, 0)),
        ),
        compiler_params=pltpu.CompilerParams(
            dimension_semantics=("parallel",),
            vmem_limit_bytes=VMEM_LIMIT_BYTES),
    )(x, cross, *[lp[name] for name in LAYER_PARAM_ORDER])


def norm_projection(x, fp):
    B, L, D = x.shape
    C = fp["wp"].shape[1]
    in_specs = [pl.BlockSpec((pl.Squeezed(), L, D), lambda b: (b, 0, 0)),
                _const_spec(fp["gb"].shape),
                _const_spec(fp["wp"].shape),
                _const_spec(fp["bp"].shape)]
    return pl.pallas_call(
        norm_proj_kernel,
        out_shape=jax.ShapeDtypeStruct((B, L, C), x.dtype),
        grid_spec=pltpu.PrefetchScalarGridSpec(
            num_scalar_prefetch=0,
            grid=(B,),
            in_specs=in_specs,
            out_specs=pl.BlockSpec((pl.Squeezed(), L, C), lambda b: (b, 0, 0)),
        ),
        compiler_params=pltpu.CompilerParams(
            dimension_semantics=("parallel",),
            vmem_limit_bytes=VMEM_LIMIT_BYTES),
    )(x, fp["gb"], fp["wp"], fp["bp"])


def decoder(x, cross, layer_params, final_params, n_heads):
    # Decoder.forward: stacked DecoderLayers, then final norm, then projection.
    for lp in layer_params:
        x = decoder_layer(x, cross, lp, n_heads)
    return norm_projection(x, final_params)


# ----------------------------------------------------------------------------- reference
# Pure-JAX reference mirroring the kernel's mixed precision (bf16 matmul operands, f32 accum).


def _round_bf16(a):
    return a.astype(jnp.bfloat16).astype(jnp.float32)


def _ref_mm(a, w):
    return jnp.dot(_round_bf16(a), w.astype(jnp.float32), precision="highest")


def _ref_attention(q, k, v, wo, bo, n_heads):
    B, L, D = q.shape
    S = k.shape[1]
    dh = D // n_heads
    qh = _round_bf16(q).reshape(B, L, n_heads, dh)
    kh = _round_bf16(k).reshape(B, S, n_heads, dh)
    vh = _round_bf16(v).reshape(B, S, n_heads, dh)
    s = jnp.einsum("blhd,bshd->bhls", qh, kh, precision="highest")
    p = jax.nn.softmax(s, axis=-1)
    o = jnp.einsum("bhls,bshd->blhd", _round_bf16(p), vh,
                   precision="highest").reshape(B, L, D)
    return _ref_mm(o, wo) + bo


def _ref_decoder_layer(x, cross, lp, n_heads):
    D = x.shape[-1]
    vec = lp["vecs"].astype(jnp.float32)
    dh = D // n_heads
    scale = 1.0 / (dh ** 0.5)

    qkv = _ref_mm(x, lp["wqkv_s"])
    q = (qkv[..., 0:D] + vec[BQ_S]) * scale
    k = qkv[..., D:2 * D] + vec[BK_S]
    v = qkv[..., 2 * D:3 * D] + vec[BV_S]
    x = _layer_norm(x + _ref_attention(q, k, v, lp["wo_s"], vec[BO_S], n_heads),
                    vec[G1], vec[BE1])

    qc = (_ref_mm(x, lp["wq_c"]) + vec[BQ_C]) * scale
    kv = _ref_mm(cross, lp["wkv_c"])
    kc = kv[..., 0:D] + vec[BK_C]
    vc = kv[..., D:2 * D] + vec[BV_C]
    x = _layer_norm(x + _ref_attention(qc, kc, vc, lp["wo_c"], vec[BO_C], n_heads),
                    vec[G2], vec[BE2])

    y = jnp.maximum(_ref_mm(x, lp["w1"]) + lp["b1"].astype(jnp.float32), 0.0)
    y = _ref_mm(y, lp["w2"]) + vec[B2]
    return _layer_norm(x + y, vec[G3], vec[BE3])


def reference(x, cross, layer_params, final_params, n_heads):
    h = x.astype(jnp.float32)
    c = cross.astype(jnp.float32)
    for lp in layer_params:
        h = _ref_decoder_layer(h, c, lp, n_heads)
    gb = final_params["gb"].astype(jnp.float32)
    h = _layer_norm(h, gb[0:1], gb[1:2])
    return _ref_mm(h, final_params["wp"]) + final_params["bp"].astype(jnp.float32)


# ----------------------------------------------------------------------------- params


def init_layer_params(key, d_model, d_ff):
    ks = jax.random.split(key, 9)
    sd = 1.0 / jnp.sqrt(jnp.float32(d_model))
    sf = 1.0 / jnp.sqrt(jnp.float32(d_ff))

    def w(k, shape, s):
        return (jax.random.normal(k, shape, jnp.float32) * s).astype(jnp.bfloat16)

    bias_keys = jax.random.split(ks[8], 9)
    ones = jnp.ones((1, d_model), jnp.float32)
    zeros = jnp.zeros((1, d_model), jnp.float32)
    rows = [jax.random.normal(bias_keys[i], (1, d_model), jnp.float32) * 0.02
            for i in range(9)]                       # bq_s..bo_c, b2
    rows += [ones, zeros, ones, zeros, ones, zeros]  # g1, be1, g2, be2, g3, be3
    rows += [zeros]                                  # pad -> 16 rows (sublane aligned)
    return {
        "wqkv_s": w(ks[0], (d_model, 3 * d_model), sd),
        "wo_s": w(ks[1], (d_model, d_model), sd),
        "wq_c": w(ks[2], (d_model, d_model), sd),
        "wkv_c": w(ks[3], (d_model, 2 * d_model), sd),
        "wo_c": w(ks[4], (d_model, d_model), sd),
        "w1": w(ks[5], (d_model, d_ff), sd),      # Conv1d(d_model->d_ff, k=1), pre-transposed
        "w2": w(ks[6], (d_ff, d_model), sf),      # Conv1d(d_ff->d_model, k=1), pre-transposed
        "b1": jax.random.normal(ks[7], (1, d_ff), jnp.float32) * 0.02,
        "vecs": jnp.concatenate(rows, axis=0),    # [16, d_model]
    }


def init_decoder_params(key, d_model, d_ff, c_out, n_layers):
    keys = jax.random.split(key, n_layers + 2)
    layers = [init_layer_params(keys[i], d_model, d_ff) for i in range(n_layers)]
    final = {
        "gb": jnp.concatenate([jnp.ones((1, d_model), jnp.float32),
                               jnp.zeros((1, d_model), jnp.float32)], axis=0),
        "wp": (jax.random.normal(keys[-2], (d_model, c_out), jnp.float32)
               / jnp.sqrt(jnp.float32(d_model))).astype(jnp.bfloat16),
        "bp": jax.random.normal(keys[-1], (1, c_out), jnp.float32) * 0.02,
    }
    return layers, final


# ----------------------------------------------------------------------------- main


if __name__ == "__main__":
    B, L, S = 2, 8, 16           # batch, target tokens, cross (memory) tokens
    D, FF, C = 128, 128, 128     # d_model, d_ff, c_out (multiples of 128: lane-dense blocks)
    H = 4                        # attention heads (head dim 32)
    N_LAYERS = 2

    key = jax.random.PRNGKey(0)
    kx, kc, kp = jax.random.split(key, 3)
    x = jax.random.normal(kx, (B, L, D), jnp.float32)
    cross = jax.random.normal(kc, (B, S, D), jnp.float32)
    layer_params, final_params = init_decoder_params(kp, D, FF, C, N_LAYERS)

    decoder_jit = jax.jit(decoder, static_argnames=("n_heads",))
    out = decoder_jit(x, cross, layer_params, final_params, n_heads=H)
    out = jax.block_until_ready(out)

    ref = reference(x, cross, layer_params, final_params, H)
    assert out.shape == (B, L, C)
    max_err = float(jnp.max(jnp.abs(out - ref)))
    assert jnp.allclose(out, ref, rtol=2e-2, atol=2e-2), max_err

    print("KERNEL_OK")
</pallas_src>

<mosaic_0001>
module attributes {stable_mosaic.version = 11 : i64} {
  func.func @norm_proj_kernel(%arg0: i32, %arg1: memref<1x8x128xf32, #tpu.memory_space<vmem>>, %arg2: memref<2x128xf32, #tpu.memory_space<vmem>>, %arg3: memref<128x128xbf16, #tpu.memory_space<vmem>>, %arg4: memref<1x128xf32, #tpu.memory_space<vmem>>, %arg5: memref<1x8x128xf32, #tpu.memory_space<vmem>>) attributes {dimension_semantics = [#tpu.dimension_semantics<parallel>], iteration_bounds = array<i64: 2>, scalar_prefetch = 0 : i64, scratch_operands = 0 : i64, tpu.core_type = #tpu.core_type<tc>, window_params = [{transform_indices = @transform_0, window_bounds = array<i64: 1, 8, 128>}, {pipeline_mode = #tpu.pipeline_mode<synchronous>, transform_indices = @transform_1, window_bounds = array<i64: 2, 128>}, {pipeline_mode = #tpu.pipeline_mode<synchronous>, transform_indices = @transform_2, window_bounds = array<i64: 128, 128>}, {pipeline_mode = #tpu.pipeline_mode<synchronous>, transform_indices = @transform_3, window_bounds = array<i64: 1, 128>}, {transform_indices = @transform_4, window_bounds = array<i64: 1, 8, 128>}]} {
    %c0 = arith.constant 0 : index
    %c0_0 = arith.constant 0 : index
    %c0_1 = arith.constant 0 : index
    %0 = vector.load %arg1[%c0, %c0_0, %c0_1] : memref<1x8x128xf32, #tpu.memory_space<vmem>>, vector<1x8x128xf32>
    %1 = vector.shape_cast %0 : vector<1x8x128xf32> to vector<8x128xf32>
    %c0_2 = arith.constant 0 : index
    %c0_3 = arith.constant 0 : index
    %2 = vector.load %arg2[%c0_2, %c0_3] : memref<2x128xf32, #tpu.memory_space<vmem>>, vector<2x128xf32>
    %3 = vector.extract_strided_slice %2 {offsets = [0, 0], sizes = [1, 128], strides = [1, 1]} : vector<2x128xf32> to vector<1x128xf32>
    %4 = vector.extract_strided_slice %2 {offsets = [1, 0], sizes = [1, 128], strides = [1, 1]} : vector<2x128xf32> to vector<1x128xf32>
    %cst = arith.constant dense<0.000000e+00> : vector<8xf32>
    %5 = vector.multi_reduction <add>, %1, %cst [1] : vector<8x128xf32> to vector<8xf32>
    %6 = vector.shape_cast %5 : vector<8xf32> to vector<8x1xf32>
    %cst_4 = arith.constant 1.280000e+02 : f32
    %7 = vector.broadcast %cst_4 : f32 to vector<8x1xf32>
    %8 = arith.divf %6, %7 : vector<8x1xf32>
    %9 = vector.broadcast %8 : vector<8x1xf32> to vector<8x128xf32>
    %10 = arith.subf %1, %9 : vector<8x128xf32>
    %11 = arith.mulf %10, %10 : vector<8x128xf32>
    %cst_5 = arith.constant dense<0.000000e+00> : vector<8xf32>
    %12 = vector.multi_reduction <add>, %11, %cst_5 [1] : vector<8x128xf32> to vector<8xf32>
    %13 = vector.shape_cast %12 : vector<8xf32> to vector<8x1xf32>
    %cst_6 = arith.constant 1.280000e+02 : f32
    %14 = vector.broadcast %cst_6 : f32 to vector<8x1xf32>
    %15 = arith.divf %13, %14 : vector<8x1xf32>
    %16 = vector.broadcast %8 : vector<8x1xf32> to vector<8x128xf32>
    %17 = arith.subf %1, %16 : vector<8x128xf32>
    %cst_7 = arith.constant 9.99999974E-6 : f32
    %18 = vector.broadcast %cst_7 : f32 to vector<8x1xf32>
    %19 = arith.addf %15, %18 : vector<8x1xf32>
    %20 = math.rsqrt %19 : vector<8x1xf32>
    %21 = vector.broadcast %20 : vector<8x1xf32> to vector<8x128xf32>
    %22 = arith.mulf %17, %21 : vector<8x128xf32>
    %23 = vector.broadcast %3 : vector<1x128xf32> to vector<8x128xf32>
    %24 = arith.mulf %22, %23 : vector<8x128xf32>
    %25 = vector.broadcast %4 : vector<1x128xf32> to vector<8x128xf32>
    %26 = arith.addf %24, %25 : vector<8x128xf32>
    %27 = arith.truncf %26 : vector<8x128xf32> to vector<8x128xbf16>
    %c0_8 = arith.constant 0 : index
    %c0_9 = arith.constant 0 : index
    %28 = vector.load %arg3[%c0_8, %c0_9] : memref<128x128xbf16, #tpu.memory_space<vmem>>, vector<128x128xbf16>
    %cst_10 = arith.constant dense<0.000000e+00> : vector<8x128xf32>
    %29 = tpu.matmul %27, %28, %cst_10 {dimension_numbers = #tpu.dot_dimension_numbers<[1], [0], [0], [1], [0, 0, 1, 1], [], []>} : vector<8x128xbf16>, vector<128x128xbf16>, vector<8x128xf32> -> vector<8x128xf32>
    %c0_11 = arith.constant 0 : index
    %c0_12 = arith.constant 0 : index
    %30 = vector.load %arg4[%c0_11, %c0_12] : memref<1x128xf32, #tpu.memory_space<vmem>>, vector<1x128xf32>
    %31 = vector.broadcast %30 : vector<1x128xf32> to vector<8x128xf32>
    %32 = arith.addf %29, %31 : vector<8x128xf32>
    %c0_13 = arith.constant 0 : index
    %c0_14 = arith.constant 0 : index
    %c0_15 = arith.constant 0 : index
    %33 = vector.load %arg5[%c0_13, %c0_14, %c0_15] : memref<1x8x128xf32, #tpu.memory_space<vmem>>, vector<1x8x128xf32>
    %34 = vector.shape_cast %33 : vector<1x8x128xf32> to vector<8x128xf32>
    %35 = vector.shape_cast %32 : vector<8x128xf32> to vector<1x8x128xf32>
    tpu.vector_store %arg5[%c0_13, %c0_14, %c0_15], %35 {strides = array<i32>} : memref<1x8x128xf32, #tpu.memory_space<vmem>>, vector<1x8x128xf32>,
    return
  }
  func.func @transform_0(%arg0: i32) -> (i32, i32, i32) {
    %c0_i32 = arith.constant 0 : i32
    %c0_i32_0 = arith.constant 0 : i32
    %c0_i32_1 = arith.constant 0 : i32
    return %arg0, %c0_i32, %c0_i32_0 : i32, i32, i32
  }
  func.func @transform_1(%arg0: i32) -> (i32, i32) {
    %c0_i32 = arith.constant 0 : i32
    %c0_i32_0 = arith.constant 0 : i32
    %c0_i32_1 = arith.constant 0 : i32
    return %c0_i32, %c0_i32_0 : i32, i32
  }
  func.func @transform_2(%arg0: i32) -> (i32, i32) {
    %c0_i32 = arith.constant 0 : i32
    %c0_i32_0 = arith.constant 0 : i32
    %c0_i32_1 = arith.constant 0 : i32
    return %c0_i32, %c0_i32_0 : i32, i32
  }
  func.func @transform_3(%arg0: i32) -> (i32, i32) {
    %c0_i32 = arith.constant 0 : i32
    %c0_i32_0 = arith.constant 0 : i32
    %c0_i32_1 = arith.constant 0 : i32
    return %c0_i32, %c0_i32_0 : i32, i32
  }
  func.func @transform_4(%arg0: i32) -> (i32, i32, i32) {
    %c0_i32 = arith.constant 0 : i32
    %c0_i32_0 = arith.constant 0 : i32
    %c0_i32_1 = arith.constant 0 : i32
    return %arg0, %c0_i32, %c0_i32_0 : i32, i32, i32
  }
}

module attributes {stable_mosaic.version = 11 : i64} {
  func.func @decoder_layer_kernel(%arg0: i32, %arg1: memref<1x8x128xf32, #tpu.memory_space<vmem>>, %arg2: memref<1x16x128xf32, #tpu.memory_space<vmem>>, %arg3: memref<128x384xbf16, #tpu.memory_space<vmem>>, %arg4: memref<128x128xbf16, #tpu.memory_space<vmem>>, %arg5: memref<128x128xbf16, #tpu.memory_space<vmem>>, %arg6: memref<128x256xbf16, #tpu.memory_space<vmem>>, %arg7: memref<128x128xbf16, #tpu.memory_space<vmem>>, %arg8: memref<128x128xbf16, #tpu.memory_space<vmem>>, %arg9: memref<128x128xbf16, #tpu.memory_space<vmem>>, %arg10: memref<16x128xf32, #tpu.memory_space<vmem>>, %arg11: memref<1x128xf32, #tpu.memory_space<vmem>>, %arg12: memref<1x8x128xf32, #tpu.memory_space<vmem>>) attributes {dimension_semantics = [#tpu.dimension_semantics<parallel>], iteration_bounds = array<i64: 2>, scalar_prefetch = 0 : i64, scratch_operands = 0 : i64, tpu.core_type = #tpu.core_type<tc>, window_params = [{transform_indices = @transform_0, window_bounds = array<i64: 1, 8, 128>}, {transform_indices = @transform_1, window_bounds = array<i64: 1, 16, 128>}, {pipeline_mode = #tpu.pipeline_mode<synchronous>, transform_indices = @transform_2, window_bounds = array<i64: 128, 384>}, {pipeline_mode = #tpu.pipeline_mode<synchronous>, transform_indices = @transform_3, window_bounds = array<i64: 128, 128>}, {pipeline_mode = #tpu.pipeline_mode<synchronous>, transform_indices = @transform_4, window_bounds = array<i64: 128, 128>}, {pipeline_mode = #tpu.pipeline_mode<synchronous>, transform_indices = @transform_5, window_bounds = array<i64: 128, 256>}, {pipeline_mode = #tpu.pipeline_mode<synchronous>, transform_indices = @transform_6, window_bounds = array<i64: 128, 128>}, {pipeline_mode = #tpu.pipeline_mode<synchronous>, transform_indices = @transform_7, window_bounds = array<i64: 128, 128>}, {pipeline_mode = #tpu.pipeline_mode<synchronous>, transform_indices = @transform_8, window_bounds = array<i64: 128, 128>}, {pipeline_mode = #tpu.pipeline_mode<synchronous>, transform_indices = @transform_9, window_bounds = array<i64: 16, 128>}, {pipeline_mode = #tpu.pipeline_mode<synchronous>, transform_indices = @transform_10, window_bounds = array<i64: 1, 128>}, {transform_indices = @transform_11, window_bounds = array<i64: 1, 8, 128>}]} {
    %c0 = arith.constant 0 : index
    %c0_0 = arith.constant 0 : index
    %c0_1 = arith.constant 0 : index
    %0 = vector.load %arg1[%c0, %c0_0, %c0_1] : memref<1x8x128xf32, #tpu.memory_space<vmem>>, vector<1x8x128xf32>
    %1 = vector.shape_cast %0 : vector<1x8x128xf32> to vector<8x128xf32>
    %c0_2 = arith.constant 0 : index
    %c0_3 = arith.constant 0 : index
    %c0_4 = arith.constant 0 : index
    %2 = vector.load %arg2[%c0_2, %c0_3, %c0_4] : memref<1x16x128xf32, #tpu.memory_space<vmem>>, vector<1x16x128xf32>
    %3 = vector.shape_cast %2 : vector<1x16x128xf32> to vector<16x128xf32>
    %c0_5 = arith.constant 0 : index
    %c0_6 = arith.constant 0 : index
    %4 = vector.load %arg10[%c0_5, %c0_6] : memref<16x128xf32, #tpu.memory_space<vmem>>, vector<16x128xf32>
    %c0_7 = arith.constant 0 : index
    %c0_8 = arith.constant 0 : index
    %5 = vector.load %arg3[%c0_7, %c0_8] : memref<128x384xbf16, #tpu.memory_space<vmem>>, vector<128x384xbf16>
    %6 = arith.truncf %1 : vector<8x128xf32> to vector<8x128xbf16>
    %cst = arith.constant dense<0.000000e+00> : vector<8x384xf32>
    %7 = tpu.matmul %6, %5, %cst {dimension_numbers = #tpu.dot_dimension_numbers<[1], [0], [0], [1], [0, 0, 1, 1], [], []>} : vector<8x128xbf16>, vector<128x384xbf16>, vector<8x384xf32> -> vector<8x384xf32>
    %8 = vector.extract_strided_slice %7 {offsets = [0, 0], sizes = [8, 128], strides = [1, 1]} : vector<8x384xf32> to vector<8x128xf32>
    %9 = vector.extract_strided_slice %4 {offsets = [0, 0], sizes = [1, 128], strides = [1, 1]} : vector<16x128xf32> to vector<1x128xf32>
    %10 = vector.broadcast %9 : vector<1x128xf32> to vector<8x128xf32>
    %11 = arith.addf %8, %10 : vector<8x128xf32>
    %cst_9 = arith.constant 0.176776692 : f32
    %12 = vector.broadcast %cst_9 : f32 to vector<8x128xf32>
    %13 = arith.mulf %11, %12 : vector<8x128xf32>
    %14 = vector.extract_strided_slice %7 {offsets = [0, 128], sizes = [8, 128], strides = [1, 1]} : vector<8x384xf32> to vector<8x128xf32>
    %15 = vector.extract_strided_slice %4 {offsets = [1, 0], sizes = [1, 128], strides = [1, 1]} : vector<16x128xf32> to vector<1x128xf32>
    %16 = vector.broadcast %15 : vector<1x128xf32> to vector<8x128xf32>
    %17 = arith.addf %14, %16 : vector<8x128xf32>
    %18 = vector.extract_strided_slice %7 {offsets = [0, 256], sizes = [8, 128], strides = [1, 1]} : vector<8x384xf32> to vector<8x128xf32>
    %19 = vector.extract_strided_slice %4 {offsets = [2, 0], sizes = [1, 128], strides = [1, 1]} : vector<16x128xf32> to vector<1x128xf32>
    %20 = vector.broadcast %19 : vector<1x128xf32> to vector<8x128xf32>
    %21 = arith.addf %18, %20 : vector<8x128xf32>
    %c0_10 = arith.constant 0 : index
    %c0_11 = arith.constant 0 : index
    %22 = vector.load %arg4[%c0_10, %c0_11] : memref<128x128xbf16, #tpu.memory_space<vmem>>, vector<128x128xbf16>
    %23 = arith.truncf %13 : vector<8x128xf32> to vector<8x128xbf16>
    %24 = arith.truncf %17 : vector<8x128xf32> to vector<8x128xbf16>
    %25 = arith.truncf %21 : vector<8x128xf32> to vector<8x128xbf16>
    %26 = vector.extract_strided_slice %23 {offsets = [0, 0], sizes = [8, 32], strides = [1, 1]} : vector<8x128xbf16> to vector<8x32xbf16>
    %27 = vector.extract_strided_slice %24 {offsets = [0, 0], sizes = [8, 32], strides = [1, 1]} : vector<8x128xbf16> to vector<8x32xbf16>
    %cst_12 = arith.constant dense<0.000000e+00> : vector<8x8xf32>
    %28 = tpu.matmul %26, %27, %cst_12 {dimension_numbers = #tpu.dot_dimension_numbers<[1], [1], [0], [0], [0, 0, 1, 0], [], []>} : vector<8x32xbf16>, vector<8x32xbf16>, vector<8x8xf32> -> vector<8x8xf32>
    %cst_13 = arith.constant dense<0xFF800000> : vector<8xf32>
    %29 = vector.multi_reduction <maximumf>, %28, %cst_13 [1] : vector<8x8xf32> to vector<8xf32>
    %30 = vector.shape_cast %29 : vector<8xf32> to vector<8x1xf32>
    %31 = vector.broadcast %30 : vector<8x1xf32> to vector<8x8xf32>
    %32 = arith.subf %28, %31 : vector<8x8xf32>
    %33 = math.exp %32 : vector<8x8xf32>
    %cst_14 = arith.constant dense<0.000000e+00> : vector<8xf32>
    %34 = vector.multi_reduction <add>, %33, %cst_14 [1] : vector<8x8xf32> to vector<8xf32>
    %35 = vector.shape_cast %34 : vector<8xf32> to vector<8x1xf32>
    %36 = tpu.reciprocal %35 {approx = true} : vector<8x1xf32> -> vector<8x1xf32>
    %37 = vector.broadcast %36 : vector<8x1xf32> to vector<8x8xf32>
    %38 = arith.mulf %33, %37 : vector<8x8xf32>
    %39 = arith.truncf %38 : vector<8x8xf32> to vector<8x8xbf16>
    %40 = vector.extract_strided_slice %25 {offsets = [0, 0], sizes = [8, 32], strides = [1, 1]} : vector<8x128xbf16> to vector<8x32xbf16>
    %cst_15 = arith.constant dense<0.000000e+00> : vector<8x32xf32>
    %41 = tpu.matmul %39, %40, %cst_15 {dimension_numbers = #tpu.dot_dimension_numbers<[1], [0], [0], [1], [0, 0, 1, 1], [], []>} : vector<8x8xbf16>, vector<8x32xbf16>, vector<8x32xf32> -> vector<8x32xf32>
    %42 = arith.truncf %41 : vector<8x32xf32> to vector<8x32xbf16>
    %43 = vector.extract_strided_slice %22 {offsets = [0, 0], sizes = [32, 128], strides = [1, 1]} : vector<128x128xbf16> to vector<32x128xbf16>
    %cst_16 = arith.constant dense<0.000000e+00> : vector<8x128xf32>
    %44 = tpu.matmul %42, %43, %cst_16 {dimension_numbers = #tpu.dot_dimension_numbers<[1], [0], [0], [1], [0, 0, 1, 1], [], []>} : vector<8x32xbf16>, vector<32x128xbf16>, vector<8x128xf32> -> vector<8x128xf32>
    %45 = vector.extract_strided_slice %23 {offsets = [0, 32], sizes = [8, 32], strides = [1, 1]} : vector<8x128xbf16> to vector<8x32xbf16>
    %46 = vector.extract_strided_slice %24 {offsets = [0, 32], sizes = [8, 32], strides = [1, 1]} : vector<8x128xbf16> to vector<8x32xbf16>
    %cst_17 = arith.constant dense<0.000000e+00> : vector<8x8xf32>
    %47 = tpu.matmul %45, %46, %cst_17 {dimension_numbers = #tpu.dot_dimension_numbers<[1], [1], [0], [0], [0, 0, 1, 0], [], []>} : vector<8x32xbf16>, vector<8x32xbf16>, vector<8x8xf32> -> vector<8x8xf32>
    %cst_18 = arith.constant dense<0xFF800000> : vector<8xf32>
    %48 = vector.multi_reduction <maximumf>, %47, %cst_18 [1] : vector<8x8xf32> to vector<8xf32>
    %49 = vector.shape_cast %48 : vector<8xf32> to vector<8x1xf32>
    %50 = vector.broadcast %49 : vector<8x1xf32> to vector<8x8xf32>
    %51 = arith.subf %47, %50 : vector<8x8xf32>
    %52 = math.exp %51 : vector<8x8xf32>
    %cst_19 = arith.constant dense<0.000000e+00> : vector<8xf32>
    %53 = vector.multi_reduction <add>, %52, %cst_19 [1] : vector<8x8xf32> to vector<8xf32>
    %54 = vector.shape_cast %53 : vector<8xf32> to vector<8x1xf32>
    %55 = tpu.reciprocal %54 {approx = true} : vector<8x1xf32> -> vector<8x1xf32>
    %56 = vector.broadcast %55 : vector<8x1xf32> to vector<8x8xf32>
    %57 = arith.mulf %52, %56 : vector<8x8xf32>
    %58 = arith.truncf %57 : vector<8x8xf32> to vector<8x8xbf16>
    %59 = vector.extract_strided_slice %25 {offsets = [0, 32], sizes = [8, 32], strides = [1, 1]} : vector<8x128xbf16> to vector<8x32xbf16>
    %cst_20 = arith.constant dense<0.000000e+00> : vector<8x32xf32>
    %60 = tpu.matmul %58, %59, %cst_20 {dimension_numbers = #tpu.dot_dimension_numbers<[1], [0], [0], [1], [0, 0, 1, 1], [], []>} : vector<8x8xbf16>, vector<8x32xbf16>, vector<8x32xf32> -> vector<8x32xf32>
    %61 = arith.truncf %60 : vector<8x32xf32> to vector<8x32xbf16>
    %62 = vector.extract_strided_slice %22 {offsets = [32, 0], sizes = [32, 128], strides = [1, 1]} : vector<128x128xbf16> to vector<32x128xbf16>
    %cst_21 = arith.constant dense<0.000000e+00> : vector<8x128xf32>
    %63 = tpu.matmul %61, %62, %cst_21 {dimension_numbers = #tpu.dot_dimension_numbers<[1], [0], [0], [1], [0, 0, 1, 1], [], []>} : vector<8x32xbf16>, vector<32x128xbf16>, vector<8x128xf32> -> vector<8x128xf32>
    %64 = arith.addf %44, %63 : vector<8x128xf32>
    %65 = vector.extract_strided_slice %23 {offsets = [0, 64], sizes = [8, 32], strides = [1, 1]} : vector<8x128xbf16> to vector<8x32xbf16>
    %66 = vector.extract_strided_slice %24 {offsets = [0, 64], sizes = [8, 32], strides = [1, 1]} : vector<8x128xbf16> to vector<8x32xbf16>
    %cst_22 = arith.constant dense<0.000000e+00> : vector<8x8xf32>
    %67 = tpu.matmul %65, %66, %cst_22 {dimension_numbers = #tpu.dot_dimension_numbers<[1], [1], [0], [0], [0, 0, 1, 0], [], []>} : vector<8x32xbf16>, vector<8x32xbf16>, vector<8x8xf32> -> vector<8x8xf32>
    %cst_23 = arith.constant dense<0xFF800000> : vector<8xf32>
    %68 = vector.multi_reduction <maximumf>, %67, %cst_23 [1] : vector<8x8xf32> to vector<8xf32>
    %69 = vector.shape_cast %68 : vector<8xf32> to vector<8x1xf32>
    %70 = vector.broadcast %69 : vector<8x1xf32> to vector<8x8xf32>
    %71 = arith.subf %67, %70 : vector<8x8xf32>
    %72 = math.exp %71 : vector<8x8xf32>
    %cst_24 = arith.constant dense<0.000000e+00> : vector<8xf32>
    %73 = vector.multi_reduction <add>, %72, %cst_24 [1] : vector<8x8xf32> to vector<8xf32>
    %74 = vector.shape_cast %73 : vector<8xf32> to vector<8x1xf32>
    %75 = tpu.reciprocal %74 {approx = true} : vector<8x1xf32> -> vector<8x1xf32>
    %76 = vector.broadcast %75 : vector<8x1xf32> to vector<8x8xf32>
    %77 = arith.mulf %72, %76 : vector<8x8xf32>
    %78 = arith.truncf %77 : vector<8x8xf32> to vector<8x8xbf16>
    %79 = vector.extract_strided_slice %25 {offsets = [0, 64], sizes = [8, 32], strides = [1, 1]} : vector<8x128xbf16> to vector<8x32xbf16>
    %cst_25 = arith.constant dense<0.000000e+00> : vector<8x32xf32>
    %80 = tpu.matmul %78, %79, %cst_25 {dimension_numbers = #tpu.dot_dimension_numbers<[1], [0], [0], [1], [0, 0, 1, 1], [], []>} : vector<8x8xbf16>, vector<8x32xbf16>, vector<8x32xf32> -> vector<8x32xf32>
    %81 = arith.truncf %80 : vector<8x32xf32> to vector<8x32xbf16>
    %82 = vector.extract_strided_slice %22 {offsets = [64, 0], sizes = [32, 128], strides = [1, 1]} : vector<128x128xbf16> to vector<32x128xbf16>
    %cst_26 = arith.constant dense<0.000000e+00> : vector<8x128xf32>
    %83 = tpu.matmul %81, %82, %cst_26 {dimension_numbers = #tpu.dot_dimension_numbers<[1], [0], [0], [1], [0, 0, 1, 1], [], []>} : vector<8x32xbf16>, vector<32x128xbf16>, vector<8x128xf32> -> vector<8x128xf32>
    %84 = arith.addf %64, %83 : vector<8x128xf32>
    %85 = vector.extract_strided_slice %23 {offsets = [0, 96], sizes = [8, 32], strides = [1, 1]} : vector<8x128xbf16> to vector<8x32xbf16>
    %86 = vector.extract_strided_slice %24 {offsets = [0, 96], sizes = [8, 32], strides = [1, 1]} : vector<8x128xbf16> to vector<8x32xbf16>
    %cst_27 = arith.constant dense<0.000000e+00> : vector<8x8xf32>
    %87 = tpu.matmul %85, %86, %cst_27 {dimension_numbers = #tpu.dot_dimension_numbers<[1], [1], [0], [0], [0, 0, 1, 0], [], []>} : vector<8x32xbf16>, vector<8x32xbf16>, vector<8x8xf32> -> vector<8x8xf32>
    %cst_28 = arith.constant dense<0xFF800000> : vector<8xf32>
    %88 = vector.multi_reduction <maximumf>, %87, %cst_28 [1] : vector<8x8xf32> to vector<8xf32>
    %89 = vector.shape_cast %88 : vector<8xf32> to vector<8x1xf32>
    %90 = vector.broadcast %89 : vector<8x1xf32> to vector<8x8xf32>
    %91 = arith.subf %87, %90 : vector<8x8xf32>
    %92 = math.exp %91 : vector<8x8xf32>
    %cst_29 = arith.constant dense<0.000000e+00> : vector<8xf32>
    %93 = vector.multi_reduction <add>, %92, %cst_29 [1] : vector<8x8xf32> to vector<8xf32>
    %94 = vector.shape_cast %93 : vector<8xf32> to vector<8x1xf32>
    %95 = tpu.reciprocal %94 {approx = true} : vector<8x1xf32> -> vector<8x1xf32>
    %96 = vector.broadcast %95 : vector<8x1xf32> to vector<8x8xf32>
    %97 = arith.mulf %92, %96 : vector<8x8xf32>
    %98 = arith.truncf %97 : vector<8x8xf32> to vector<8x8xbf16>
    %99 = vector.extract_strided_slice %25 {offsets = [0, 96], sizes = [8, 32], strides = [1, 1]} : vector<8x128xbf16> to vector<8x32xbf16>
    %cst_30 = arith.constant dense<0.000000e+00> : vector<8x32xf32>
    %100 = tpu.matmul %98, %99, %cst_30 {dimension_numbers = #tpu.dot_dimension_numbers<[1], [0], [0], [1], [0, 0, 1, 1], [], []>} : vector<8x8xbf16>, vector<8x32xbf16>, vector<8x32xf32> -> vector<8x32xf32>
    %101 = arith.truncf %100 : vector<8x32xf32> to vector<8x32xbf16>
    %102 = vector.extract_strided_slice %22 {offsets = [96, 0], sizes = [32, 128], strides = [1, 1]} : vector<128x128xbf16> to vector<32x128xbf16>
    %cst_31 = arith.constant dense<0.000000e+00> : vector<8x128xf32>
    %103 = tpu.matmul %101, %102, %cst_31 {dimension_numbers = #tpu.dot_dimension_numbers<[1], [0], [0], [1], [0, 0, 1, 1], [], []>} : vector<8x32xbf16>, vector<32x128xbf16>, vector<8x128xf32> -> vector<8x128xf32>
    %104 = arith.addf %84, %103 : vector<8x128xf32>
    %105 = vector.extract_strided_slice %4 {offsets = [6, 0], sizes = [1, 128], strides = [1, 1]} : vector<16x128xf32> to vector<1x128xf32>
    %106 = vector.broadcast %105 : vector<1x128xf32> to vector<8x128xf32>
    %107 = arith.addf %104, %106 : vector<8x128xf32>
    %108 = arith.addf %1, %107 : vector<8x128xf32>
    %109 = vector.extract_strided_slice %4 {offsets = [9, 0], sizes = [1, 128], strides = [1, 1]} : vector<16x128xf32> to vector<1x128xf32>
    %110 = vector.extract_strided_slice %4 {offsets = [10, 0], sizes = [1, 128], strides = [1, 1]} : vector<16x128xf32> to vector<1x128xf32>
    %cst_32 = arith.constant dense<0.000000e+00> : vector<8xf32>
    %111 = vector.multi_reduction <add>, %108, %cst_32 [1] : vector<8x128xf32> to vector<8xf32>
    %112 = vector.shape_cast %111 : vector<8xf32> to vector<8x1xf32>
    %cst_33 = arith.constant 1.280000e+02 : f32
    %113 = vector.broadcast %cst_33 : f32 to vector<8x1xf32>
    %114 = arith.divf %112, %113 : vector<8x1xf32>
    %115 = vector.broadcast %114 : vector<8x1xf32> to vector<8x128xf32>
    %116 = arith.subf %108, %115 : vector<8x128xf32>
    %117 = arith.mulf %116, %116 : vector<8x128xf32>
    %cst_34 = arith.constant dense<0.000000e+00> : vector<8xf32>
    %118 = vector.multi_reduction <add>, %117, %cst_34 [1] : vector<8x128xf32> to vector<8xf32>
    %119 = vector.shape_cast %118 : vector<8xf32> to vector<8x1xf32>
    %cst_35 = arith.constant 1.280000e+02 : f32
    %120 = vector.broadcast %cst_35 : f32 to vector<8x1xf32>
    %121 = arith.divf %119, %120 : vector<8x1xf32>
    %122 = vector.broadcast %114 : vector<8x1xf32> to vector<8x128xf32>
    %123 = arith.subf %108, %122 : vector<8x128xf32>
    %cst_36 = arith.constant 9.99999974E-6 : f32
    %124 = vector.broadcast %cst_36 : f32 to vector<8x1xf32>
    %125 = arith.addf %121, %124 : vector<8x1xf32>
    %126 = math.rsqrt %125 : vector<8x1xf32>
    %127 = vector.broadcast %126 : vector<8x1xf32> to vector<8x128xf32>
    %128 = arith.mulf %123, %127 : vector<8x128xf32>
    %129 = vector.broadcast %109 : vector<1x128xf32> to vector<8x128xf32>
    %130 = arith.mulf %128, %129 : vector<8x128xf32>
    %131 = vector.broadcast %110 : vector<1x128xf32> to vector<8x128xf32>
    %132 = arith.addf %130, %131 : vector<8x128xf32>
    %c0_37 = arith.constant 0 : index
    %c0_38 = arith.constant 0 : index
    %133 = vector.load %arg5[%c0_37, %c0_38] : memref<128x128xbf16, #tpu.memory_space<vmem>>, vector<128x128xbf16>
    %134 = arith.truncf %132 : vector<8x128xf32> to vector<8x128xbf16>
    %cst_39 = arith.constant dense<0.000000e+00> : vector<8x128xf32>
    %135 = tpu.matmul %134, %133, %cst_39 {dimension_numbers = #tpu.dot_dimension_numbers<[1], [0], [0], [1], [0, 0, 1, 1], [], []>} : vector<8x128xbf16>, vector<128x128xbf16>, vector<8x128xf32> -> vector<8x128xf32>
    %136 = vector.extract_strided_slice %4 {offsets = [3, 0], sizes = [1, 128], strides = [1, 1]} : vector<16x128xf32> to vector<1x128xf32>
    %137 = vector.broadcast %136 : vector<1x128xf32> to vector<8x128xf32>
    %138 = arith.addf %135, %137 : vector<8x128xf32>
    %cst_40 = arith.constant 0.176776692 : f32
    %139 = vector.broadcast %cst_40 : f32 to vector<8x128xf32>
    %140 = arith.mulf %138, %139 : vector<8x128xf32>
    %c0_41 = arith.constant 0 : index
    %c0_42 = arith.constant 0 : index
    %141 = vector.load %arg6[%c0_41, %c0_42] : memref<128x256xbf16, #tpu.memory_space<vmem>>, vector<128x256xbf16>
    %142 = arith.truncf %3 : vector<16x128xf32> to vector<16x128xbf16>
    %cst_43 = arith.constant dense<0.000000e+00> : vector<16x256xf32>
    %143 = tpu.matmul %142, %141, %cst_43 {dimension_numbers = #tpu.dot_dimension_numbers<[1], [0], [0], [1], [0, 0, 1, 1], [], []>} : vector<16x128xbf16>, vector<128x256xbf16>, vector<16x256xf32> -> vector<16x256xf32>
    %144 = vector.extract_strided_slice %143 {offsets = [0, 0], sizes = [16, 128], strides = [1, 1]} : vector<16x256xf32> to vector<16x128xf32>
    %145 = vector.extract_strided_slice %4 {offsets = [4, 0], sizes = [1, 128], strides = [1, 1]} : vector<16x128xf32> to vector<1x128xf32>
    %146 = vector.broadcast %145 : vector<1x128xf32> to vector<16x128xf32>
    %147 = arith.addf %144, %146 : vector<16x128xf32>
    %148 = vector.extract_strided_slice %143 {offsets = [0, 128], sizes = [16, 128], strides = [1, 1]} : vector<16x256xf32> to vector<16x128xf32>
    %149 = vector.extract_strided_slice %4 {offsets = [5, 0], sizes = [1, 128], strides = [1, 1]} : vector<16x128xf32> to vector<1x128xf32>
    %150 = vector.broadcast %149 : vector<1x128xf32> to vector<16x128xf32>
    %151 = arith.addf %148, %150 : vector<16x128xf32>
    %c0_44 = arith.constant 0 : index
    %c0_45 = arith.constant 0 : index
    %152 = vector.load %arg7[%c0_44, %c0_45] : memref<128x128xbf16, #tpu.memory_space<vmem>>, vector<128x128xbf16>
    %153 = arith.truncf %140 : vector<8x128xf32> to vector<8x128xbf16>
    %154 = arith.truncf %147 : vector<16x128xf32> to vector<16x128xbf16>
    %155 = arith.truncf %151 : vector<16x128xf32> to vector<16x128xbf16>
    %156 = vector.extract_strided_slice %153 {offsets = [0, 0], sizes = [8, 32], strides = [1, 1]} : vector<8x128xbf16> to vector<8x32xbf16>
    %157 = vector.extract_strided_slice %154 {offsets = [0, 0], sizes = [16, 32], strides = [1, 1]} : vector<16x128xbf16> to vector<16x32xbf16>
    %cst_46 = arith.constant dense<0.000000e+00> : vector<8x16xf32>
    %158 = tpu.matmul %156, %157, %cst_46 {dimension_numbers = #tpu.dot_dimension_numbers<[1], [1], [0], [0], [0, 0, 1, 0], [], []>} : vector<8x32xbf16>, vector<16x32xbf16>, vector<8x16xf32> -> vector<8x16xf32>
    %cst_47 = arith.constant dense<0xFF800000> : vector<8xf32>
    %159 = vector.multi_reduction <maximumf>, %158, %cst_47 [1] : vector<8x16xf32> to vector<8xf32>
    %160 = vector.shape_cast %159 : vector<8xf32> to vector<8x1xf32>
    %161 = vector.broadcast %160 : vector<8x1xf32> to vector<8x16xf32>
    %162 = arith.subf %158, %161 : vector<8x16xf32>
    %163 = math.exp %162 : vector<8x16xf32>
    %cst_48 = arith.constant dense<0.000000e+00> : vector<8xf32>
    %164 = vector.multi_reduction <add>, %163, %cst_48 [1] : vector<8x16xf32> to vector<8xf32>
    %165 = vector.shape_cast %164 : vector<8xf32> to vector<8x1xf32>
    %166 = tpu.reciprocal %165 {approx = true} : vector<8x1xf32> -> vector<8x1xf32>
    %167 = vector.broadcast %166 : vector<8x1xf32> to vector<8x16xf32>
    %168 = arith.mulf %163, %167 : vector<8x16xf32>
    %169 = arith.truncf %168 : vector<8x16xf32> to vector<8x16xbf16>
    %170 = vector.extract_strided_slice %155 {offsets = [0, 0], sizes = [16, 32], strides = [1, 1]} : vector<16x128xbf16> to vector<16x32xbf16>
    %cst_49 = arith.constant dense<0.000000e+00> : vector<8x32xf32>
    %171 = tpu.matmul %169, %170, %cst_49 {dimension_numbers = #tpu.dot_dimension_numbers<[1], [0], [0], [1], [0, 0, 1, 1], [], []>} : vector<8x16xbf16>, vector<16x32xbf16>, vector<8x32xf32> -> vector<8x32xf32>
    %172 = arith.truncf %171 : vector<8x32xf32> to vector<8x32xbf16>
    %173 = vector.extract_strided_slice %152 {offsets = [0, 0], sizes = [32, 128], strides = [1, 1]} : vector<128x128xbf16> to vector<32x128xbf16>
    %cst_50 = arith.constant dense<0.000000e+00> : vector<8x128xf32>
    %174 = tpu.matmul %172, %173, %cst_50 {dimension_numbers = #tpu.dot_dimension_numbers<[1], [0], [0], [1], [0, 0, 1, 1], [], []>} : vector<8x32xbf16>, vector<32x128xbf16>, vector<8x128xf32> -> vector<8x128xf32>
    %175 = vector.extract_strided_slice %153 {offsets = [0, 32], sizes = [8, 32], strides = [1, 1]} : vector<8x128xbf16> to vector<8x32xbf16>
    %176 = vector.extract_strided_slice %154 {offsets = [0, 32], sizes = [16, 32], strides = [1, 1]} : vector<16x128xbf16> to vector<16x32xbf16>
    %cst_51 = arith.constant dense<0.000000e+00> : vector<8x16xf32>
    %177 = tpu.matmul %175, %176, %cst_51 {dimension_numbers = #tpu.dot_dimension_numbers<[1], [1], [0], [0], [0, 0, 1, 0], [], []>} : vector<8x32xbf16>, vector<16x32xbf16>, vector<8x16xf32> -> vector<8x16xf32>
    %cst_52 = arith.constant dense<0xFF800000> : vector<8xf32>
    %178 = vector.multi_reduction <maximumf>, %177, %cst_52 [1] : vector<8x16xf32> to vector<8xf32>
    %179 = vector.shape_cast %178 : vector<8xf32> to vector<8x1xf32>
    %180 = vector.broadcast %179 : vector<8x1xf32> to vector<8x16xf32>
    %181 = arith.subf %177, %180 : vector<8x16xf32>
    %182 = math.exp %181 : vector<8x16xf32>
    %cst_53 = arith.constant dense<0.000000e+00> : vector<8xf32>
    %183 = vector.multi_reduction <add>, %182, %cst_53 [1] : vector<8x16xf32> to vector<8xf32>
    %184 = vector.shape_cast %183 : vector<8xf32> to vector<8x1xf32>
    %185 = tpu.reciprocal %184 {approx = true} : vector<8x1xf32> -> vector<8x1xf32>
    %186 = vector.broadcast %185 : vector<8x1xf32> to vector<8x16xf32>
    %187 = arith.mulf %182, %186 : vector<8x16xf32>
    %188 = arith.truncf %187 : vector<8x16xf32> to vector<8x16xbf16>
    %189 = vector.extract_strided_slice %155 {offsets = [0, 32], sizes = [16, 32], strides = [1, 1]} : vector<16x128xbf16> to vector<16x32xbf16>
    %cst_54 = arith.constant dense<0.000000e+00> : vector<8x32xf32>
    %190 = tpu.matmul %188, %189, %cst_54 {dimension_numbers = #tpu.dot_dimension_numbers<[1], [0], [0], [1], [0, 0, 1, 1], [], []>} : vector<8x16xbf16>, vector<16x32xbf16>, vector<8x32xf32> -> vector<8x32xf32>
    %191 = arith.truncf %190 : vector<8x32xf32> to vector<8x32xbf16>
    %192 = vector.extract_strided_slice %152 {offsets = [32, 0], sizes = [32, 128], strides = [1, 1]} : vector<128x128xbf16> to vector<32x128xbf16>
    %cst_55 = arith.constant dense<0.000000e+00> : vector<8x128xf32>
    %193 = tpu.matmul %191, %192, %cst_55 {dimension_numbers = #tpu.dot_dimension_numbers<[1], [0], [0], [1], [0, 0, 1, 1], [], []>} : vector<8x32xbf16>, vector<32x128xbf16>, vector<8x128xf32> -> vector<8x128xf32>
    %194 = arith.addf %174, %193 : vector<8x128xf32>
    %195 = vector.extract_strided_slice %153 {offsets = [0, 64], sizes = [8, 32], strides = [1, 1]} : vector<8x128xbf16> to vector<8x32xbf16>
    %196 = vector.extract_strided_slice %154 {offsets = [0, 64], sizes = [16, 32], strides = [1, 1]} : vector<16x128xbf16> to vector<16x32xbf16>
    %cst_56 = arith.constant dense<0.000000e+00> : vector<8x16xf32>
    %197 = tpu.matmul %195, %196, %cst_56 {dimension_numbers = #tpu.dot_dimension_numbers<[1], [1], [0], [0], [0, 0, 1, 0], [], []>} : vector<8x32xbf16>, vector<16x32xbf16>, vector<8x16xf32> -> vector<8x16xf32>
    %cst_57 = arith.constant dense<0xFF800000> : vector<8xf32>
    %198 = vector.multi_reduction <maximumf>, %197, %cst_57 [1] : vector<8x16xf32> to vector<8xf32>
    %199 = vector.shape_cast %198 : vector<8xf32> to vector<8x1xf32>
    %200 = vector.broadcast %199 : vector<8x1xf32> to vector<8x16xf32>
    %201 = arith.subf %197, %200 : vector<8x16xf32>
    %202 = math.exp %201 : vector<8x16xf32>
    %cst_58 = arith.constant dense<0.000000e+00> : vector<8xf32>
    %203 = vector.multi_reduction <add>, %202, %cst_58 [1] : vector<8x16xf32> to vector<8xf32>
    %204 = vector.shape_cast %203 : vector<8xf32> to vector<8x1xf32>
    %205 = tpu.reciprocal %204 {approx = true} : vector<8x1xf32> -> vector<8x1xf32>
    %206 = vector.broadcast %205 : vector<8x1xf32> to vector<8x16xf32>
    %207 = arith.mulf %202, %206 : vector<8x16xf32>
    %208 = arith.truncf %207 : vector<8x16xf32> to vector<8x16xbf16>
    %209 = vector.extract_strided_slice %155 {offsets = [0, 64], sizes = [16, 32], strides = [1, 1]} : vector<16x128xbf16> to vector<16x32xbf16>
    %cst_59 = arith.constant dense<0.000000e+00> : vector<8x32xf32>
    %210 = tpu.matmul %208, %209, %cst_59 {dimension_numbers = #tpu.dot_dimension_numbers<[1], [0], [0], [1], [0, 0, 1, 1], [], []>} : vector<8x16xbf16>, vector<16x32xbf16>, vector<8x32xf32> -> vector<8x32xf32>
    %211 = arith.truncf %210 : vector<8x32xf32> to vector<8x32xbf16>
    %212 = vector.extract_strided_slice %152 {offsets = [64, 0], sizes = [32, 128], strides = [1, 1]} : vector<128x128xbf16> to vector<32x128xbf16>
    %cst_60 = arith.constant dense<0.000000e+00> : vector<8x128xf32>
    %213 = tpu.matmul %211, %212, %cst_60 {dimension_numbers = #tpu.dot_dimension_numbers<[1], [0], [0], [1], [0, 0, 1, 1], [], []>} : vector<8x32xbf16>, vector<32x128xbf16>, vector<8x128xf32> -> vector<8x128xf32>
    %214 = arith.addf %194, %213 : vector<8x128xf32>
    %215 = vector.extract_strided_slice %153 {offsets = [0, 96], sizes = [8, 32], strides = [1, 1]} : vector<8x128xbf16> to vector<8x32xbf16>
    %216 = vector.extract_strided_slice %154 {offsets = [0, 96], sizes = [16, 32], strides = [1, 1]} : vector<16x128xbf16> to vector<16x32xbf16>
    %cst_61 = arith.constant dense<0.000000e+00> : vector<8x16xf32>
    %217 = tpu.matmul %215, %216, %cst_61 {dimension_numbers = #tpu.dot_dimension_numbers<[1], [1], [0], [0], [0, 0, 1, 0], [], []>} : vector<8x32xbf16>, vector<16x32xbf16>, vector<8x16xf32> -> vector<8x16xf32>
    %cst_62 = arith.constant dense<0xFF800000> : vector<8xf32>
    %218 = vector.multi_reduction <maximumf>, %217, %cst_62 [1] : vector<8x16xf32> to vector<8xf32>
    %219 = vector.shape_cast %218 : vector<8xf32> to vector<8x1xf32>
    %220 = vector.broadcast %219 : vector<8x1xf32> to vector<8x16xf32>
    %221 = arith.subf %217, %220 : vector<8x16xf32>
    %222 = math.exp %221 : vector<8x16xf32>
    %cst_63 = arith.constant dense<0.000000e+00> : vector<8xf32>
    %223 = vector.multi_reduction <add>, %222, %cst_63 [1] : vector<8x16xf32> to vector<8xf32>
    %224 = vector.shape_cast %223 : vector<8xf32> to vector<8x1xf32>
    %225 = tpu.reciprocal %224 {approx = true} : vector<8x1xf32> -> vector<8x1xf32>
    %226 = vector.broadcast %225 : vector<8x1xf32> to vector<8x16xf32>
    %227 = arith.mulf %222, %226 : vector<8x16xf32>
    %228 = arith.truncf %227 : vector<8x16xf32> to vector<8x16xbf16>
    %229 = vector.extract_strided_slice %155 {offsets = [0, 96], sizes = [16, 32], strides = [1, 1]} : vector<16x128xbf16> to vector<16x32xbf16>
    %cst_64 = arith.constant dense<0.000000e+00> : vector<8x32xf32>
    %230 = tpu.matmul %228, %229, %cst_64 {dimension_numbers = #tpu.dot_dimension_numbers<[1], [0], [0], [1], [0, 0, 1, 1], [], []>} : vector<8x16xbf16>, vector<16x32xbf16>, vector<8x32xf32> -> vector<8x32xf32>
    %231 = arith.truncf %230 : vector<8x32xf32> to vector<8x32xbf16>
    %232 = vector.extract_strided_slice %152 {offsets = [96, 0], sizes = [32, 128], strides = [1, 1]} : vector<128x128xbf16> to vector<32x128xbf16>
    %cst_65 = arith.constant dense<0.000000e+00> : vector<8x128xf32>
    %233 = tpu.matmul %231, %232, %cst_65 {dimension_numbers = #tpu.dot_dimension_numbers<[1], [0], [0], [1], [0, 0, 1, 1], [], []>} : vector<8x32xbf16>, vector<32x128xbf16>, vector<8x128xf32> -> vector<8x128xf32>
    %234 = arith.addf %214, %233 : vector<8x128xf32>
    %235 = vector.extract_strided_slice %4 {offsets = [7, 0], sizes = [1, 128], strides = [1, 1]} : vector<16x128xf32> to vector<1x128xf32>
    %236 = vector.broadcast %235 : vector<1x128xf32> to vector<8x128xf32>
    %237 = arith.addf %234, %236 : vector<8x128xf32>
    %238 = arith.addf %132, %237 : vector<8x128xf32>
    %239 = vector.extract_strided_slice %4 {offsets = [11, 0], sizes = [1, 128], strides = [1, 1]} : vector<16x128xf32> to vector<1x128xf32>
    %240 = vector.extract_strided_slice %4 {offsets = [12, 0], sizes = [1, 128], strides = [1, 1]} : vector<16x128xf32> to vector<1x128xf32>
    %cst_66 = arith.constant dense<0.000000e+00> : vector<8xf32>
    %241 = vector.multi_reduction <add>, %238, %cst_66 [1] : vector<8x128xf32> to vector<8xf32>
    %242 = vector.shape_cast %241 : vector<8xf32> to vector<8x1xf32>
    %cst_67 = arith.constant 1.280000e+02 : f32
    %243 = vector.broadcast %cst_67 : f32 to vector<8x1xf32>
    %244 = arith.divf %242, %243 : vector<8x1xf32>
    %245 = vector.broadcast %244 : vector<8x1xf32> to vector<8x128xf32>
    %246 = arith.subf %238, %245 : vector<8x128xf32>
    %247 = arith.mulf %246, %246 : vector<8x128xf32>
    %cst_68 = arith.constant dense<0.000000e+00> : vector<8xf32>
    %248 = vector.multi_reduction <add>, %247, %cst_68 [1] : vector<8x128xf32> to vector<8xf32>
    %249 = vector.shape_cast %248 : vector<8xf32> to vector<8x1xf32>
    %cst_69 = arith.constant 1.280000e+02 : f32
    %250 = vector.broadcast %cst_69 : f32 to vector<8x1xf32>
    %251 = arith.divf %249, %250 : vector<8x1xf32>
    %252 = vector.broadcast %244 : vector<8x1xf32> to vector<8x128xf32>
    %253 = arith.subf %238, %252 : vector<8x128xf32>
    %cst_70 = arith.constant 9.99999974E-6 : f32
    %254 = vector.broadcast %cst_70 : f32 to vector<8x1xf32>
    %255 = arith.addf %251, %254 : vector<8x1xf32>
    %256 = math.rsqrt %255 : vector<8x1xf32>
    %257 = vector.broadcast %256 : vector<8x1xf32> to vector<8x128xf32>
    %258 = arith.mulf %253, %257 : vector<8x128xf32>
    %259 = vector.broadcast %239 : vector<1x128xf32> to vector<8x128xf32>
    %260 = arith.mulf %258, %259 : vector<8x128xf32>
    %261 = vector.broadcast %240 : vector<1x128xf32> to vector<8x128xf32>
    %262 = arith.addf %260, %261 : vector<8x128xf32>
    %c0_71 = arith.constant 0 : index
    %c0_72 = arith.constant 0 : index
    %263 = vector.load %arg8[%c0_71, %c0_72] : memref<128x128xbf16, #tpu.memory_space<vmem>>, vector<128x128xbf16>
    %264 = arith.truncf %262 : vector<8x128xf32> to vector<8x128xbf16>
    %cst_73 = arith.constant dense<0.000000e+00> : vector<8x128xf32>
    %265 = tpu.matmul %264, %263, %cst_73 {dimension_numbers = #tpu.dot_dimension_numbers<[1], [0], [0], [1], [0, 0, 1, 1], [], []>} : vector<8x128xbf16>, vector<128x128xbf16>, vector<8x128xf32> -> vector<8x128xf32>
    %c0_74 = arith.constant 0 : index
    %c0_75 = arith.constant 0 : index
    %266 = vector.load %arg11[%c0_74, %c0_75] : memref<1x128xf32, #tpu.memory_space<vmem>>, vector<1x128xf32>
    %267 = vector.broadcast %266 : vector<1x128xf32> to vector<8x128xf32>
    %268 = arith.addf %265, %267 : vector<8x128xf32>
    %cst_76 = arith.constant 0.000000e+00 : f32
    %269 = vector.broadcast %cst_76 : f32 to vector<8x128xf32>
    %270 = arith.maximumf %268, %269 : vector<8x128xf32>
    %c0_77 = arith.constant 0 : index
    %c0_78 = arith.constant 0 : index
    %271 = vector.load %arg9[%c0_77, %c0_78] : memref<128x128xbf16, #tpu.memory_space<vmem>>, vector<128x128xbf16>
    %272 = arith.truncf %270 : vector<8x128xf32> to vector<8x128xbf16>
    %cst_79 = arith.constant dense<0.000000e+00> : vector<8x128xf32>
    %273 = tpu.matmul %272, %271, %cst_79 {dimension_numbers = #tpu.dot_dimension_numbers<[1], [0], [0], [1], [0, 0, 1, 1], [], []>} : vector<8x128xbf16>, vector<128x128xbf16>, vector<8x128xf32> -> vector<8x128xf32>
    %274 = vector.extract_strided_slice %4 {offsets = [8, 0], sizes = [1, 128], strides = [1, 1]} : vector<16x128xf32> to vector<1x128xf32>
    %275 = vector.broadcast %274 : vector<1x128xf32> to vector<8x128xf32>
    %276 = arith.addf %273, %275 : vector<8x128xf32>
    %277 = arith.addf %262, %276 : vector<8x128xf32>
    %278 = vector.extract_strided_slice %4 {offsets = [13, 0], sizes = [1, 128], strides = [1, 1]} : vector<16x128xf32> to vector<1x128xf32>
    %279 = vector.extract_strided_slice %4 {offsets = [14, 0], sizes = [1, 128], strides = [1, 1]} : vector<16x128xf32> to vector<1x128xf32>
    %cst_80 = arith.constant dense<0.000000e+00> : vector<8xf32>
    %280 = vector.multi_reduction <add>, %277, %cst_80 [1] : vector<8x128xf32> to vector<8xf32>
    %281 = vector.shape_cast %280 : vector<8xf32> to vector<8x1xf32>
    %cst_81 = arith.constant 1.280000e+02 : f32
    %282 = vector.broadcast %cst_81 : f32 to vector<8x1xf32>
    %283 = arith.divf %281, %282 : vector<8x1xf32>
    %284 = vector.broadcast %283 : vector<8x1xf32> to vector<8x128xf32>
    %285 = arith.subf %277, %284 : vector<8x128xf32>
    %286 = arith.mulf %285, %285 : vector<8x128xf32>
    %cst_82 = arith.constant dense<0.000000e+00> : vector<8xf32>
    %287 = vector.multi_reduction <add>, %286, %cst_82 [1] : vector<8x128xf32> to vector<8xf32>
    %288 = vector.shape_cast %287 : vector<8xf32> to vector<8x1xf32>
    %cst_83 = arith.constant 1.280000e+02 : f32
    %289 = vector.broadcast %cst_83 : f32 to vector<8x1xf32>
    %290 = arith.divf %288, %289 : vector<8x1xf32>
    %291 = vector.broadcast %283 : vector<8x1xf32> to vector<8x128xf32>
    %292 = arith.subf %277, %291 : vector<8x128xf32>
    %cst_84 = arith.constant 9.99999974E-6 : f32
    %293 = vector.broadcast %cst_84 : f32 to vector<8x1xf32>
    %294 = arith.addf %290, %293 : vector<8x1xf32>
    %295 = math.rsqrt %294 : vector<8x1xf32>
    %296 = vector.broadcast %295 : vector<8x1xf32> to vector<8x128xf32>
    %297 = arith.mulf %292, %296 : vector<8x128xf32>
    %298 = vector.broadcast %278 : vector<1x128xf32> to vector<8x128xf32>
    %299 = arith.mulf %297, %298 : vector<8x128xf32>
    %300 = vector.broadcast %279 : vector<1x128xf32> to vector<8x128xf32>
    %301 = arith.addf %299, %300 : vector<8x128xf32>
    %c0_85 = arith.constant 0 : index
    %c0_86 = arith.constant 0 : index
    %c0_87 = arith.constant 0 : index
    %302 = vector.load %arg12[%c0_85, %c0_86, %c0_87] : memref<1x8x128xf32, #tpu.memory_space<vmem>>, vector<1x8x128xf32>
    %303 = vector.shape_cast %302 : vector<1x8x128xf32> to vector<8x128xf32>
    %304 = vector.shape_cast %301 : vector<8x128xf32> to vector<1x8x128xf32>
    tpu.vector_store %arg12[%c0_85, %c0_86, %c0_87], %304 {strides = array<i32>} : memref<1x8x128xf32, #tpu.memory_space<vmem>>, vector<1x8x128xf32>,
    return
  }
  func.func @transform_0(%arg0: i32) -> (i32, i32, i32) {
    %c0_i32 = arith.constant 0 : i32
    %c0_i32_0 = arith.constant 0 : i32
    %c0_i32_1 = arith.constant 0 : i32
    return %arg0, %c0_i32, %c0_i32_0 : i32, i32, i32
  }
  func.func @transform_1(%arg0: i32) -> (i32, i32, i32) {
    %c0_i32 = arith.constant 0 : i32
    %c0_i32_0 = arith.constant 0 : i32
    %c0_i32_1 = arith.constant 0 : i32
    return %arg0, %c0_i32, %c0_i32_0 : i32, i32, i32
  }
  func.func @transform_2(%arg0: i32) -> (i32, i32) {
    %c0_i32 = arith.constant 0 : i32
    %c0_i32_0 = arith.constant 0 : i32
    %c0_i32_1 = arith.constant 0 : i32
    return %c0_i32, %c0_i32_0 : i32, i32
  }
  func.func @transform_3(%arg0: i32) -> (i32, i32) {
    %c0_i32 = arith.constant 0 : i32
    %c0_i32_0 = arith.constant 0 : i32
    %c0_i32_1 = arith.constant 0 : i32
    return %c0_i32, %c0_i32_0 : i32, i32
  }
  func.func @transform_4(%arg0: i32) -> (i32, i32) {
    %c0_i32 = arith.constant 0 : i32
    %c0_i32_0 = arith.constant 0 : i32
    %c0_i32_1 = arith.constant 0 : i32
    return %c0_i32, %c0_i32_0 : i32, i32
  }
  func.func @transform_5(%arg0: i32) -> (i32, i32) {
    %c0_i32 = arith.constant 0 : i32
    %c0_i32_0 = arith.constant 0 : i32
    %c0_i32_1 = arith.constant 0 : i32
    return %c0_i32, %c0_i32_0 : i32, i32
  }
  func.func @transform_6(%arg0: i32) -> (i32, i32) {
    %c0_i32 = arith.constant 0 : i32
    %c0_i32_0 = arith.constant 0 : i32
    %c0_i32_1 = arith.constant 0 : i32
    return %c0_i32, %c0_i32_0 : i32, i32
  }
  func.func @transform_7(%arg0: i32) -> (i32, i32) {
    %c0_i32 = arith.constant 0 : i32
    %c0_i32_0 = arith.constant 0 : i32
    %c0_i32_1 = arith.constant 0 : i32
    return %c0_i32, %c0_i32_0 : i32, i32
  }
  func.func @transform_8(%arg0: i32) -> (i32, i32) {
    %c0_i32 = arith.constant 0 : i32
    %c0_i32_0 = arith.constant 0 : i32
    %c0_i32_1 = arith.constant 0 : i32
    return %c0_i32, %c0_i32_0 : i32, i32
  }
  func.func @transform_9(%arg0: i32) -> (i32, i32) {
    %c0_i32 = arith.constant 0 : i32
    %c0_i32_0 = arith.constant 0 : i32
    %c0_i32_1 = arith.constant 0 : i32
    return %c0_i32, %c0_i32_0 : i32, i32
  }
  func.func @transform_10(%arg0: i32) -> (i32, i32) {
    %c0_i32 = arith.constant 0 : i32
    %c0_i32_0 = arith.constant 0 : i32
    %c0_i32_1 = arith.constant 0 : i32
    return %c0_i32, %c0_i32_0 : i32, i32
  }
  func.func @transform_11(%arg0: i32) -> (i32, i32, i32) {
    %c0_i32 = arith.constant 0 : i32
    %c0_i32_0 = arith.constant 0 : i32
    %c0_i32_1 = arith.constant 0 : i32
    return %arg0, %c0_i32, %c0_i32_0 : i32, i32, i32
  }
}

module attributes {stable_mosaic.version = 11 : i64} {
  func.func @decoder_layer_kernel(%arg0: i32, %arg1: memref<1x8x128xf32, #tpu.memory_space<vmem>>, %arg2: memref<1x16x128xf32, #tpu.memory_space<vmem>>, %arg3: memref<128x384xbf16, #tpu.memory_space<vmem>>, %arg4: memref<128x128xbf16, #tpu.memory_space<vmem>>, %arg5: memref<128x128xbf16, #tpu.memory_space<vmem>>, %arg6: memref<128x256xbf16, #tpu.memory_space<vmem>>, %arg7: memref<128x128xbf16, #tpu.memory_space<vmem>>, %arg8: memref<128x128xbf16, #tpu.memory_space<vmem>>, %arg9: memref<128x128xbf16, #tpu.memory_space<vmem>>, %arg10: memref<16x128xf32, #tpu.memory_space<vmem>>, %arg11: memref<1x128xf32, #tpu.memory_space<vmem>>, %arg12: memref<1x8x128xf32, #tpu.memory_space<vmem>>) attributes {dimension_semantics = [#tpu.dimension_semantics<parallel>], iteration_bounds = array<i64: 2>, scalar_prefetch = 0 : i64, scratch_operands = 0 : i64, tpu.core_type = #tpu.core_type<tc>, window_params = [{transform_indices = @transform_0, window_bounds = array<i64: 1, 8, 128>}, {transform_indices = @transform_1, window_bounds = array<i64: 1, 16, 128>}, {pipeline_mode = #tpu.pipeline_mode<synchronous>, transform_indices = @transform_2, window_bounds = array<i64: 128, 384>}, {pipeline_mode = #tpu.pipeline_mode<synchronous>, transform_indices = @transform_3, window_bounds = array<i64: 128, 128>}, {pipeline_mode = #tpu.pipeline_mode<synchronous>, transform_indices = @transform_4, window_bounds = array<i64: 128, 128>}, {pipeline_mode = #tpu.pipeline_mode<synchronous>, transform_indices = @transform_5, window_bounds = array<i64: 128, 256>}, {pipeline_mode = #tpu.pipeline_mode<synchronous>, transform_indices = @transform_6, window_bounds = array<i64: 128, 128>}, {pipeline_mode = #tpu.pipeline_mode<synchronous>, transform_indices = @transform_7, window_bounds = array<i64: 128, 128>}, {pipeline_mode = #tpu.pipeline_mode<synchronous>, transform_indices = @transform_8, window_bounds = array<i64: 128, 128>}, {pipeline_mode = #tpu.pipeline_mode<synchronous>, transform_indices = @transform_9, window_bounds = array<i64: 16, 128>}, {pipeline_mode = #tpu.pipeline_mode<synchronous>, transform_indices = @transform_10, window_bounds = array<i64: 1, 128>}, {transform_indices = @transform_11, window_bounds = array<i64: 1, 8, 128>}]} {
    %c0 = arith.constant 0 : index
    %c0_0 = arith.constant 0 : index
    %c0_1 = arith.constant 0 : index
    %0 = vector.load %arg1[%c0, %c0_0, %c0_1] : memref<1x8x128xf32, #tpu.memory_space<vmem>>, vector<1x8x128xf32>
    %1 = vector.shape_cast %0 : vector<1x8x128xf32> to vector<8x128xf32>
    %c0_2 = arith.constant 0 : index
    %c0_3 = arith.constant 0 : index
    %c0_4 = arith.constant 0 : index
    %2 = vector.load %arg2[%c0_2, %c0_3, %c0_4] : memref<1x16x128xf32, #tpu.memory_space<vmem>>, vector<1x16x128xf32>
    %3 = vector.shape_cast %2 : vector<1x16x128xf32> to vector<16x128xf32>
    %c0_5 = arith.constant 0 : index
    %c0_6 = arith.constant 0 : index
    %4 = vector.load %arg10[%c0_5, %c0_6] : memref<16x128xf32, #tpu.memory_space<vmem>>, vector<16x128xf32>
    %c0_7 = arith.constant 0 : index
    %c0_8 = arith.constant 0 : index
    %5 = vector.load %arg3[%c0_7, %c0_8] : memref<128x384xbf16, #tpu.memory_space<vmem>>, vector<128x384xbf16>
    %6 = arith.truncf %1 : vector<8x128xf32> to vector<8x128xbf16>
    %cst = arith.constant dense<0.000000e+00> : vector<8x384xf32>
    %7 = tpu.matmul %6, %5, %cst {dimension_numbers = #tpu.dot_dimension_numbers<[1], [0], [0], [1], [0, 0, 1, 1], [], []>} : vector<8x128xbf16>, vector<128x384xbf16>, vector<8x384xf32> -> vector<8x384xf32>
    %8 = vector.extract_strided_slice %7 {offsets = [0, 0], sizes = [8, 128], strides = [1, 1]} : vector<8x384xf32> to vector<8x128xf32>
    %9 = vector.extract_strided_slice %4 {offsets = [0, 0], sizes = [1, 128], strides = [1, 1]} : vector<16x128xf32> to vector<1x128xf32>
    %10 = vector.broadcast %9 : vector<1x128xf32> to vector<8x128xf32>
    %11 = arith.addf %8, %10 : vector<8x128xf32>
    %cst_9 = arith.constant 0.176776692 : f32
    %12 = vector.broadcast %cst_9 : f32 to vector<8x128xf32>
    %13 = arith.mulf %11, %12 : vector<8x128xf32>
    %14 = vector.extract_strided_slice %7 {offsets = [0, 128], sizes = [8, 128], strides = [1, 1]} : vector<8x384xf32> to vector<8x128xf32>
    %15 = vector.extract_strided_slice %4 {offsets = [1, 0], sizes = [1, 128], strides = [1, 1]} : vector<16x128xf32> to vector<1x128xf32>
    %16 = vector.broadcast %15 : vector<1x128xf32> to vector<8x128xf32>
    %17 = arith.addf %14, %16 : vector<8x128xf32>
    %18 = vector.extract_strided_slice %7 {offsets = [0, 256], sizes = [8, 128], strides = [1, 1]} : vector<8x384xf32> to vector<8x128xf32>
    %19 = vector.extract_strided_slice %4 {offsets = [2, 0], sizes = [1, 128], strides = [1, 1]} : vector<16x128xf32> to vector<1x128xf32>
    %20 = vector.broadcast %19 : vector<1x128xf32> to vector<8x128xf32>
    %21 = arith.addf %18, %20 : vector<8x128xf32>
    %c0_10 = arith.constant 0 : index
    %c0_11 = arith.constant 0 : index
    %22 = vector.load %arg4[%c0_10, %c0_11] : memref<128x128xbf16, #tpu.memory_space<vmem>>, vector<128x128xbf16>
    %23 = arith.truncf %13 : vector<8x128xf32> to vector<8x128xbf16>
    %24 = arith.truncf %17 : vector<8x128xf32> to vector<8x128xbf16>
    %25 = arith.truncf %21 : vector<8x128xf32> to vector<8x128xbf16>
    %26 = vector.extract_strided_slice %23 {offsets = [0, 0], sizes = [8, 32], strides = [1, 1]} : vector<8x128xbf16> to vector<8x32xbf16>
    %27 = vector.extract_strided_slice %24 {offsets = [0, 0], sizes = [8, 32], strides = [1, 1]} : vector<8x128xbf16> to vector<8x32xbf16>
    %cst_12 = arith.constant dense<0.000000e+00> : vector<8x8xf32>
    %28 = tpu.matmul %26, %27, %cst_12 {dimension_numbers = #tpu.dot_dimension_numbers<[1], [1], [0], [0], [0, 0, 1, 0], [], []>} : vector<8x32xbf16>, vector<8x32xbf16>, vector<8x8xf32> -> vector<8x8xf32>
    %cst_13 = arith.constant dense<0xFF800000> : vector<8xf32>
    %29 = vector.multi_reduction <maximumf>, %28, %cst_13 [1] : vector<8x8xf32> to vector<8xf32>
    %30 = vector.shape_cast %29 : vector<8xf32> to vector<8x1xf32>
    %31 = vector.broadcast %30 : vector<8x1xf32> to vector<8x8xf32>
    %32 = arith.subf %28, %31 : vector<8x8xf32>
    %33 = math.exp %32 : vector<8x8xf32>
    %cst_14 = arith.constant dense<0.000000e+00> : vector<8xf32>
    %34 = vector.multi_reduction <add>, %33, %cst_14 [1] : vector<8x8xf32> to vector<8xf32>
    %35 = vector.shape_cast %34 : vector<8xf32> to vector<8x1xf32>
    %36 = tpu.reciprocal %35 {approx = true} : vector<8x1xf32> -> vector<8x1xf32>
    %37 = vector.broadcast %36 : vector<8x1xf32> to vector<8x8xf32>
    %38 = arith.mulf %33, %37 : vector<8x8xf32>
    %39 = arith.truncf %38 : vector<8x8xf32> to vector<8x8xbf16>
    %40 = vector.extract_strided_slice %25 {offsets = [0, 0], sizes = [8, 32], strides = [1, 1]} : vector<8x128xbf16> to vector<8x32xbf16>
    %cst_15 = arith.constant dense<0.000000e+00> : vector<8x32xf32>
    %41 = tpu.matmul %39, %40, %cst_15 {dimension_numbers = #tpu.dot_dimension_numbers<[1], [0], [0], [1], [0, 0, 1, 1], [], []>} : vector<8x8xbf16>, vector<8x32xbf16>, vector<8x32xf32> -> vector<8x32xf32>
    %42 = arith.truncf %41 : vector<8x32xf32> to vector<8x32xbf16>
    %43 = vector.extract_strided_slice %22 {offsets = [0, 0], sizes = [32, 128], strides = [1, 1]} : vector<128x128xbf16> to vector<32x128xbf16>
    %cst_16 = arith.constant dense<0.000000e+00> : vector<8x128xf32>
    %44 = tpu.matmul %42, %43, %cst_16 {dimension_numbers = #tpu.dot_dimension_numbers<[1], [0], [0], [1], [0, 0, 1, 1], [], []>} : vector<8x32xbf16>, vector<32x128xbf16>, vector<8x128xf32> -> vector<8x128xf32>
    %45 = vector.extract_strided_slice %23 {offsets = [0, 32], sizes = [8, 32], strides = [1, 1]} : vector<8x128xbf16> to vector<8x32xbf16>
    %46 = vector.extract_strided_slice %24 {offsets = [0, 32], sizes = [8, 32], strides = [1, 1]} : vector<8x128xbf16> to vector<8x32xbf16>
    %cst_17 = arith.constant dense<0.000000e+00> : vector<8x8xf32>
    %47 = tpu.matmul %45, %46, %cst_17 {dimension_numbers = #tpu.dot_dimension_numbers<[1], [1], [0], [0], [0, 0, 1, 0], [], []>} : vector<8x32xbf16>, vector<8x32xbf16>, vector<8x8xf32> -> vector<8x8xf32>
    %cst_18 = arith.constant dense<0xFF800000> : vector<8xf32>
    %48 = vector.multi_reduction <maximumf>, %47, %cst_18 [1] : vector<8x8xf32> to vector<8xf32>
    %49 = vector.shape_cast %48 : vector<8xf32> to vector<8x1xf32>
    %50 = vector.broadcast %49 : vector<8x1xf32> to vector<8x8xf32>
    %51 = arith.subf %47, %50 : vector<8x8xf32>
    %52 = math.exp %51 : vector<8x8xf32>
    %cst_19 = arith.constant dense<0.000000e+00> : vector<8xf32>
    %53 = vector.multi_reduction <add>, %52, %cst_19 [1] : vector<8x8xf32> to vector<8xf32>
    %54 = vector.shape_cast %53 : vector<8xf32> to vector<8x1xf32>
    %55 = tpu.reciprocal %54 {approx = true} : vector<8x1xf32> -> vector<8x1xf32>
    %56 = vector.broadcast %55 : vector<8x1xf32> to vector<8x8xf32>
    %57 = arith.mulf %52, %56 : vector<8x8xf32>
    %58 = arith.truncf %57 : vector<8x8xf32> to vector<8x8xbf16>
    %59 = vector.extract_strided_slice %25 {offsets = [0, 32], sizes = [8, 32], strides = [1, 1]} : vector<8x128xbf16> to vector<8x32xbf16>
    %cst_20 = arith.constant dense<0.000000e+00> : vector<8x32xf32>
    %60 = tpu.matmul %58, %59, %cst_20 {dimension_numbers = #tpu.dot_dimension_numbers<[1], [0], [0], [1], [0, 0, 1, 1], [], []>} : vector<8x8xbf16>, vector<8x32xbf16>, vector<8x32xf32> -> vector<8x32xf32>
    %61 = arith.truncf %60 : vector<8x32xf32> to vector<8x32xbf16>
    %62 = vector.extract_strided_slice %22 {offsets = [32, 0], sizes = [32, 128], strides = [1, 1]} : vector<128x128xbf16> to vector<32x128xbf16>
    %cst_21 = arith.constant dense<0.000000e+00> : vector<8x128xf32>
    %63 = tpu.matmul %61, %62, %cst_21 {dimension_numbers = #tpu.dot_dimension_numbers<[1], [0], [0], [1], [0, 0, 1, 1], [], []>} : vector<8x32xbf16>, vector<32x128xbf16>, vector<8x128xf32> -> vector<8x128xf32>
    %64 = arith.addf %44, %63 : vector<8x128xf32>
    %65 = vector.extract_strided_slice %23 {offsets = [0, 64], sizes = [8, 32], strides = [1, 1]} : vector<8x128xbf16> to vector<8x32xbf16>
    %66 = vector.extract_strided_slice %24 {offsets = [0, 64], sizes = [8, 32], strides = [1, 1]} : vector<8x128xbf16> to vector<8x32xbf16>
    %cst_22 = arith.constant dense<0.000000e+00> : vector<8x8xf32>
    %67 = tpu.matmul %65, %66, %cst_22 {dimension_numbers = #tpu.dot_dimension_numbers<[1], [1], [0], [0], [0, 0, 1, 0], [], []>} : vector<8x32xbf16>, vector<8x32xbf16>, vector<8x8xf32> -> vector<8x8xf32>
    %cst_23 = arith.constant dense<0xFF800000> : vector<8xf32>
    %68 = vector.multi_reduction <maximumf>, %67, %cst_23 [1] : vector<8x8xf32> to vector<8xf32>
    %69 = vector.shape_cast %68 : vector<8xf32> to vector<8x1xf32>
    %70 = vector.broadcast %69 : vector<8x1xf32> to vector<8x8xf32>
    %71 = arith.subf %67, %70 : vector<8x8xf32>
    %72 = math.exp %71 : vector<8x8xf32>
    %cst_24 = arith.constant dense<0.000000e+00> : vector<8xf32>
    %73 = vector.multi_reduction <add>, %72, %cst_24 [1] : vector<8x8xf32> to vector<8xf32>
    %74 = vector.shape_cast %73 : vector<8xf32> to vector<8x1xf32>
    %75 = tpu.reciprocal %74 {approx = true} : vector<8x1xf32> -> vector<8x1xf32>
    %76 = vector.broadcast %75 : vector<8x1xf32> to vector<8x8xf32>
    %77 = arith.mulf %72, %76 : vector<8x8xf32>
    %78 = arith.truncf %77 : vector<8x8xf32> to vector<8x8xbf16>
    %79 = vector.extract_strided_slice %25 {offsets = [0, 64], sizes = [8, 32], strides = [1, 1]} : vector<8x128xbf16> to vector<8x32xbf16>
    %cst_25 = arith.constant dense<0.000000e+00> : vector<8x32xf32>
    %80 = tpu.matmul %78, %79, %cst_25 {dimension_numbers = #tpu.dot_dimension_numbers<[1], [0], [0], [1], [0, 0, 1, 1], [], []>} : vector<8x8xbf16>, vector<8x32xbf16>, vector<8x32xf32> -> vector<8x32xf32>
    %81 = arith.truncf %80 : vector<8x32xf32> to vector<8x32xbf16>
    %82 = vector.extract_strided_slice %22 {offsets = [64, 0], sizes = [32, 128], strides = [1, 1]} : vector<128x128xbf16> to vector<32x128xbf16>
    %cst_26 = arith.constant dense<0.000000e+00> : vector<8x128xf32>
    %83 = tpu.matmul %81, %82, %cst_26 {dimension_numbers = #tpu.dot_dimension_numbers<[1], [0], [0], [1], [0, 0, 1, 1], [], []>} : vector<8x32xbf16>, vector<32x128xbf16>, vector<8x128xf32> -> vector<8x128xf32>
    %84 = arith.addf %64, %83 : vector<8x128xf32>
    %85 = vector.extract_strided_slice %23 {offsets = [0, 96], sizes = [8, 32], strides = [1, 1]} : vector<8x128xbf16> to vector<8x32xbf16>
    %86 = vector.extract_strided_slice %24 {offsets = [0, 96], sizes = [8, 32], strides = [1, 1]} : vector<8x128xbf16> to vector<8x32xbf16>
    %cst_27 = arith.constant dense<0.000000e+00> : vector<8x8xf32>
    %87 = tpu.matmul %85, %86, %cst_27 {dimension_numbers = #tpu.dot_dimension_numbers<[1], [1], [0], [0], [0, 0, 1, 0], [], []>} : vector<8x32xbf16>, vector<8x32xbf16>, vector<8x8xf32> -> vector<8x8xf32>
    %cst_28 = arith.constant dense<0xFF800000> : vector<8xf32>
    %88 = vector.multi_reduction <maximumf>, %87, %cst_28 [1] : vector<8x8xf32> to vector<8xf32>
    %89 = vector.shape_cast %88 : vector<8xf32> to vector<8x1xf32>
    %90 = vector.broadcast %89 : vector<8x1xf32> to vector<8x8xf32>
    %91 = arith.subf %87, %90 : vector<8x8xf32>
    %92 = math.exp %91 : vector<8x8xf32>
    %cst_29 = arith.constant dense<0.000000e+00> : vector<8xf32>
    %93 = vector.multi_reduction <add>, %92, %cst_29 [1] : vector<8x8xf32> to vector<8xf32>
    %94 = vector.shape_cast %93 : vector<8xf32> to vector<8x1xf32>
    %95 = tpu.reciprocal %94 {approx = true} : vector<8x1xf32> -> vector<8x1xf32>
    %96 = vector.broadcast %95 : vector<8x1xf32> to vector<8x8xf32>
    %97 = arith.mulf %92, %96 : vector<8x8xf32>
    %98 = arith.truncf %97 : vector<8x8xf32> to vector<8x8xbf16>
    %99 = vector.extract_strided_slice %25 {offsets = [0, 96], sizes = [8, 32], strides = [1, 1]} : vector<8x128xbf16> to vector<8x32xbf16>
    %cst_30 = arith.constant dense<0.000000e+00> : vector<8x32xf32>
    %100 = tpu.matmul %98, %99, %cst_30 {dimension_numbers = #tpu.dot_dimension_numbers<[1], [0], [0], [1], [0, 0, 1, 1], [], []>} : vector<8x8xbf16>, vector<8x32xbf16>, vector<8x32xf32> -> vector<8x32xf32>
    %101 = arith.truncf %100 : vector<8x32xf32> to vector<8x32xbf16>
    %102 = vector.extract_strided_slice %22 {offsets = [96, 0], sizes = [32, 128], strides = [1, 1]} : vector<128x128xbf16> to vector<32x128xbf16>
    %cst_31 = arith.constant dense<0.000000e+00> : vector<8x128xf32>
    %103 = tpu.matmul %101, %102, %cst_31 {dimension_numbers = #tpu.dot_dimension_numbers<[1], [0], [0], [1], [0, 0, 1, 1], [], []>} : vector<8x32xbf16>, vector<32x128xbf16>, vector<8x128xf32> -> vector<8x128xf32>
    %104 = arith.addf %84, %103 : vector<8x128xf32>
    %105 = vector.extract_strided_slice %4 {offsets = [6, 0], sizes = [1, 128], strides = [1, 1]} : vector<16x128xf32> to vector<1x128xf32>
    %106 = vector.broadcast %105 : vector<1x128xf32> to vector<8x128xf32>
    %107 = arith.addf %104, %106 : vector<8x128xf32>
    %108 = arith.addf %1, %107 : vector<8x128xf32>
    %109 = vector.extract_strided_slice %4 {offsets = [9, 0], sizes = [1, 128], strides = [1, 1]} : vector<16x128xf32> to vector<1x128xf32>
    %110 = vector.extract_strided_slice %4 {offsets = [10, 0], sizes = [1, 128], strides = [1, 1]} : vector<16x128xf32> to vector<1x128xf32>
    %cst_32 = arith.constant dense<0.000000e+00> : vector<8xf32>
    %111 = vector.multi_reduction <add>, %108, %cst_32 [1] : vector<8x128xf32> to vector<8xf32>
    %112 = vector.shape_cast %111 : vector<8xf32> to vector<8x1xf32>
    %cst_33 = arith.constant 1.280000e+02 : f32
    %113 = vector.broadcast %cst_33 : f32 to vector<8x1xf32>
    %114 = arith.divf %112, %113 : vector<8x1xf32>
    %115 = vector.broadcast %114 : vector<8x1xf32> to vector<8x128xf32>
    %116 = arith.subf %108, %115 : vector<8x128xf32>
    %117 = arith.mulf %116, %116 : vector<8x128xf32>
    %cst_34 = arith.constant dense<0.000000e+00> : vector<8xf32>
    %118 = vector.multi_reduction <add>, %117, %cst_34 [1] : vector<8x128xf32> to vector<8xf32>
    %119 = vector.shape_cast %118 : vector<8xf32> to vector<8x1xf32>
    %cst_35 = arith.constant 1.280000e+02 : f32
    %120 = vector.broadcast %cst_35 : f32 to vector<8x1xf32>
    %121 = arith.divf %119, %120 : vector<8x1xf32>
    %122 = vector.broadcast %114 : vector<8x1xf32> to vector<8x128xf32>
    %123 = arith.subf %108, %122 : vector<8x128xf32>
    %cst_36 = arith.constant 9.99999974E-6 : f32
    %124 = vector.broadcast %cst_36 : f32 to vector<8x1xf32>
    %125 = arith.addf %121, %124 : vector<8x1xf32>
    %126 = math.rsqrt %125 : vector<8x1xf32>
    %127 = vector.broadcast %126 : vector<8x1xf32> to vector<8x128xf32>
    %128 = arith.mulf %123, %127 : vector<8x128xf32>
    %129 = vector.broadcast %109 : vector<1x128xf32> to vector<8x128xf32>
    %130 = arith.mulf %128, %129 : vector<8x128xf32>
    %131 = vector.broadcast %110 : vector<1x128xf32> to vector<8x128xf32>
    %132 = arith.addf %130, %131 : vector<8x128xf32>
    %c0_37 = arith.constant 0 : index
    %c0_38 = arith.constant 0 : index
    %133 = vector.load %arg5[%c0_37, %c0_38] : memref<128x128xbf16, #tpu.memory_space<vmem>>, vector<128x128xbf16>
    %134 = arith.truncf %132 : vector<8x128xf32> to vector<8x128xbf16>
    %cst_39 = arith.constant dense<0.000000e+00> : vector<8x128xf32>
    %135 = tpu.matmul %134, %133, %cst_39 {dimension_numbers = #tpu.dot_dimension_numbers<[1], [0], [0], [1], [0, 0, 1, 1], [], []>} : vector<8x128xbf16>, vector<128x128xbf16>, vector<8x128xf32> -> vector<8x128xf32>
    %136 = vector.extract_strided_slice %4 {offsets = [3, 0], sizes = [1, 128], strides = [1, 1]} : vector<16x128xf32> to vector<1x128xf32>
    %137 = vector.broadcast %136 : vector<1x128xf32> to vector<8x128xf32>
    %138 = arith.addf %135, %137 : vector<8x128xf32>
    %cst_40 = arith.constant 0.176776692 : f32
    %139 = vector.broadcast %cst_40 : f32 to vector<8x128xf32>
    %140 = arith.mulf %138, %139 : vector<8x128xf32>
    %c0_41 = arith.constant 0 : index
    %c0_42 = arith.constant 0 : index
    %141 = vector.load %arg6[%c0_41, %c0_42] : memref<128x256xbf16, #tpu.memory_space<vmem>>, vector<128x256xbf16>
    %142 = arith.truncf %3 : vector<16x128xf32> to vector<16x128xbf16>
    %cst_43 = arith.constant dense<0.000000e+00> : vector<16x256xf32>
    %143 = tpu.matmul %142, %141, %cst_43 {dimension_numbers = #tpu.dot_dimension_numbers<[1], [0], [0], [1], [0, 0, 1, 1], [], []>} : vector<16x128xbf16>, vector<128x256xbf16>, vector<16x256xf32> -> vector<16x256xf32>
    %144 = vector.extract_strided_slice %143 {offsets = [0, 0], sizes = [16, 128], strides = [1, 1]} : vector<16x256xf32> to vector<16x128xf32>
    %145 = vector.extract_strided_slice %4 {offsets = [4, 0], sizes = [1, 128], strides = [1, 1]} : vector<16x128xf32> to vector<1x128xf32>
    %146 = vector.broadcast %145 : vector<1x128xf32> to vector<16x128xf32>
    %147 = arith.addf %144, %146 : vector<16x128xf32>
    %148 = vector.extract_strided_slice %143 {offsets = [0, 128], sizes = [16, 128], strides = [1, 1]} : vector<16x256xf32> to vector<16x128xf32>
    %149 = vector.extract_strided_slice %4 {offsets = [5, 0], sizes = [1, 128], strides = [1, 1]} : vector<16x128xf32> to vector<1x128xf32>
    %150 = vector.broadcast %149 : vector<1x128xf32> to vector<16x128xf32>
    %151 = arith.addf %148, %150 : vector<16x128xf32>
    %c0_44 = arith.constant 0 : index
    %c0_45 = arith.constant 0 : index
    %152 = vector.load %arg7[%c0_44, %c0_45] : memref<128x128xbf16, #tpu.memory_space<vmem>>, vector<128x128xbf16>
    %153 = arith.truncf %140 : vector<8x128xf32> to vector<8x128xbf16>
    %154 = arith.truncf %147 : vector<16x128xf32> to vector<16x128xbf16>
    %155 = arith.truncf %151 : vector<16x128xf32> to vector<16x128xbf16>
    %156 = vector.extract_strided_slice %153 {offsets = [0, 0], sizes = [8, 32], strides = [1, 1]} : vector<8x128xbf16> to vector<8x32xbf16>
    %157 = vector.extract_strided_slice %154 {offsets = [0, 0], sizes = [16, 32], strides = [1, 1]} : vector<16x128xbf16> to vector<16x32xbf16>
    %cst_46 = arith.constant dense<0.000000e+00> : vector<8x16xf32>
    %158 = tpu.matmul %156, %157, %cst_46 {dimension_numbers = #tpu.dot_dimension_numbers<[1], [1], [0], [0], [0, 0, 1, 0], [], []>} : vector<8x32xbf16>, vector<16x32xbf16>, vector<8x16xf32> -> vector<8x16xf32>
    %cst_47 = arith.constant dense<0xFF800000> : vector<8xf32>
    %159 = vector.multi_reduction <maximumf>, %158, %cst_47 [1] : vector<8x16xf32> to vector<8xf32>
    %160 = vector.shape_cast %159 : vector<8xf32> to vector<8x1xf32>
    %161 = vector.broadcast %160 : vector<8x1xf32> to vector<8x16xf32>
    %162 = arith.subf %158, %161 : vector<8x16xf32>
    %163 = math.exp %162 : vector<8x16xf32>
    %cst_48 = arith.constant dense<0.000000e+00> : vector<8xf32>
    %164 = vector.multi_reduction <add>, %163, %cst_48 [1] : vector<8x16xf32> to vector<8xf32>
    %165 = vector.shape_cast %164 : vector<8xf32> to vector<8x1xf32>
    %166 = tpu.reciprocal %165 {approx = true} : vector<8x1xf32> -> vector<8x1xf32>
    %167 = vector.broadcast %166 : vector<8x1xf32> to vector<8x16xf32>
    %168 = arith.mulf %163, %167 : vector<8x16xf32>
    %169 = arith.truncf %168 : vector<8x16xf32> to vector<8x16xbf16>
    %170 = vector.extract_strided_slice %155 {offsets = [0, 0], sizes = [16, 32], strides = [1, 1]} : vector<16x128xbf16> to vector<16x32xbf16>
    %cst_49 = arith.constant dense<0.000000e+00> : vector<8x32xf32>
    %171 = tpu.matmul %169, %170, %cst_49 {dimension_numbers = #tpu.dot_dimension_numbers<[1], [0], [0], [1], [0, 0, 1, 1], [], []>} : vector<8x16xbf16>, vector<16x32xbf16>, vector<8x32xf32> -> vector<8x32xf32>
    %172 = arith.truncf %171 : vector<8x32xf32> to vector<8x32xbf16>
    %173 = vector.extract_strided_slice %152 {offsets = [0, 0], sizes = [32, 128], strides = [1, 1]} : vector<128x128xbf16> to vector<32x128xbf16>
    %cst_50 = arith.constant dense<0.000000e+00> : vector<8x128xf32>
    %174 = tpu.matmul %172, %173, %cst_50 {dimension_numbers = #tpu.dot_dimension_numbers<[1], [0], [0], [1], [0, 0, 1, 1], [], []>} : vector<8x32xbf16>, vector<32x128xbf16>, vector<8x128xf32> -> vector<8x128xf32>
    %175 = vector.extract_strided_slice %153 {offsets = [0, 32], sizes = [8, 32], strides = [1, 1]} : vector<8x128xbf16> to vector<8x32xbf16>
    %176 = vector.extract_strided_slice %154 {offsets = [0, 32], sizes = [16, 32], strides = [1, 1]} : vector<16x128xbf16> to vector<16x32xbf16>
    %cst_51 = arith.constant dense<0.000000e+00> : vector<8x16xf32>
    %177 = tpu.matmul %175, %176, %cst_51 {dimension_numbers = #tpu.dot_dimension_numbers<[1], [1], [0], [0], [0, 0, 1, 0], [], []>} : vector<8x32xbf16>, vector<16x32xbf16>, vector<8x16xf32> -> vector<8x16xf32>
    %cst_52 = arith.constant dense<0xFF800000> : vector<8xf32>
    %178 = vector.multi_reduction <maximumf>, %177, %cst_52 [1] : vector<8x16xf32> to vector<8xf32>
    %179 = vector.shape_cast %178 : vector<8xf32> to vector<8x1xf32>
    %180 = vector.broadcast %179 : vector<8x1xf32> to vector<8x16xf32>
    %181 = arith.subf %177, %180 : vector<8x16xf32>
    %182 = math.exp %181 : vector<8x16xf32>
    %cst_53 = arith.constant dense<0.000000e+00> : vector<8xf32>
    %183 = vector.multi_reduction <add>, %182, %cst_53 [1] : vector<8x16xf32> to vector<8xf32>
    %184 = vector.shape_cast %183 : vector<8xf32> to vector<8x1xf32>
    %185 = tpu.reciprocal %184 {approx = true} : vector<8x1xf32> -> vector<8x1xf32>
    %186 = vector.broadcast %185 : vector<8x1xf32> to vector<8x16xf32>
    %187 = arith.mulf %182, %186 : vector<8x16xf32>
    %188 = arith.truncf %187 : vector<8x16xf32> to vector<8x16xbf16>
    %189 = vector.extract_strided_slice %155 {offsets = [0, 32], sizes = [16, 32], strides = [1, 1]} : vector<16x128xbf16> to vector<16x32xbf16>
    %cst_54 = arith.constant dense<0.000000e+00> : vector<8x32xf32>
    %190 = tpu.matmul %188, %189, %cst_54 {dimension_numbers = #tpu.dot_dimension_numbers<[1], [0], [0], [1], [0, 0, 1, 1], [], []>} : vector<8x16xbf16>, vector<16x32xbf16>, vector<8x32xf32> -> vector<8x32xf32>
    %191 = arith.truncf %190 : vector<8x32xf32> to vector<8x32xbf16>
    %192 = vector.extract_strided_slice %152 {offsets = [32, 0], sizes = [32, 128], strides = [1, 1]} : vector<128x128xbf16> to vector<32x128xbf16>
    %cst_55 = arith.constant dense<0.000000e+00> : vector<8x128xf32>
    %193 = tpu.matmul %191, %192, %cst_55 {dimension_numbers = #tpu.dot_dimension_numbers<[1], [0], [0], [1], [0, 0, 1, 1], [], []>} : vector<8x32xbf16>, vector<32x128xbf16>, vector<8x128xf32> -> vector<8x128xf32>
    %194 = arith.addf %174, %193 : vector<8x128xf32>
    %195 = vector.extract_strided_slice %153 {offsets = [0, 64], sizes = [8, 32], strides = [1, 1]} : vector<8x128xbf16> to vector<8x32xbf16>
    %196 = vector.extract_strided_slice %154 {offsets = [0, 64], sizes = [16, 32], strides = [1, 1]} : vector<16x128xbf16> to vector<16x32xbf16>
    %cst_56 = arith.constant dense<0.000000e+00> : vector<8x16xf32>
    %197 = tpu.matmul %195, %196, %cst_56 {dimension_numbers = #tpu.dot_dimension_numbers<[1], [1], [0], [0], [0, 0, 1, 0], [], []>} : vector<8x32xbf16>, vector<16x32xbf16>, vector<8x16xf32> -> vector<8x16xf32>
    %cst_57 = arith.constant dense<0xFF800000> : vector<8xf32>
    %198 = vector.multi_reduction <maximumf>, %197, %cst_57 [1] : vector<8x16xf32> to vector<8xf32>
    %199 = vector.shape_cast %198 : vector<8xf32> to vector<8x1xf32>
    %200 = vector.broadcast %199 : vector<8x1xf32> to vector<8x16xf32>
    %201 = arith.subf %197, %200 : vector<8x16xf32>
    %202 = math.exp %201 : vector<8x16xf32>
    %cst_58 = arith.constant dense<0.000000e+00> : vector<8xf32>
    %203 = vector.multi_reduction <add>, %202, %cst_58 [1] : vector<8x16xf32> to vector<8xf32>
    %204 = vector.shape_cast %203 : vector<8xf32> to vector<8x1xf32>
    %205 = tpu.reciprocal %204 {approx = true} : vector<8x1xf32> -> vector<8x1xf32>
    %206 = vector.broadcast %205 : vector<8x1xf32> to vector<8x16xf32>
    %207 = arith.mulf %202, %206 : vector<8x16xf32>
    %208 = arith.truncf %207 : vector<8x16xf32> to vector<8x16xbf16>
    %209 = vector.extract_strided_slice %155 {offsets = [0, 64], sizes = [16, 32], strides = [1, 1]} : vector<16x128xbf16> to vector<16x32xbf16>
    %cst_59 = arith.constant dense<0.000000e+00> : vector<8x32xf32>
    %210 = tpu.matmul %208, %209, %cst_59 {dimension_numbers = #tpu.dot_dimension_numbers<[1], [0], [0], [1], [0, 0, 1, 1], [], []>} : vector<8x16xbf16>, vector<16x32xbf16>, vector<8x32xf32> -> vector<8x32xf32>
    %211 = arith.truncf %210 : vector<8x32xf32> to vector<8x32xbf16>
    %212 = vector.extract_strided_slice %152 {offsets = [64, 0], sizes = [32, 128], strides = [1, 1]} : vector<128x128xbf16> to vector<32x128xbf16>
    %cst_60 = arith.constant dense<0.000000e+00> : vector<8x128xf32>
    %213 = tpu.matmul %211, %212, %cst_60 {dimension_numbers = #tpu.dot_dimension_numbers<[1], [0], [0], [1], [0, 0, 1, 1], [], []>} : vector<8x32xbf16>, vector<32x128xbf16>, vector<8x128xf32> -> vector<8x128xf32>
    %214 = arith.addf %194, %213 : vector<8x128xf32>
    %215 = vector.extract_strided_slice %153 {offsets = [0, 96], sizes = [8, 32], strides = [1, 1]} : vector<8x128xbf16> to vector<8x32xbf16>
    %216 = vector.extract_strided_slice %154 {offsets = [0, 96], sizes = [16, 32], strides = [1, 1]} : vector<16x128xbf16> to vector<16x32xbf16>
    %cst_61 = arith.constant dense<0.000000e+00> : vector<8x16xf32>
    %217 = tpu.matmul %215, %216, %cst_61 {dimension_numbers = #tpu.dot_dimension_numbers<[1], [1], [0], [0], [0, 0, 1, 0], [], []>} : vector<8x32xbf16>, vector<16x32xbf16>, vector<8x16xf32> -> vector<8x16xf32>
    %cst_62 = arith.constant dense<0xFF800000> : vector<8xf32>
    %218 = vector.multi_reduction <maximumf>, %217, %cst_62 [1] : vector<8x16xf32> to vector<8xf32>
    %219 = vector.shape_cast %218 : vector<8xf32> to vector<8x1xf32>
    %220 = vector.broadcast %219 : vector<8x1xf32> to vector<8x16xf32>
    %221 = arith.subf %217, %220 : vector<8x16xf32>
    %222 = math.exp %221 : vector<8x16xf32>
    %cst_63 = arith.constant dense<0.000000e+00> : vector<8xf32>
    %223 = vector.multi_reduction <add>, %222, %cst_63 [1] : vector<8x16xf32> to vector<8xf32>
    %224 = vector.shape_cast %223 : vector<8xf32> to vector<8x1xf32>
    %225 = tpu.reciprocal %224 {approx = true} : vector<8x1xf32> -> vector<8x1xf32>
    %226 = vector.broadcast %225 : vector<8x1xf32> to vector<8x16xf32>
    %227 = arith.mulf %222, %226 : vector<8x16xf32>
    %228 = arith.truncf %227 : vector<8x16xf32> to vector<8x16xbf16>
    %229 = vector.extract_strided_slice %155 {offsets = [0, 96], sizes = [16, 32], strides = [1, 1]} : vector<16x128xbf16> to vector<16x32xbf16>
    %cst_64 = arith.constant dense<0.000000e+00> : vector<8x32xf32>
    %230 = tpu.matmul %228, %229, %cst_64 {dimension_numbers = #tpu.dot_dimension_numbers<[1], [0], [0], [1], [0, 0, 1, 1], [], []>} : vector<8x16xbf16>, vector<16x32xbf16>, vector<8x32xf32> -> vector<8x32xf32>
    %231 = arith.truncf %230 : vector<8x32xf32> to vector<8x32xbf16>
    %232 = vector.extract_strided_slice %152 {offsets = [96, 0], sizes = [32, 128], strides = [1, 1]} : vector<128x128xbf16> to vector<32x128xbf16>
    %cst_65 = arith.constant dense<0.000000e+00> : vector<8x128xf32>
    %233 = tpu.matmul %231, %232, %cst_65 {dimension_numbers = #tpu.dot_dimension_numbers<[1], [0], [0], [1], [0, 0, 1, 1], [], []>} : vector<8x32xbf16>, vector<32x128xbf16>, vector<8x128xf32> -> vector<8x128xf32>
    %234 = arith.addf %214, %233 : vector<8x128xf32>
    %235 = vector.extract_strided_slice %4 {offsets = [7, 0], sizes = [1, 128], strides = [1, 1]} : vector<16x128xf32> to vector<1x128xf32>
    %236 = vector.broadcast %235 : vector<1x128xf32> to vector<8x128xf32>
    %237 = arith.addf %234, %236 : vector<8x128xf32>
    %238 = arith.addf %132, %237 : vector<8x128xf32>
    %239 = vector.extract_strided_slice %4 {offsets = [11, 0], sizes = [1, 128], strides = [1, 1]} : vector<16x128xf32> to vector<1x128xf32>
    %240 = vector.extract_strided_slice %4 {offsets = [12, 0], sizes = [1, 128], strides = [1, 1]} : vector<16x128xf32> to vector<1x128xf32>
    %cst_66 = arith.constant dense<0.000000e+00> : vector<8xf32>
    %241 = vector.multi_reduction <add>, %238, %cst_66 [1] : vector<8x128xf32> to vector<8xf32>
    %242 = vector.shape_cast %241 : vector<8xf32> to vector<8x1xf32>
    %cst_67 = arith.constant 1.280000e+02 : f32
    %243 = vector.broadcast %cst_67 : f32 to vector<8x1xf32>
    %244 = arith.divf %242, %243 : vector<8x1xf32>
    %245 = vector.broadcast %244 : vector<8x1xf32> to vector<8x128xf32>
    %246 = arith.subf %238, %245 : vector<8x128xf32>
    %247 = arith.mulf %246, %246 : vector<8x128xf32>
    %cst_68 = arith.constant dense<0.000000e+00> : vector<8xf32>
    %248 = vector.multi_reduction <add>, %247, %cst_68 [1] : vector<8x128xf32> to vector<8xf32>
    %249 = vector.shape_cast %248 : vector<8xf32> to vector<8x1xf32>
    %cst_69 = arith.constant 1.280000e+02 : f32
    %250 = vector.broadcast %cst_69 : f32 to vector<8x1xf32>
    %251 = arith.divf %249, %250 : vector<8x1xf32>
    %252 = vector.broadcast %244 : vector<8x1xf32> to vector<8x128xf32>
    %253 = arith.subf %238, %252 : vector<8x128xf32>
    %cst_70 = arith.constant 9.99999974E-6 : f32
    %254 = vector.broadcast %cst_70 : f32 to vector<8x1xf32>
    %255 = arith.addf %251, %254 : vector<8x1xf32>
    %256 = math.rsqrt %255 : vector<8x1xf32>
    %257 = vector.broadcast %256 : vector<8x1xf32> to vector<8x128xf32>
    %258 = arith.mulf %253, %257 : vector<8x128xf32>
    %259 = vector.broadcast %239 : vector<1x128xf32> to vector<8x128xf32>
    %260 = arith.mulf %258, %259 : vector<8x128xf32>
    %261 = vector.broadcast %240 : vector<1x128xf32> to vector<8x128xf32>
    %262 = arith.addf %260, %261 : vector<8x128xf32>
    %c0_71 = arith.constant 0 : index
    %c0_72 = arith.constant 0 : index
    %263 = vector.load %arg8[%c0_71, %c0_72] : memref<128x128xbf16, #tpu.memory_space<vmem>>, vector<128x128xbf16>
    %264 = arith.truncf %262 : vector<8x128xf32> to vector<8x128xbf16>
    %cst_73 = arith.constant dense<0.000000e+00> : vector<8x128xf32>
    %265 = tpu.matmul %264, %263, %cst_73 {dimension_numbers = #tpu.dot_dimension_numbers<[1], [0], [0], [1], [0, 0, 1, 1], [], []>} : vector<8x128xbf16>, vector<128x128xbf16>, vector<8x128xf32> -> vector<8x128xf32>
    %c0_74 = arith.constant 0 : index
    %c0_75 = arith.constant 0 : index
    %266 = vector.load %arg11[%c0_74, %c0_75] : memref<1x128xf32, #tpu.memory_space<vmem>>, vector<1x128xf32>
    %267 = vector.broadcast %266 : vector<1x128xf32> to vector<8x128xf32>
    %268 = arith.addf %265, %267 : vector<8x128xf32>
    %cst_76 = arith.constant 0.000000e+00 : f32
    %269 = vector.broadcast %cst_76 : f32 to vector<8x128xf32>
    %270 = arith.maximumf %268, %269 : vector<8x128xf32>
    %c0_77 = arith.constant 0 : index
    %c0_78 = arith.constant 0 : index
    %271 = vector.load %arg9[%c0_77, %c0_78] : memref<128x128xbf16, #tpu.memory_space<vmem>>, vector<128x128xbf16>
    %272 = arith.truncf %270 : vector<8x128xf32> to vector<8x128xbf16>
    %cst_79 = arith.constant dense<0.000000e+00> : vector<8x128xf32>
    %273 = tpu.matmul %272, %271, %cst_79 {dimension_numbers = #tpu.dot_dimension_numbers<[1], [0], [0], [1], [0, 0, 1, 1], [], []>} : vector<8x128xbf16>, vector<128x128xbf16>, vector<8x128xf32> -> vector<8x128xf32>
    %274 = vector.extract_strided_slice %4 {offsets = [8, 0], sizes = [1, 128], strides = [1, 1]} : vector<16x128xf32> to vector<1x128xf32>
    %275 = vector.broadcast %274 : vector<1x128xf32> to vector<8x128xf32>
    %276 = arith.addf %273, %275 : vector<8x128xf32>
    %277 = arith.addf %262, %276 : vector<8x128xf32>
    %278 = vector.extract_strided_slice %4 {offsets = [13, 0], sizes = [1, 128], strides = [1, 1]} : vector<16x128xf32> to vector<1x128xf32>
    %279 = vector.extract_strided_slice %4 {offsets = [14, 0], sizes = [1, 128], strides = [1, 1]} : vector<16x128xf32> to vector<1x128xf32>
    %cst_80 = arith.constant dense<0.000000e+00> : vector<8xf32>
    %280 = vector.multi_reduction <add>, %277, %cst_80 [1] : vector<8x128xf32> to vector<8xf32>
    %281 = vector.shape_cast %280 : vector<8xf32> to vector<8x1xf32>
    %cst_81 = arith.constant 1.280000e+02 : f32
    %282 = vector.broadcast %cst_81 : f32 to vector<8x1xf32>
    %283 = arith.divf %281, %282 : vector<8x1xf32>
    %284 = vector.broadcast %283 : vector<8x1xf32> to vector<8x128xf32>
    %285 = arith.subf %277, %284 : vector<8x128xf32>
    %286 = arith.mulf %285, %285 : vector<8x128xf32>
    %cst_82 = arith.constant dense<0.000000e+00> : vector<8xf32>
    %287 = vector.multi_reduction <add>, %286, %cst_82 [1] : vector<8x128xf32> to vector<8xf32>
    %288 = vector.shape_cast %287 : vector<8xf32> to vector<8x1xf32>
    %cst_83 = arith.constant 1.280000e+02 : f32
    %289 = vector.broadcast %cst_83 : f32 to vector<8x1xf32>
    %290 = arith.divf %288, %289 : vector<8x1xf32>
    %291 = vector.broadcast %283 : vector<8x1xf32> to vector<8x128xf32>
    %292 = arith.subf %277, %291 : vector<8x128xf32>
    %cst_84 = arith.constant 9.99999974E-6 : f32
    %293 = vector.broadcast %cst_84 : f32 to vector<8x1xf32>
    %294 = arith.addf %290, %293 : vector<8x1xf32>
    %295 = math.rsqrt %294 : vector<8x1xf32>
    %296 = vector.broadcast %295 : vector<8x1xf32> to vector<8x128xf32>
    %297 = arith.mulf %292, %296 : vector<8x128xf32>
    %298 = vector.broadcast %278 : vector<1x128xf32> to vector<8x128xf32>
    %299 = arith.mulf %297, %298 : vector<8x128xf32>
    %300 = vector.broadcast %279 : vector<1x128xf32> to vector<8x128xf32>
    %301 = arith.addf %299, %300 : vector<8x128xf32>
    %c0_85 = arith.constant 0 : index
    %c0_86 = arith.constant 0 : index
    %c0_87 = arith.constant 0 : index
    %302 = vector.load %arg12[%c0_85, %c0_86, %c0_87] : memref<1x8x128xf32, #tpu.memory_space<vmem>>, vector<1x8x128xf32>
    %303 = vector.shape_cast %302 : vector<1x8x128xf32> to vector<8x128xf32>
    %304 = vector.shape_cast %301 : vector<8x128xf32> to vector<1x8x128xf32>
    tpu.vector_store %arg12[%c0_85, %c0_86, %c0_87], %304 {strides = array<i32>} : memref<1x8x128xf32, #tpu.memory_space<vmem>>, vector<1x8x128xf32>,
    return
  }
  func.func @transform_0(%arg0: i32) -> (i32, i32, i32) {
    %c0_i32 = arith.constant 0 : i32
    %c0_i32_0 = arith.constant 0 : i32
    %c0_i32_1 = arith.constant 0 : i32
    return %arg0, %c0_i32, %c0_i32_0 : i32, i32, i32
  }
  func.func @transform_1(%arg0: i32) -> (i32, i32, i32) {
    %c0_i32 = arith.constant 0 : i32
    %c0_i32_0 = arith.constant 0 : i32
    %c0_i32_1 = arith.constant 0 : i32
    return %arg0, %c0_i32, %c0_i32_0 : i32, i32, i32
  }
  func.func @transform_2(%arg0: i32) -> (i32, i32) {
    %c0_i32 = arith.constant 0 : i32
    %c0_i32_0 = arith.constant 0 : i32
    %c0_i32_1 = arith.constant 0 : i32
    return %c0_i32, %c0_i32_0 : i32, i32
  }
  func.func @transform_3(%arg0: i32) -> (i32, i32) {
    %c0_i32 = arith.constant 0 : i32
    %c0_i32_0 = arith.constant 0 : i32
    %c0_i32_1 = arith.constant 0 : i32
    return %c0_i32, %c0_i32_0 : i32, i32
  }
  func.func @transform_4(%arg0: i32) -> (i32, i32) {
    %c0_i32 = arith.constant 0 : i32
    %c0_i32_0 = arith.constant 0 : i32
    %c0_i32_1 = arith.constant 0 : i32
    return %c0_i32, %c0_i32_0 : i32, i32
  }
  func.func @transform_5(%arg0: i32) -> (i32, i32) {
    %c0_i32 = arith.constant 0 : i32
    %c0_i32_0 = arith.constant 0 : i32
    %c0_i32_1 = arith.constant 0 : i32
    return %c0_i32, %c0_i32_0 : i32, i32
  }
  func.func @transform_6(%arg0: i32) -> (i32, i32) {
    %c0_i32 = arith.constant 0 : i32
    %c0_i32_0 = arith.constant 0 : i32
    %c0_i32_1 = arith.constant 0 : i32
    return %c0_i32, %c0_i32_0 : i32, i32
  }
  func.func @transform_7(%arg0: i32) -> (i32, i32) {
    %c0_i32 = arith.constant 0 : i32
    %c0_i32_0 = arith.constant 0 : i32
    %c0_i32_1 = arith.constant 0 : i32
    return %c0_i32, %c0_i32_0 : i32, i32
  }
  func.func @transform_8(%arg0: i32) -> (i32, i32) {
    %c0_i32 = arith.constant 0 : i32
    %c0_i32_0 = arith.constant 0 : i32
    %c0_i32_1 = arith.constant 0 : i32
    return %c0_i32, %c0_i32_0 : i32, i32
  }
  func.func @transform_9(%arg0: i32) -> (i32, i32) {
    %c0_i32 = arith.constant 0 : i32
    %c0_i32_0 = arith.constant 0 : i32
    %c0_i32_1 = arith.constant 0 : i32
    return %c0_i32, %c0_i32_0 : i32, i32
  }
  func.func @transform_10(%arg0: i32) -> (i32, i32) {
    %c0_i32 = arith.constant 0 : i32
    %c0_i32_0 = arith.constant 0 : i32
    %c0_i32_1 = arith.constant 0 : i32
    return %c0_i32, %c0_i32_0 : i32, i32
  }
  func.func @transform_11(%arg0: i32) -> (i32, i32, i32) {
    %c0_i32 = arith.constant 0 : i32
    %c0_i32_0 = arith.constant 0 : i32
    %c0_i32_1 = arith.constant 0 : i32
    return %arg0, %c0_i32, %c0_i32_0 : i32, i32, i32
  }
}

</mosaic_0001>

<bundles_post_ra>
// kernel: decoder.5
= control target key start
LH: loop header
LB: loop body
LE: loop exit
PB: predicated region body
PF: predicated region fallthrough
CT: control target
= control target key end

     0   :  { %9 = vsyncpa [#allocation3], 0  ;;  %s725_s0 = inlined_call_operand.vmem [shape: f32[2,8,128], index: 0, kind: input, shape index: {}]   ;;  %s726_s1 = inlined_call_operand.vmem [shape: f32[2,128], index: 1, kind: input, shape index: {}]   ;;  %s727_s2 = inlined_call_operand.vmem [shape: bf16[128,128], index: 2, kind: input, shape index: {}]   ;;  %s728_s3 = inlined_call_operand.vmem [shape: f32[1,128], index: 3, kind: input, shape index: {}]   ;;  %s729_s4 = inlined_call_operand.hbm [shape: f32[2,8,128], index: 4, kind: output, shape index: {}]  }
   0x1   :  { %11 = vsyncpa [#allocation3 + $0x1], 0  ;;  %s595_s15 = smov 0   ;;  %s597_s16 = smov 0  }
   0x2   :  { %s599_s17 = smov 0   ;;  %s601_s18 = smov 0  }
   0x3 LB: > { %s616_s19 = sadd.s32 4294967295, %s565_s18   ;;  %s404_s20 = sadd.s32 4294967294, %s565_s18   ;;  %s565_s18 = sphi %s601_s18, %s735_s18   ;;  %s561_s17 = sphi %s599_s17, %s734_s17   ;;  %s557_s16 = sphi %s597_s16, %s733_s16   ;;  %s553_s15 = sphi %s595_s15, %s732_s15  }
   0x4   : > { %s620_s21 = sadd.s32 1, %s565_s18   ;;  %s113_s22 = sadd.s32 1, %s561_s17 }
   0x5   : > { %s110_s23 = ssub.s32 %s565_s18, %s620_s21  ;;  %p123_p0 = scmp.ne.s32.totalorder %s561_s17, %s557_s16 }
   0x6   : > { %p111_p1 = scmp.eq.s32.totalorder %s110_s23, 0  ;;  %p124_p2 = scmp.eq.s32.totalorder %s616_s19, 1 }
   0x7   : > { %p129_p3 = scmp.ne.s32.totalorder %s557_s16, %s553_s15  ;;  %p130_p4 = scmp.eq.s32.totalorder %s404_s20, 1 }
   0x8   : > { %s631_s24 = scalar_select %p111_p1, %s561_s17, %s113_s22  }
   0x9   : > { %p633_p5 = por %p124_p2, %p123_p0  ;;  %p637_p6 = por %p130_p4, %p129_p3 }
   0xa   : > { %p407_p7 = scmp.ge.s32.totalorder %s565_s18, 1  ;;  %p164_p8 = scmp.lt.s32.totalorder %s565_s18, 3 }
   0xc   : > { %p165_p9 = pnand %p407_p7, %p164_p8 }
   0xd   : > { %p189_p10 = scmp.lt.s32.totalorder (!%p165_p9), %s616_s19, 1  ;;  %v493_v1 = vld [vmem:[%s727_s2] sm:$0xff] (!%p165_p9)   ;;  %v567_v2 = vmov (!%p165_p9), 0.0   ;;  %v494_v3 = vld [vmem:[%s727_s2 + $0x8] sm:$0xff] (!%p165_p9)   ;;  %v495_v8 = vld [vmem:[%s727_s2 + $0x10] sm:$0xff] (!%p165_p9)   ;;  %vm568_vm0 = vmmov (!%p165_p9), 0   ;;  %v208_v16 = vlaneseq (!%p165_p9) }
   0xe   : > { %168 = sbr.rel (%p165_p9) target bundleno = 567 (0x237), region = 36  ;;  %432 = vmatprep.subr.bf16.mxu0 (!%p165_p9), %v567_v2  ;;  %v496_v9 = vld [vmem:[%s727_s2 + $0x18] sm:$0xff] (!%p165_p9)   ;;  %v497_v10 = vld [vmem:[%s727_s2 + $0x20] sm:$0xff] (!%p165_p9)   ;;  %448 = vmatprep.mubr.msk.bf16.mxu0 (!%p165_p9), %vm568_vm0, %v567_v2  ;;  %v498_v11 = vld [vmem:[%s727_s2 + $0x28] sm:$0xff] (!%p165_p9)   ;;  %s186_s7 = sand.u32 (!%p165_p9), 1, %s557_s16  }
   0xf   : > { %433 = vmatpush3.bf16.msra.mxu0 (!%p165_p9), %v493_v1  ;;  %v499_v12 = vld [vmem:[%s727_s2 + $0x30] sm:$0xff] (!%p165_p9)   ;;  %v500_v13 = vld [vmem:[%s727_s2 + $0x38] sm:$0xff] (!%p165_p9)   ;;  %v209_v18 = vshrl.u32 (!%p165_p9), %v208_v16, 7  ;;  %v195_v20 = vld [vmem:[%s726_s1] sm:$0x3] (!%p165_p9)  ;;  %s408_s8 = sshll.u32 (!%p165_p9), %s186_s7, 3 }
  0x10   : > { %434 = vmatprep.subr.bf16.mxu0 (!%p165_p9), %v567_v2  ;;  %v410_v29 = vld [vmem:[%s728_s3] ss:$0 sm:$0xff] (!%p165_p9)  ;;  %s420_s11 = sshll.u32 (!%p165_p9), %s616_s19, 7  ;;  %s188_s12 = scalar_lea.vmem (!%p165_p9), [#allocation2], %s408_s8 }
  0x11   : > { %v210_v19 = vsub.s32 (!%p165_p9), 0, %v209_v18  ;;  %v215_v21 = vsub.s32 (!%p165_p9), 1, %v209_v18  ;;  %s345_s13 = sshll.u32 (!%p165_p9), %s188_s12, 4  ;;  %s683_s22 = scalar_lea.hbm (!%p165_p9), %s729_s4, %s420_s11  ;;  %s685_s13 = int_to_ptr.vmem [resolvable:$true] %s345_s13 }
  0x12   : > { %s332_s23 = scalar_lea.sflag (!%p165_p9), [#allocation3], %s186_s7 }
  0x13   : > { %435 = vmatpush3.bf16.msra.mxu0 (!%p165_p9), %v494_v3  ;;  %v211_v22 = vrot.slane (!%p165_p9), %v195_v20, %v210_v19  ;;  %v216_v25 = vrot.slane (!%p165_p9), %v195_v20, %v215_v21 }
  0x14   : > { %436 = vmatprep.subr.bf16.mxu0 (!%p165_p9), %v567_v2 }
  0x15   : > { %s190_s27 = scalar_select %p189_p10, %s616_s19, 1 }
  0x16   : > { %s503_s19 = scalar_lea.vmem %s685_s13, 128 }
  0x17   : > { %s409_s28 = sshll.u32 %s190_s27, 3  ;;  %437 = vmatpush3.bf16.msra.mxu0 %v495_v8  ;;  %p504_p11 = scmp.ne.s32.totalorder %s685_s13, %s503_s19 }
  0x18   : > { %s192_s5 = scalar_lea.vmem %s725_s0, %s409_s28  ;;  %438 = vmatprep.subr.bf16.mxu0 %v567_v2  ;;  %s569_s27 = smov [#allocation2]  }
  0x19   : > { %v194_v0 = vld [vmem:[%s192_s5] sm:$0xff]  ;;  %p505_p12 = pnand %p504_p11, %p633_p5  ;;  %s507_s28 = sshll.u32 %s569_s27, 4  ;;  %s508_s28 = int_to_ptr.vmem [resolvable:$false] %s507_s28 }
  0x1a   : > { %196 = vadd.xlane.f32.xlu0 %v194_v0  ;;  %s509_s29 = scalar_lea.vmem %s508_s28, 256  ;;  %p510_p0 = scmp.lt.s32.totalorder %s685_s13, %s508_s28 }
  0x1b   : > { %439 = vmatpush3.bf16.msra.mxu0 %v496_v9  ;;  %p506_p13 = pneg %p505_p12  ;;  %p511_p1 = scmp.lt.s32.totalorder %s509_s29, %s503_s19 }
  0x1c   : > { %440 = vmatprep.subr.bf16.mxu0 %v567_v2 }
  0x1d   : > { %p512_p2 = por %p511_p1, %p510_p0 }
  0x1f   : > { %441 = vmatpush3.bf16.msra.mxu0 %v497_v10  ;;  %p513_p3 = pnand %p512_p2, %p506_p13 }
  0x20   : > { %442 = vmatprep.subr.bf16.mxu0 %v567_v2 }
  0x23   : > { %443 = vmatpush3.bf16.msra.mxu0 %v498_v11 }
  0x24   : > { %444 = vmatprep.subr.bf16.mxu0 %v567_v2 }
  0x27   : > { %445 = vmatpush3.bf16.msra.mxu0 %v499_v12 }
  0x28   : > { %446 = vmatprep.subr.bf16.mxu0 %v567_v2 }
  0x2b   : > { %447 = vmatpush3.bf16.msra.mxu0 %v500_v13 }
  0xa7   : > { %v197_v4 = vpop.xlane.xlu0 %196 }
  0xa8   : > { %v199_v5 = vmul.f32 0.0078125, %v197_v4 }
  0xaa   : > { %v200_v6 = vsub.f32 %v194_v0, %v199_v5 }
  0xac   : > { %v201_v7 = vmul.f32 %v200_v6, %v200_v6 }
  0xae   : > { %202 = vadd.xlane.f32.xlu0 %v201_v7 }
 0x13b   : > { %v203_v14 = vpop.xlane.xlu0 %202 }
 0x13c   : > { %v204_v15 = vmul.f32 0.0078125, %v203_v14 }
 0x13e   : > { %v205_v17 = vadd.f32 1e-05, %v204_v15 }
 0x140   : > { %501 = vrsqrt.f32 %v205_v17 }
 0x14a   : > { %v502_v23 = vpop.eup %501 }
 0x14b   : > { %v207_v24 = vmul.f32 %v502_v23, %v200_v6 }
 0x14d   : > { %v212_v26 = vmul.f32 %v211_v22, %v207_v24 }
 0x14f   : > { %v217_v27 = vadd.f32 %v216_v25, %v212_v26 }
 0x151   : > { %v218_v28 = vpack.c.bf16 %v217_v27, %v217_v27 }
 0x153   : > { %449 = vmatmul.mubr.bf16.vlgmr.msra.gmra.mrb[0].mxu0 %v218_v28 }
 0x226   : > { %v324_v30 = vpop.f32.mrb[0].mxu0 }
 0x227   : > { %v325_v31 = vadd.f32 %v410_v29, %v324_v30  ;;  %v450_v32 = vpop.f32.mrb[1].mxu0 }
 0x228   : > { %v327_v33 = vpop.f32.mrb[2].mxu0 }
 0x229   : > { %330 = vst [vmem:[%s188_s12] sm:$0xff] %v325_v31  ;;  %v451_v34 = vpop.f32.mrb[3].mxu0 }
 0x22a   : > { %516 = shalt.err (!%p513_p3)
}
 0x22b   : > { %s517_s30 = scalar_lea.hbm %s683_s22, 128  ;;  %s521_s7 = scalar_lea.hbm %s729_s4, 256 }
 0x22c   : > { %p518_p4 = scmp.ne.s32.totalorder %s683_s22, %s517_s30  ;;  %p522_p9 = scmp.lt.u32.totalorder %s683_s22, %s729_s4 }
 0x22d   : > { %p523_p10 = scmp.lt.u32.totalorder %s521_s7, %s517_s30  ;;  %p525_p12 = scmp.lt.u32.totalorder %s517_s30, %s683_s22 }
 0x22e   : > { %p519_p7 = pnand %p518_p4, %p633_p5 }
 0x22f   : > { %p524_p11 = por %p523_p10, %p522_p9 }
 0x230   : > { %p520_p8 = pneg %p519_p7 }
 0x231   : > { %p526_p13 = por %p525_p12, %p524_p11 }
 0x233   : > { %p527_p0 = pnand %p526_p13, %p520_p8 }
 0x235   : > { %530 = shalt.err (!%p527_p0)
}
 0x236   : > { %452 = dma.vmem_to_hbm [thread:$0]  (%p633_p5), %s685_s13, 128, %s683_s22, %s332_s23  }
 0x237 PF: > { %p458_p1 = scmp.ge.s32.totalorder %s565_s18, 2  ;;  %s357_s10 = sand.u32 1, %s553_s15  }
 0x238   : > { %s358_s11 = scalar_lea.sflag [#allocation3], %s357_s10 }
 0x239   : > { %p455_p2 = pnand %p458_p1, %p637_p6 }
 0x23b   : > { %548 = dma.done.wait (!%p455_p2), %s358_s11, 128  }
 0x23c   : > { %550 = vsyncadd (!%p455_p2), %s358_s11, 4294967168  ;;  %p14_p3 = scmp.ge.s32.totalorder %s620_s21, 4   ;;  %s732_s15 = smov %s557_s16 }
 0x23d   : > { %s733_s16 = smov %s561_s17  ;;  %s734_s17 = smov %s631_s24 }
 0x23e   : > { %s735_s18 = smov %s620_s21  ;;  %16 = sbr.rel (!%p14_p3) target bundleno = 3 (0x3), region = 71 }
 0x245   :  { %363 = vsyncpa [#allocation3], 1 }
 0x246   :  { %365 = vsyncpa [#allocation3 + $0x1], 1 }

// kernel: decoder.4
= control target key start
LH: loop header
LB: loop body
LE: loop exit
PB: predicated region body
PF: predicated region fallthrough
CT: control target
= control target key end

     0   :  { %s3324_s17 = smov 0   ;;  %s3908_s0 = inlined_call_operand.vmem [shape: f32[2,8,128], index: 0, kind: input, shape index: {}]   ;;  %s3909_s1 = inlined_call_operand.vmem [shape: f32[2,16,128], index: 1, kind: input, shape index: {}]   ;;  %s3910_s2 = inlined_call_operand.vmem [shape: bf16[128,384], index: 2, kind: input, shape index: {}]   ;;  %s3911_s3 = inlined_call_operand.vmem [shape: bf16[128,128], index: 3, kind: input, shape index: {}]   ;;  %s3912_s4 = inlined_call_operand.vmem [shape: bf16[128,128], index: 4, kind: input, shape index: {}]   ;;  %s3913_s5 = inlined_call_operand.vmem [shape: bf16[128,256], index: 5, kind: input, shape index: {}]   ;;  %s3914_s6 = inlined_call_operand.vmem [shape: bf16[128,128], index: 6, kind: input, shape index: {}]   ;;  %s3915_s7 = inlined_call_operand.vmem [shape: bf16[128,128], index: 7, kind: input, shape index: {}]   ;;  %s3916_s8 = inlined_call_operand.vmem [shape: bf16[128,128], index: 8, kind: input, shape index: {}]   ;;  %s3917_s9 = inlined_call_operand.vmem [shape: f32[16,128], index: 9, kind: input, shape index: {}]   ;;  %s3918_s10 = inlined_call_operand.vmem [shape: f32[1,128], index: 10, kind: input, shape index: {}]   ;;  %s3919_s11 = inlined_call_operand.vmem [shape: f32[2,8,128], index: 11, kind: output, shape index: {}]  }
   0x1 LB: > { %s2652_s18 = sadd.s32 4294967295, %s3256_s17   ;;  %p2656_p0 = scmp.ge.s32.totalorder %s3256_s17, 1  ;;  %s3256_s17 = sphi %s3324_s17, %s21_s17  }
   0x2   : > { %p346_p1 = scmp.lt.s32.totalorder %s3256_s17, 3 }
   0x4   : > { %p347_p2 = pnand %p2656_p0, %p346_p1 }
   0x5   : > { %v3115_v0 = vld [vmem:[%s3910_s2 + $0x4] ss:$12 sps:$4 sm:$0xff] (!%p347_p2)   ;;  %v3117_v1 = vld [vmem:[%s3910_s2] ss:$12 sps:$4 sm:$0xff] (!%p347_p2)   ;;  %v3258_v2 = vmov (!%p347_p2), 0   ;;  %p389_p3 = scmp.lt.s32.totalorder (!%p347_p2), %s2652_s18, 1  ;;  %v650_v20 = vlaneseq (!%p347_p2) }
   0x6   : > { %350 = sbr.rel (%p347_p2) target bundleno = 6575 (0x19af), region = 64  ;;  %601 = vmatprep.mubr.bf16.mxu0 (!%p347_p2), %v3258_v2  ;;  %569 = vmatprep.subr.bf16.mxu0 (!%p347_p2), %v3115_v0  ;;  %v3118_v3 = vld [vmem:[%s3910_s2 + $0x1c] ss:$12 sps:$4 sm:$0xff] (!%p347_p2)   ;;  %v3120_v4 = vld [vmem:[%s3910_s2 + $0x18] ss:$12 sps:$4 sm:$0xff] (!%p347_p2)   ;;  %v3259_v19 = vmov (!%p347_p2), 0.0  }
   0x7   : > { %570 = vmatpush1.bf16.msra.mxu0 (!%p347_p2), %v3117_v1  ;;  %v3121_v5 = vld [vmem:[%s3910_s2 + $0x34] ss:$12 sps:$4 sm:$0xff] (!%p347_p2)   ;;  %v3123_v6 = vld [vmem:[%s3910_s2 + $0x30] ss:$12 sps:$4 sm:$0xff] (!%p347_p2)   ;;  %v3124_v7 = vld [vmem:[%s3910_s2 + $0x4c] ss:$12 sps:$4 sm:$0xff] (!%p347_p2)   ;;  %2861 = vmatprep.subr.bf16.mxu1 (!%p347_p2), %v3259_v19 }
   0x8   : > { %571 = vmatprep.subr.bf16.mxu0 (!%p347_p2), %v3118_v3  ;;  %v3126_v8 = vld [vmem:[%s3910_s2 + $0x48] ss:$12 sps:$4 sm:$0xff] (!%p347_p2)   ;;  %v3127_v9 = vld [vmem:[%s3910_s2 + $0x64] ss:$12 sps:$4 sm:$0xff] (!%p347_p2)   ;;  %v3129_v10 = vld [vmem:[%s3910_s2 + $0x60] ss:$12 sps:$4 sm:$0xff] (!%p347_p2)  }
   0x9   : > { %v3130_v11 = vld [vmem:[%s3910_s2 + $0x7c] ss:$12 sps:$4 sm:$0xff] (!%p347_p2)   ;;  %v3132_v12 = vld [vmem:[%s3910_s2 + $0x78] ss:$12 sps:$4 sm:$0xff] (!%p347_p2)   ;;  %v3133_v13 = vld [vmem:[%s3910_s2 + $0x94] ss:$12 sps:$4 sm:$0xff] (!%p347_p2)  }
   0xa   : > { %v3135_v14 = vld [vmem:[%s3910_s2 + $0x90] ss:$12 sps:$4 sm:$0xff] (!%p347_p2)   ;;  %v3136_v15 = vld [vmem:[%s3910_s2 + $0xac] ss:$12 sps:$4 sm:$0xff] (!%p347_p2)   ;;  %v3138_v16 = vld [vmem:[%s3910_s2 + $0xa8] ss:$12 sps:$4 sm:$0xff] (!%p347_p2)  }
   0xb   : > { %572 = vmatpush1.bf16.msra.mxu0 (!%p347_p2), %v3120_v4  ;;  %vm3260_vm0 = vmmov (!%p347_p2), 0   ;;  %v3402_v21 = vshrl.u32 (!%p347_p2), %v650_v20, 7  ;;  %v3408_v23 = vld [vmem:[%s3917_s9] sm:$0xff] (!%p347_p2)  ;;  %vm685_vm1 = vcmask (!%p347_p2), 261120   ;;  %s3261_s24 = smov (!%p347_p2), 96   ;;  %vm732_vm2 = vcmask (!%p347_p2), 64512  }
   0xc   : > { %573 = vmatprep.subr.bf16.mxu0 (!%p347_p2), %v3121_v5  ;;  %2877 = vmatprep.mubr.msk.bf16.mxu1 (!%p347_p2), %vm3260_vm0, %v3259_v19  ;;  %v3139_v37 = vld [vmem:[%s3910_s2 + $0x8] ss:$12 sps:$4 sm:$0xff] (!%p347_p2)   ;;  %v3140_v38 = vld [vmem:[%s3910_s2 + $0x20] ss:$12 sps:$4 sm:$0xff] (!%p347_p2)   ;;  %v3141_v39 = vld [vmem:[%s3910_s2 + $0x38] ss:$12 sps:$4 sm:$0xff] (!%p347_p2)  }
   0xd   : > { %s3921_s18 = smov (!%p389_p3, %s2652_s18), 1  ;;  %v652_v22 = vsub.s32 0, %v3402_v21  ;;  %v658_v24 = vsub.s32 1, %v3402_v21  ;;  %2862 = vmatpush3.bf16.msra.mxu1 %v3139_v37  ;;  %v3142_v40 = vld [vmem:[%s3910_s2 + $0x50] ss:$12 sps:$4 sm:$0xff]   ;;  %v663_v4 = vsub.s32 2, %v3402_v21 }
   0xe   : > { %s2657_s16 = sshll.u32 %s3921_s18, 3  ;;  %2863 = vmatprep.subr.bf16.mxu1 %v3259_v19  ;;  %v3143_v41 = vld [vmem:[%s3910_s2 + $0x68] ss:$12 sps:$4 sm:$0xff]   ;;  %v3144_v42 = vld [vmem:[%s3910_s2 + $0x80] ss:$12 sps:$4 sm:$0xff]   ;;  %s3262_s26 = smov 64  }
   0xf   : > { %574 = vmatpush1.bf16.msra.mxu0 %v3123_v6  ;;  %s392_s19 = scalar_lea.vmem %s3908_s0, %s2657_s16  ;;  %v653_v25 = vrot.slane %v3408_v23, %v652_v22  ;;  %v659_v26 = vrot.slane %v3408_v23, %v658_v24  ;;  %v3145_v45 = vld [vmem:[%s3910_s2 + $0x98] ss:$12 sps:$4 sm:$0xff]   ;;  %v3146_v46 = vld [vmem:[%s3910_s2 + $0xb0] ss:$12 sps:$4 sm:$0xff]   ;;  %v664_v5 = vrot.slane %v3408_v23, %v663_v4  ;;  %vm748_vm3 = vcmask 1043456   ;;  %s2768_s14 = sshll.u32 %s3921_s18, 4 }
  0x10   : > { %575 = vmatprep.subr.bf16.mxu0 %v3124_v7  ;;  %v3389_v17 = vld [vmem:[%s392_s19] sm:$0xff]  ;;  %v3149_v20 = vld [vmem:[%s3911_s3 + $0x10] sm:$0xff]   ;;  %s3263_s19 = smov 32   ;;  %s397_s21 = scalar_lea.vmem %s3909_s1, %s2768_s14  ;;  %vm1706_vm4 = vcmask 130048  }
  0x11   : > { %v3393_v18 = vpack.c.bf16 %v3389_v17, %v3389_v17  ;;  %2864 = vmatpush3.bf16.msra.mxu1 %v3140_v38  ;;  %s401_s22 = scalar_lea.vmem %s3919_s11, %s2657_s16 }
  0x12   : > { %2865 = vmatprep.subr.bf16.mxu1 %v3259_v19 }
  0x13   : > { %576 = vmatpush1.bf16.msra.mxu0 %v3126_v8 }
  0x14   : > { %577 = vmatprep.subr.bf16.mxu0 %v3127_v9 }
  0x15   : > { %2866 = vmatpush3.bf16.msra.mxu1 %v3141_v39 }
  0x16   : > { %2867 = vmatprep.subr.bf16.mxu1 %v3259_v19 }
  0x17   : > { %578 = vmatpush1.bf16.msra.mxu0 %v3129_v10 }
  0x18   : > { %579 = vmatprep.subr.bf16.mxu0 %v3130_v11 }
  0x19   : > { %2868 = vmatpush3.bf16.msra.mxu1 %v3142_v40 }
  0x1a   : > { %2869 = vmatprep.subr.bf16.mxu1 %v3259_v19 }
  0x1b   : > { %580 = vmatpush1.bf16.msra.mxu0 %v3132_v12 }
  0x1c   : > { %581 = vmatprep.subr.bf16.mxu0 %v3133_v13 }
  0x1d   : > { %2870 = vmatpush3.bf16.msra.mxu1 %v3143_v41 }
  0x1e   : > { %2871 = vmatprep.subr.bf16.mxu1 %v3259_v19 }
  0x1f   : > { %582 = vmatpush1.bf16.msra.mxu0 %v3135_v14 }
  0x20   : > { %583 = vmatprep.subr.bf16.mxu0 %v3136_v15 }
  0x21   : > { %2872 = vmatpush3.bf16.msra.mxu1 %v3144_v42 }
  0x22   : > { %2873 = vmatprep.subr.bf16.mxu1 %v3259_v19 }
  0x23   : > { %584 = vmatpush1.bf16.msra.mxu0 %v3138_v16 }
  0x24   : > { %2881 = vmatprep.subr.bf16.mxu0 %v3259_v19 }
  0x25   : > { %2874 = vmatpush3.bf16.msra.mxu1 %v3145_v45 }
  0x26   : > { %602 = vmatmul.mubr.bf16.vlgmr.msra.gmra.mrb[0].mxu0 %v3393_v18  ;;  %2875 = vmatprep.subr.bf16.mxu1 %v3259_v19 }
  0x27   : > { %2883 = vmatprep.mubr.msk.bf16.mxu0 %vm3260_vm0, %v3259_v19 }
  0x29   : > { %2876 = vmatpush3.bf16.msra.mxu1 %v3146_v46 }
  0x2a   : > { %2887 = vmatprep.subr.bf16.mxu1 %v3259_v19 }
  0x2c   : > { %2878 = vmatmul.mubr.bf16.vlgmr.msra.gmra.mrb[0].mxu1 %v3393_v18 }
  0x2d   : > { %2889 = vmatprep.mubr.msk.bf16.mxu1 %vm3260_vm0, %v3259_v19 }
  0xf9   : > { %v603_v27 = vpop.f32.mrb[0].mxu0 }
  0xfa   : > { %v654_v28 = vadd.f32 %v653_v25, %v603_v27  ;;  %v605_v29 = vpop.f32.mrb[1].mxu0  ;;  %v3150_v25 = vld [vmem:[%s3911_s3 + $0x18] sm:$0xff]  }
  0xfb   : > { %v660_v30 = vadd.f32 %v659_v26, %v605_v29  ;;  %v607_v31 = vpop.f32.mrb[2].mxu0 }
  0xfc   : > { %v608_v32 = vpop.f32.mrb[3].mxu0  ;;  %v655_v33 = vmul.f32 0.17677669, %v654_v28  ;;  %v3147_v31 = vld [vmem:[%s3911_s3] sm:$0xff]  }
  0xfd   : > { %v3417_v34 = vpack.c.bf16 %v660_v30, %v660_v30 }
  0xfe   : > { %v3423_v36 = vpack.c.bf16 %v655_v33, %v655_v33  ;;  %v3148_v33 = vld [vmem:[%s3911_s3 + $0x8] sm:$0xff]  }
  0xff   : > { %797 = vrot.lane.b32.xlu0 %v3417_v34, %s3261_s24  ;;  %v690_v35 = vsel %vm685_vm1, %v3417_v34, 0  ;;  %v644_v61 = vpop.f32.mrb[0].mxu1 }
 0x100   : > { %2882 = vmatpush3.bf16.xpose.msra.mxu0 %v690_v35  ;;  %v2879_v62 = vpop.f32.mrb[1].mxu1  ;;  %v665_v6 = vadd.f32 %v664_v5, %v644_v61 }
 0x101   : > { %2893 = vmatprep.subr.bf16.mxu0 %v3259_v19  ;;  %v647_v63 = vpop.f32.mrb[2].mxu1 }
 0x102   : > { %v2880_v0 = vpop.f32.mrb[3].mxu1  ;;  %v3479_v7 = vpack.c.bf16 %v665_v6, %v665_v6 }
 0x103   : > { %794 = vrot.lane.b32.xlu0 %v3423_v36, %s3261_s24 }
 0x104   : > { %v750_v8 = vsel %vm748_vm3, %v3479_v7, 0 }
 0x105   : > { %2888 = vmatpush3.bf16.msra.mxu1 %v750_v8 }
 0x106   : > { %2899 = vmatprep.subr.bf16.mxu1 %v3259_v19 }
 0x107   : > { %2884 = vmatmul.mubr.msk.bf16.vlgmr.msra.gmra.mrb[4].mxu0 %vm685_vm1, %v3423_v36 }
 0x108   : > { %2895 = vmatprep.mubr.msk.bf16.mxu0 %vm3260_vm0, %v3259_v19 }
 0x171   : > { %v798_v43 = vpop.permute.xlu0 %797 }
 0x172   : > { %v803_v44 = vsel %vm685_vm1, %v798_v43, 0 }
 0x173   : > { %2894 = vmatpush3.bf16.xpose.msra.mxu0 %v803_v44 }
 0x174   : > { %2905 = vmatprep.subr.bf16.mxu0 %v3259_v19 }
 0x175   : > { %v795_v47 = vpop.permute.xlu0 %794 }
 0x17a   : > { %2896 = vmatmul.mubr.msk.bf16.vlgmr.msra.gmra.mrb[8].mxu0 %vm685_vm1, %v795_v47 }
 0x17b   : > { %2909 = vmatprep.mubr.msk.bf16.mxu0 %vm3260_vm0, %v3259_v19  ;;  %2906 = vmatpush3.bf16.msra.mxu0 %v3149_v20 }
 0x17c   : > { %2907 = vmatprep.subr.bf16.mxu0 %v3259_v19 }
 0x17f   : > { %2908 = vmatpush3.bf16.msra.mxu0 %v3150_v25 }
 0x180   : > { %2921 = vmatprep.subr.bf16.mxu0 %v3259_v19 }
 0x1da   : > { %v726_v48 = vpop.f32.mrb[4].mxu0 }
 0x1db   : > { %v2885_v49 = vpop.f32.mrb[5].mxu0  ;;  %v733_v50 = vsel %vm732_vm2, %v726_v48, -inf }
 0x1dc   : > { %734 = vmax.xlane.f32.xlu1 %v733_v50  ;;  %v729_v51 = vpop.f32.mrb[6].mxu0 }
 0x1dd   : > { %v2886_v52 = vpop.f32.mrb[7].mxu0 }
 0x24d   : > { %v839_v53 = vpop.f32.mrb[8].mxu0 }
 0x24e   : > { %v2897_v54 = vpop.f32.mrb[9].mxu0  ;;  %v845_v55 = vsel %vm732_vm2, %v839_v53, -inf }
 0x24f   : > { %846 = vmax.xlane.f32.xlu1 %v845_v55  ;;  %v842_v56 = vpop.f32.mrb[10].mxu0 }
 0x250   : > { %v2898_v57 = vpop.f32.mrb[11].mxu0 }
 0x269   : > { %v735_v58 = vpop.xlane.xlu1 %734 }
 0x26a   : > { %v736_v59 = vsub.f32 %v726_v48, %v735_v58 }
 0x26c   : > { %v737_v60 = vmul.f32 1.442695, %v736_v59 }
 0x26e   : > { %3211 = vpow2.f32 %v737_v60 }
 0x278   : > { %v3212_v1 = vpop.eup %3211 }
 0x279   : > { %v739_v3 = vsel %vm732_vm2, %v3212_v1, 0.0 }
 0x27a   : > { %740 = vadd.xlane.f32.xlu0 %v739_v3 }
 0x290   : > { %1079 = vrot.lane.b32.xlu0 %v3479_v7, %s3262_s26 }
 0x2dc   : > { %v847_v9 = vpop.xlane.xlu1 %846 }
 0x2dd   : > { %v848_v10 = vsub.f32 %v839_v53, %v847_v9  ;;  %v3151_v9 = vld [vmem:[%s3911_s3 + $0x20] sm:$0xff]  }
 0x2df   : > { %v849_v11 = vmul.f32 1.442695, %v848_v10 }
 0x2e1   : > { %3213 = vpow2.f32 %v849_v11 }
 0x2eb   : > { %v3214_v12 = vpop.eup %3213 }
 0x2ec   : > { %v851_v13 = vsel %vm732_vm2, %v3214_v12, 0.0 }
 0x2ed   : > { %852 = vadd.xlane.f32.xlu1 %v851_v13 }
 0x2fe   : > { %858 = vrot.lane.b32.xlu1 %v3479_v7, %s3261_s24 }
 0x302   : > { %1019 = vrot.lane.b32.xlu1 %v3417_v34, %s3262_s26 }
 0x306   : > { %1017 = vrot.lane.b32.xlu1 %v3423_v36, %s3262_s26 }
 0x307   : > { %v741_v14 = vpop.xlane.xlu0 %740 }
 0x308   : > { %3215 = vrcp.f32 %v741_v14 }
 0x30b   : > { %v1080_v35 = vpop.permute.xlu0 %1079 }
 0x30c   : > { %v1085_v41 = vsel %vm748_vm3, %v1080_v35, 0 }
 0x312   : > { %v3216_v15 = vpop.eup %3215 }
 0x313   : > { %v743_v16 = vmul.f32 %v3216_v15, %v3212_v1 }
 0x315   : > { %v744_v18 = vpack.c.bf16 %v743_v16, %v743_v16 }
 0x317   : > { %2890 = vmatmul.mubr.msk.bf16.vlgmr.msra.gmra.mrb[4].mxu1 %vm732_vm2, %v744_v18 }
 0x318   : > { %2901 = vmatprep.mubr.msk.bf16.mxu1 %vm3260_vm0, %v3259_v19 }
 0x37a   : > { %v853_v26 = vpop.xlane.xlu1 %852 }
 0x37b   : > { %3217 = vrcp.f32 %v853_v26 }
 0x37e   : > { %v859_v27 = vpop.permute.xlu1 %858 }
 0x37f   : > { %v864_v28 = vsel %vm748_vm3, %v859_v27, 0 }
 0x380   : > { %2900 = vmatpush3.bf16.msra.mxu1 %v864_v28 }
 0x381   : > { %2913 = vmatprep.subr.bf16.mxu1 %v3259_v19 }
 0x382   : > { %v1020_v43 = vpop.permute.xlu1 %1019 }
 0x383   : > { %v1025_v48 = vsel %vm685_vm1, %v1020_v43, 0 }
 0x385   : > { %v3218_v29 = vpop.eup %3217 }
 0x386   : > { %v855_v30 = vmul.f32 %v3218_v29, %v3214_v12  ;;  %v1018_v50 = vpop.permute.xlu1 %1017 }
 0x388   : > { %v856_v32 = vpack.c.bf16 %v855_v30, %v855_v30 }
 0x38a   : > { %2902 = vmatmul.mubr.msk.bf16.vlgmr.msra.gmra.mrb[8].mxu1 %vm732_vm2, %v856_v32 }
 0x38b   : > { %2914 = vmatpush3.bf16.msra.mxu1 %v3147_v31  ;;  %2917 = vmatprep.mubr.msk.bf16.mxu1 %vm3260_vm0, %v3259_v19 }
 0x38c   : > { %2915 = vmatprep.subr.bf16.mxu1 %v3259_v19 }
 0x38f   : > { %2916 = vmatpush3.bf16.msra.mxu1 %v3148_v33 }
 0x390   : > { %2927 = vmatprep.subr.bf16.mxu1 %v3259_v19 }
 0x3ea   : > { %v786_v37 = vpop.f32.mrb[4].mxu1 }
 0x3eb   : > { %v792_v38 = vpack.c.bf16 %v786_v37, %v786_v37  ;;  %v2891_v39 = vpop.f32.mrb[5].mxu1 }
 0x3ec   : > { %v789_v40 = vpop.f32.mrb[6].mxu1  ;;  %v3153_v39 = vld [vmem:[%s3911_s3 + $0x30] sm:$0xff]  }
 0x3ed   : > { %v2892_v42 = vpop.f32.mrb[7].mxu1  ;;  %2918 = vmatmul.mubr.msk.bf16.vlgmr.msra.gmra.mrb[12].mxu1 %vm685_vm1, %v792_v38 }
 0x3ee   : > { %2928 = vmatpush3.bf16.msra.mxu1 %v1085_v41  ;;  %2929 = vmatprep.mubr.msk.bf16.mxu1 %vm3260_vm0, %v3259_v19 }
 0x3ef   : > { %2941 = vmatprep.subr.bf16.mxu1 %v3259_v19 }
 0x45d   : > { %v900_v44 = vpop.f32.mrb[8].mxu1 }
 0x45e   : > { %v906_v45 = vpack.c.bf16 %v900_v44, %v900_v44  ;;  %v2903_v46 = vpop.f32.mrb[9].mxu1 }
 0x45f   : > { %v903_v47 = vpop.f32.mrb[10].mxu1 }
 0x460   : > { %v2904_v49 = vpop.f32.mrb[11].mxu1  ;;  %2910 = vmatmul.mubr.msk.bf16.vlgmr.msra.gmra.mrb[12].mxu0 %vm685_vm1, %v906_v45 }
 0x461   : > { %2922 = vmatpush3.bf16.xpose.msra.mxu0 %v1025_v48  ;;  %2923 = vmatprep.mubr.msk.bf16.mxu0 %vm3260_vm0, %v3259_v19 }
 0x462   : > { %2933 = vmatprep.subr.bf16.mxu0 %v3259_v19 }
 0x468   : > { %2924 = vmatmul.mubr.msk.bf16.vlgmr.msra.gmra.mrb[16].mxu0 %vm685_vm1, %v1018_v50  ;;  %v3154_v50 = vld [vmem:[%s3911_s3 + $0x38] sm:$0xff]  }
 0x469   : > { %2937 = vmatprep.mubr.msk.bf16.mxu0 %vm3260_vm0, %v3259_v19  ;;  %2934 = vmatpush3.bf16.msra.mxu0 %v3151_v9  ;;  %v3161_v9 = vld [vmem:[%s3913_s5 + $0x20] ss:$8 sps:$4 sm:$0xff]  }
 0x46a   : > { %2935 = vmatprep.subr.bf16.mxu0 %v3259_v19 }
 0x4c0   : > { %v1011_v51 = vpop.f32.mrb[12].mxu1 }
 0x4c1   : > { %v2919_v52 = vpop.f32.mrb[13].mxu1 }
 0x4c2   : > { %v1014_v53 = vpop.f32.mrb[14].mxu1 }
 0x4c3   : > { %v2920_v54 = vpop.f32.mrb[15].mxu1 }
 0x533   : > { %v956_v55 = vpop.f32.mrb[12].mxu0 }
 0x534   : > { %v3530_v56 = vadd.f32 %v1011_v51, %v956_v55  ;;  %v2911_v57 = vpop.f32.mrb[13].mxu0 }
 0x535   : > { %v959_v58 = vpop.f32.mrb[14].mxu0 }
 0x536   : > { %v2912_v59 = vpop.f32.mrb[15].mxu0 }
 0x53b   : > { %v1061_v60 = vpop.f32.mrb[16].mxu0 }
 0x53c   : > { %v2925_v61 = vpop.f32.mrb[17].mxu0  ;;  %v1067_v62 = vsel %vm732_vm2, %v1061_v60, -inf }
 0x53d   : > { %1068 = vmax.xlane.f32.xlu1 %v1067_v62  ;;  %v1064_v63 = vpop.f32.mrb[18].mxu0 }
 0x53e   : > { %v2926_v0 = vpop.f32.mrb[19].mxu0 }
 0x5ca   : > { %v1069_v1 = vpop.xlane.xlu1 %1068 }
 0x5cb   : > { %v1070_v3 = vsub.f32 %v1061_v60, %v1069_v1  ;;  %v3155_v1 = vld [vmem:[%s3913_s5] ss:$8 sps:$4 sm:$0xff]  }
 0x5cd   : > { %v1071_v5 = vmul.f32 1.442695, %v1070_v3  ;;  %v3160_v3 = vld [vmem:[%s3913_s5 + $0x14] ss:$8 sps:$4 sm:$0xff]  }
 0x5cf   : > { %3219 = vpow2.f32 %v1071_v5  ;;  %v3164_v5 = vld [vmem:[%s3912_s4] sm:$0xff]  }
 0x5d9   : > { %v3220_v6 = vpop.eup %3219 }
 0x5da   : > { %v1073_v8 = vsel %vm732_vm2, %v3220_v6, 0.0 }
 0x5db   : > { %1074 = vadd.xlane.f32.xlu0 %v1073_v8  ;;  %v3168_v8 = vld [vmem:[%s3912_s4 + $0x8] sm:$0xff]  }
 0x5f1   : > { %1186 = vrot.lane.b32.xlu0 %v3417_v34, %s3263_s19 }
 0x5f5   : > { %1184 = vrot.lane.b32.xlu0 %v3423_v36, %s3263_s19  ;;  %v3152_v36 = vld [vmem:[%s3911_s3 + $0x28] sm:$0xff]  }
 0x5f6   : > { %2936 = vmatpush3.bf16.msra.mxu0 %v3152_v36 }
 0x5f7   : > { %2947 = vmatprep.subr.bf16.mxu0 %v3259_v19 }
 0x668   : > { %v1075_v10 = vpop.xlane.xlu0 %1074 }
 0x669   : > { %3221 = vrcp.f32 %v1075_v10  ;;  %v3167_v10 = vld [vmem:[%s3913_s5 + $0x34] ss:$8 sps:$4 sm:$0xff]  }
 0x66c   : > { %v1187_v13 = vpop.permute.xlu0 %1186 }
 0x66d   : > { %v1192_v15 = vsel %vm685_vm1, %v1187_v13, 0  ;;  %v3169_v13 = vld [vmem:[%s3913_s5 + $0x40] ss:$8 sps:$4 sm:$0xff]  }
 0x670   : > { %v1185_v34 = vpop.permute.xlu0 %1184 }
 0x673   : > { %v3222_v11 = vpop.eup %3221 }
 0x674   : > { %v1077_v12 = vmul.f32 %v3222_v11, %v3220_v6  ;;  %v3163_v6 = vld [vmem:[%s3913_s5 + $0x24] ss:$8 sps:$4 sm:$0xff]   ;;  %v3165_v11 = vld [vmem:[%s3913_s5 + $0x30] ss:$8 sps:$4 sm:$0xff]  }
 0x676   : > { %v1078_v14 = vpack.c.bf16 %v1077_v12, %v1077_v12  ;;  %v3171_v12 = vld [vmem:[%s3913_s5 + $0x44] ss:$8 sps:$4 sm:$0xff]  }
 0x678   : > { %2930 = vmatmul.mubr.msk.bf16.vlgmr.msra.gmra.mrb[16].mxu1 %vm732_vm2, %v1078_v14 }
 0x679   : > { %2942 = vmatpush3.bf16.xpose.msra.mxu1 %v1192_v15  ;;  %2943 = vmatprep.mubr.msk.bf16.mxu1 %vm3260_vm0, %v3259_v19 }
 0x67a   : > { %2953 = vmatprep.subr.bf16.mxu1 %v3259_v19 }
 0x680   : > { %2944 = vmatmul.mubr.msk.bf16.vlgmr.msra.gmra.mrb[20].mxu1 %vm685_vm1, %v1185_v34 }
 0x681   : > { %2957 = vmatprep.mubr.msk.bf16.mxu1 %vm3260_vm0, %v3259_v19  ;;  %2954 = vmatpush3.bf16.msra.mxu1 %v3153_v39 }
 0x682   : > { %2955 = vmatprep.subr.bf16.mxu1 %v3259_v19 }
 0x685   : > { %2956 = vmatpush3.bf16.msra.mxu1 %v3154_v50 }
 0x74b   : > { %v1121_v16 = vpop.f32.mrb[16].mxu1 }
 0x74c   : > { %v1127_v18 = vpack.c.bf16 %v1121_v16, %v1121_v16  ;;  %v2931_v20 = vpop.f32.mrb[17].mxu1  ;;  %v3172_v16 = vld [vmem:[%s3912_s4 + $0x10] sm:$0xff]  }
 0x74d   : > { %v1124_v25 = vpop.f32.mrb[18].mxu1  ;;  %v3173_v20 = vld [vmem:[%s3913_s5 + $0x50] ss:$8 sps:$4 sm:$0xff]  }
 0x74e   : > { %v2932_v26 = vpop.f32.mrb[19].mxu1  ;;  %2938 = vmatmul.mubr.msk.bf16.vlgmr.msra.gmra.mrb[20].mxu0 %vm685_vm1, %v1127_v18  ;;  %v3175_v18 = vld [vmem:[%s3913_s5 + $0x54] ss:$8 sps:$4 sm:$0xff]  }
 0x74f   : > { %2949 = vmatprep.mubr.msk.bf16.mxu0 %vm3260_vm0, %v3259_v19  ;;  %v3176_v25 = vld [vmem:[%s3912_s4 + $0x18] sm:$0xff]   ;;  %v3179_v26 = vld [vmem:[%s3913_s5 + $0x64] ss:$8 sps:$4 sm:$0xff]  }
 0x753   : > { %v1228_v27 = vpop.f32.mrb[20].mxu1 }
 0x754   : > { %v2945_v28 = vpop.f32.mrb[21].mxu1  ;;  %v1234_v29 = vsel %vm732_vm2, %v1228_v27, -inf }
 0x755   : > { %1235 = vmax.xlane.f32.xlu0 %v1234_v29  ;;  %v1231_v30 = vpop.f32.mrb[22].mxu1  ;;  %v3180_v28 = vld [vmem:[%s3912_s4 + $0x20] sm:$0xff]   ;;  %v3183_v29 = vld [vmem:[%s3913_s5 + $0x74] ss:$8 sps:$4 sm:$0xff]  }
 0x756   : > { %v2946_v31 = vpop.f32.mrb[23].mxu1  ;;  %v3181_v30 = vld [vmem:[%s3913_s5 + $0x70] ss:$8 sps:$4 sm:$0xff]  }
 0x757   : > { %v404_v31 = vld [vmem:[%s397_s21] sm:$0xff] }
 0x7e2   : > { %v1236_v32 = vpop.xlane.xlu0 %1235 }
 0x7e3   : > { %v1237_v33 = vsub.f32 %v1228_v27, %v1236_v32  ;;  %v3177_v27 = vld [vmem:[%s3913_s5 + $0x60] ss:$8 sps:$4 sm:$0xff]  }
 0x7e4   : > { %v405_v32 = vld [vmem:[%s397_s21 + $0x8] sm:$0xff] }
 0x7e5   : > { %v1238_v35 = vmul.f32 1.442695, %v1237_v33  ;;  %v3184_v33 = vld [vmem:[%s3912_s4 + $0x28] sm:$0xff]  }
 0x7e7   : > { %3223 = vpow2.f32 %v1238_v35  ;;  %v1505_v35 = vpack.c.bf16 %v405_v32, %v404_v31 }
 0x7f1   : > { %v3224_v37 = vpop.eup %3223 }
 0x7f2   : > { %v1240_v38 = vsel %vm732_vm2, %v3224_v37, 0.0 }
 0x7f3   : > { %1241 = vadd.xlane.f32.xlu1 %v1240_v38  ;;  %v3186_v38 = vld [vmem:[%s3912_s4 + $0x38] sm:$0xff]  }
 0x804   : > { %1246 = vrot.lane.b32.xlu1 %v3479_v7, %s3263_s19 }
 0x821   : > { %v1177_v40 = vpop.f32.mrb[20].mxu0 }
 0x822   : > { %v1183_v41 = vadd.f32 %v1177_v40, %v3530_v56  ;;  %v2939_v42 = vpop.f32.mrb[21].mxu0  ;;  %v1353_v56 = vsub.s32 6, %v3402_v21 }
 0x823   : > { %v1180_v43 = vpop.f32.mrb[22].mxu0  ;;  %v3671_v42 = vld [vmem:[%s3917_s9 + $0x8] sm:$0xff] }
 0x824   : > { %v2940_v44 = vpop.f32.mrb[23].mxu0  ;;  %v1354_v57 = vrot.slane %v3408_v23, %v1353_v56  ;;  %v1372_v43 = vrot.slane %v3671_v42, %v658_v24  ;;  %v1637_v24 = vsub.s32 5, %v3402_v21 }
 0x880   : > { %v1242_v45 = vpop.xlane.xlu1 %1241 }
 0x881   : > { %3225 = vrcp.f32 %v1242_v45  ;;  %v1377_v45 = vrot.slane %v3671_v42, %v663_v4  ;;  %v1638_v4 = vrot.slane %v3408_v23, %v1637_v24 }
 0x884   : > { %v1247_v46 = vpop.permute.xlu1 %1246 }
 0x885   : > { %v1252_v47 = vsel %vm748_vm3, %v1247_v46, 0 }
 0x886   : > { %2948 = vmatpush3.bf16.msra.mxu0 %v1252_v47 }
 0x887   : > { %2961 = vmatprep.subr.bf16.mxu0 %v3259_v19 }
 0x88b   : > { %v3226_v7 = vpop.eup %3225 }
 0x88c   : > { %v1244_v48 = vmul.f32 %v3226_v7, %v3224_v37  ;;  %v3185_v37 = vld [vmem:[%s3912_s4 + $0x30] sm:$0xff]  }
 0x88e   : > { %v1245_v49 = vpack.c.bf16 %v1244_v48, %v1244_v48 }
 0x890   : > { %2950 = vmatmul.mubr.msk.bf16.vlgmr.msra.gmra.mrb[24].mxu0 %vm732_vm2, %v1245_v49  ;;  %v1631_v49 = vsub.s32 4, %v3402_v21 }
 0x891   : > { %2977 = vmatprep.mubr.msk.bf16.mxu0 %vm3260_vm0, %v3259_v19  ;;  %2962 = vmatpush3.bf16.msra.mxu0 %v3164_v5 }
 0x892   : > { %2963 = vmatprep.subr.bf16.mxu0 %v3259_v19  ;;  %v1632_v50 = vrot.slane %v3408_v23, %v1631_v49 }
 0x895   : > { %2964 = vmatpush3.bf16.msra.mxu0 %v3168_v8 }
 0x896   : > { %2965 = vmatprep.subr.bf16.mxu0 %v3259_v19 }
 0x899   : > { %2966 = vmatpush3.bf16.msra.mxu0 %v3172_v16 }
 0x89a   : > { %2967 = vmatprep.subr.bf16.mxu0 %v3259_v19 }
 0x89d   : > { %2968 = vmatpush3.bf16.msra.mxu0 %v3176_v25 }
 0x89e   : > { %2969 = vmatprep.subr.bf16.mxu0 %v3259_v19 }
 0x8a1   : > { %2970 = vmatpush3.bf16.msra.mxu0 %v3180_v28 }
 0x8a2   : > { %2971 = vmatprep.subr.bf16.mxu0 %v3259_v19 }
 0x8a5   : > { %2972 = vmatpush3.bf16.msra.mxu0 %v3184_v33 }
 0x8a6   : > { %2973 = vmatprep.subr.bf16.mxu0 %v3259_v19 }
 0x8a9   : > { %2974 = vmatpush3.bf16.msra.mxu0 %v3185_v37 }
 0x8aa   : > { %2975 = vmatprep.subr.bf16.mxu0 %v3259_v19 }
 0x8ad   : > { %2976 = vmatpush3.bf16.msra.mxu0 %v3186_v38 }
 0x8ae   : > { %2981 = vmatprep.subr.bf16.mxu0 %v3259_v19 }
 0x963   : > { %v1288_v51 = vpop.f32.mrb[24].mxu0 }
 0x964   : > { %v1294_v52 = vpack.c.bf16 %v1288_v51, %v1288_v51  ;;  %v2951_v53 = vpop.f32.mrb[25].mxu0 }
 0x965   : > { %v1291_v54 = vpop.f32.mrb[26].mxu0 }
 0x966   : > { %v2952_v55 = vpop.f32.mrb[27].mxu0  ;;  %2958 = vmatmul.mubr.msk.bf16.vlgmr.msra.gmra.mrb[24].mxu1 %vm685_vm1, %v1294_v52 }
 0x967   : > { %1618 = vmatprep.mubr.bf16.mxu1 %v3258_v2  ;;  %v3157_v2 = vld [vmem:[%s3913_s5 + $0x4] ss:$8 sps:$4 sm:$0xff]  }
 0x968   : > { %1586 = vmatprep.subr.bf16.mxu1 %v3157_v2 }
 0x969   : > { %1587 = vmatpush1.bf16.msra.mxu1 %v3155_v1 }
 0x96a   : > { %1588 = vmatprep.subr.bf16.mxu1 %v3160_v3 }
 0xa39   : > { %v1344_v58 = vpop.f32.mrb[24].mxu1 }
 0xa3a   : > { %v1350_v59 = vadd.f32 %v1344_v58, %v1183_v41  ;;  %v2959_v60 = vpop.f32.mrb[25].mxu1 }
 0xa3b   : > { %v1347_v61 = vpop.f32.mrb[26].mxu1 }
 0xa3c   : > { %v1355_v62 = vadd.f32 %v1354_v57, %v1350_v59  ;;  %v2960_v63 = vpop.f32.mrb[27].mxu1 }
 0xa3d   : > { %v1398_v63 = vsub.s32 3, %v3402_v21 }
 0xa3e   : > { %v1356_v0 = vadd.f32 %v1355_v62, %v3389_v17  ;;  %v3158_v17 = vld [vmem:[%s3913_s5 + $0x10] ss:$8 sps:$4 sm:$0xff]  }
 0xa3f   : > { %1589 = vmatpush1.bf16.msra.mxu1 %v3158_v17 }
 0xa40   : > { %1357 = vadd.xlane.f32.xlu1 %v1356_v0  ;;  %1590 = vmatprep.subr.bf16.mxu1 %v3163_v6 }
 0xa43   : > { %1591 = vmatpush1.bf16.msra.mxu1 %v3161_v9 }
 0xa44   : > { %1592 = vmatprep.subr.bf16.mxu1 %v3167_v10 }
 0xa47   : > { %1593 = vmatpush1.bf16.msra.mxu1 %v3165_v11 }
 0xa48   : > { %1594 = vmatprep.subr.bf16.mxu1 %v3171_v12 }
 0xa4b   : > { %1595 = vmatpush1.bf16.msra.mxu1 %v3169_v13 }
 0xa4c   : > { %1596 = vmatprep.subr.bf16.mxu1 %v3175_v18 }
 0xa4f   : > { %1597 = vmatpush1.bf16.msra.mxu1 %v3173_v20 }
 0xa50   : > { %1598 = vmatprep.subr.bf16.mxu1 %v3179_v26 }
 0xa53   : > { %1599 = vmatpush1.bf16.msra.mxu1 %v3177_v27 }
 0xa54   : > { %1600 = vmatprep.subr.bf16.mxu1 %v3183_v29 }
 0xa57   : > { %1601 = vmatpush1.bf16.msra.mxu1 %v3181_v30 }
 0xa58   : > { %2987 = vmatprep.subr.bf16.mxu1 %v3259_v19 }
 0xa5a   : > { %1619 = vmatmul.mubr.bf16.vlgmr.msra.gmra.mrb[28].mxu1 %v1505_v35 }
 0xa5b   : > { %2989 = vmatprep.mubr.msk.bf16.mxu1 %vm3260_vm0, %v3259_v19 }
 0xacd   : > { %v1358_v14 = vpop.xlane.xlu1 %1357 }
 0xace   : > { %v1360_v15 = vmul.f32 0.0078125, %v1358_v14 }
 0xad0   : > { %v1361_v34 = vsub.f32 %v1356_v0, %v1360_v15  ;;  %v1399_v0 = vrot.slane %v3408_v23, %v1398_v63 }
 0xad2   : > { %v1362_v36 = vmul.f32 %v1361_v34, %v1361_v34 }
 0xad4   : > { %1363 = vadd.xlane.f32.xlu0 %v1362_v36 }
 0xb2d   : > { %v1620_v51 = vpop.f32.mrb[28].mxu1 }
 0xb2e   : > { %v1633_v52 = vadd.f32 %v1632_v50, %v1620_v51  ;;  %v1622_v53 = vpop.f32.mrb[29].mxu1 }
 0xb2f   : > { %v1639_v54 = vadd.f32 %v1638_v4, %v1622_v53  ;;  %v1624_v55 = vpop.f32.mrb[30].mxu1 }
 0xb30   : > { %v1634_v57 = vadd.f32 %v1632_v50, %v1624_v55  ;;  %v1626_v58 = vpop.f32.mrb[31].mxu1 }
 0xb31   : > { %v1640_v59 = vadd.f32 %v1638_v4, %v1626_v58  ;;  %v3188_v4 = vld [vmem:[%s3914_s6 + $0x8] sm:$0xff]  }
 0xb32   : > { %v3693_v60 = vpack.c.bf16 %v1634_v57, %v1633_v52 }
 0xb33   : > { %v3695_v61 = vpack.c.bf16 %v1640_v59, %v1639_v54 }
 0xb34   : > { %1767 = vrot.lane.b32.xlu0 %v3693_v60, %s3261_s24  ;;  %v1664_v62 = vsel %vm685_vm1, %v3693_v60, 0 }
 0xb35   : > { %2988 = vmatpush3.bf16.msra.mxu1 %v3695_v61 }
 0xb36   : > { %2999 = vmatprep.subr.bf16.mxu1 %v3259_v19 }
 0xb61   : > { %v1364_v39 = vpop.xlane.xlu0 %1363 }
 0xb62   : > { %v1365_v40 = vmul.f32 0.0078125, %v1364_v39 }
 0xb64   : > { %v1366_v41 = vadd.f32 1e-05, %v1365_v40 }
 0xb66   : > { %3227 = vrsqrt.f32 %v1366_v41  ;;  %v3189_v41 = vld [vmem:[%s3914_s6 + $0x10] sm:$0xff]  }
 0xb70   : > { %v3228_v44 = vpop.eup %3227 }
 0xb71   : > { %v1368_v46 = vmul.f32 %v3228_v44, %v1361_v34 }
 0xb73   : > { %v1373_v47 = vmul.f32 %v1372_v43, %v1368_v46  ;;  %v3190_v43 = vld [vmem:[%s3914_s6 + $0x18] sm:$0xff]  }
 0xb75   : > { %v3679_v7 = vadd.f32 %v1377_v45, %v1373_v47 }
 0xb77   : > { %v1395_v48 = vpack.c.bf16 %v3679_v7, %v3679_v7 }
 0xb79   : > { %2978 = vmatmul.mubr.bf16.vlgmr.msra.gmra.mrb[28].mxu0 %v1395_v48  ;;  %v3187_v48 = vld [vmem:[%s3914_s6] sm:$0xff]  }
 0xb7a   : > { %2983 = vmatprep.mubr.msk.bf16.mxu0 %vm3260_vm0, %v3259_v19  ;;  %2982 = vmatpush3.bf16.xpose.msra.mxu0 %v1664_v62 }
 0xb7b   : > { %2993 = vmatprep.subr.bf16.mxu0 %v3259_v19 }
 0xba6   : > { %v1768_v17 = vpop.permute.xlu0 %1767 }
 0xba7   : > { %v1773_v10 = vsel %vm685_vm1, %v1768_v17, 0 }
 0xc4c   : > { %v1482_v1 = vpop.f32.mrb[28].mxu0 }
 0xc4d   : > { %v1483_v2 = vadd.f32 %v1482_v1, %v1399_v0  ;;  %v2979_v3 = vpop.f32.mrb[29].mxu0 }
 0xc4e   : > { %v1485_v5 = vpop.f32.mrb[30].mxu0 }
 0xc4f   : > { %v1488_v6 = vmul.f32 0.17677669, %v1483_v2  ;;  %v2980_v8 = vpop.f32.mrb[31].mxu0 }
 0xc51   : > { %v3708_v9 = vpack.c.bf16 %v1488_v6, %v1488_v6 }
 0xc53   : > { %1764 = vrot.lane.b32.xlu0 %v3708_v9, %s3261_s24  ;;  %2984 = vmatmul.mubr.msk.bf16.vlgmr.msra.gmra.mrb[32].mxu0 %vm685_vm1, %v3708_v9 }
 0xc54   : > { %2994 = vmatpush3.bf16.xpose.msra.mxu0 %v1773_v10  ;;  %2995 = vmatprep.mubr.msk.bf16.mxu0 %vm3260_vm0, %v3259_v19 }
 0xc55   : > { %3005 = vmatprep.subr.bf16.mxu0 %v3259_v19 }
 0xcc5   : > { %v1765_v23 = vpop.permute.xlu0 %1764 }
 0xcc6   : > { %2996 = vmatmul.mubr.msk.bf16.vlgmr.msra.gmra.mrb[36].mxu0 %vm685_vm1, %v1765_v23 }
 0xcc7   : > { %3009 = vmatprep.mubr.msk.bf16.mxu0 %vm3260_vm0, %v3259_v19  ;;  %3006 = vmatpush3.bf16.msra.mxu0 %v3189_v41 }
 0xcc8   : > { %3007 = vmatprep.subr.bf16.mxu0 %v3259_v19 }
 0xccb   : > { %3008 = vmatpush3.bf16.msra.mxu0 %v3190_v43 }
 0xccc   : > { %3021 = vmatprep.subr.bf16.mxu0 %v3259_v19 }
 0xd26   : > { %v1700_v11 = vpop.f32.mrb[32].mxu0 }
 0xd27   : > { %v2985_v12 = vpop.f32.mrb[33].mxu0  ;;  %v1707_v13 = vsel %vm1706_vm4, %v1700_v11, -inf }
 0xd28   : > { %1708 = vmax.xlane.f32.xlu1 %v1707_v13  ;;  %v1703_v14 = vpop.f32.mrb[34].mxu0 }
 0xd29   : > { %v2986_v15 = vpop.f32.mrb[35].mxu0 }
 0xd99   : > { %v1809_v34 = vpop.f32.mrb[36].mxu0 }
 0xd9a   : > { %v2997_v36 = vpop.f32.mrb[37].mxu0  ;;  %v1815_v16 = vsel %vm1706_vm4, %v1809_v34, -inf }
 0xd9b   : > { %1816 = vmax.xlane.f32.xlu0 %v1815_v16  ;;  %v1812_v18 = vpop.f32.mrb[38].mxu0 }
 0xd9c   : > { %v2998_v20 = vpop.f32.mrb[39].mxu0 }
 0xdb5   : > { %v1709_v25 = vpop.xlane.xlu1 %1708 }
 0xdb6   : > { %v1710_v26 = vsub.f32 %v1700_v11, %v1709_v25 }
 0xdb8   : > { %v1711_v27 = vmul.f32 1.442695, %v1710_v26 }
 0xdba   : > { %3229 = vpow2.f32 %v1711_v27 }
 0xdc4   : > { %v3230_v28 = vpop.eup %3229 }
 0xdc5   : > { %v1713_v29 = vsel %vm1706_vm4, %v3230_v28, 0.0 }
 0xdc6   : > { %1714 = vadd.xlane.f32.xlu1 %v1713_v29  ;;  %v3191_v29 = vld [vmem:[%s3914_s6 + $0x20] sm:$0xff]  }
 0xe28   : > { %v1817_v30 = vpop.xlane.xlu0 %1816 }
 0xe29   : > { %v1818_v31 = vsub.f32 %v1809_v34, %v1817_v30 }
 0xe2b   : > { %v1819_v32 = vmul.f32 1.442695, %v1818_v31 }
 0xe2d   : > { %3231 = vpow2.f32 %v1819_v32 }
 0xe37   : > { %v3232_v33 = vpop.eup %3231 }
 0xe38   : > { %v1821_v35 = vsel %vm1706_vm4, %v3232_v33, 0.0 }
 0xe39   : > { %1822 = vadd.xlane.f32.xlu1 %v1821_v35 }
 0xe4a   : > { %1828 = vrot.lane.b32.xlu1 %v3695_v61, %s3261_s24 }
 0xe4e   : > { %1987 = vrot.lane.b32.xlu1 %v3693_v60, %s3262_s26 }
 0xe52   : > { %1985 = vrot.lane.b32.xlu1 %v3708_v9, %s3262_s26 }
 0xe53   : > { %v1715_v37 = vpop.xlane.xlu1 %1714 }
 0xe54   : > { %3233 = vrcp.f32 %v1715_v37  ;;  %v3192_v37 = vld [vmem:[%s3914_s6 + $0x28] sm:$0xff]  }
 0xe5e   : > { %v3234_v38 = vpop.eup %3233 }
 0xe5f   : > { %v1717_v39 = vmul.f32 %v3234_v38, %v3230_v28 }
 0xe61   : > { %v1718_v40 = vpack.c.bf16 %v1717_v39, %v1717_v39 }
 0xe63   : > { %2990 = vmatmul.mubr.msk.bf16.vlgmr.msra.gmra.mrb[32].mxu1 %vm1706_vm4, %v1718_v40 }
 0xe64   : > { %3001 = vmatprep.mubr.msk.bf16.mxu1 %vm3260_vm0, %v3259_v19 }
 0xec6   : > { %v1823_v44 = vpop.xlane.xlu1 %1822 }
 0xec7   : > { %3235 = vrcp.f32 %v1823_v44 }
 0xeca   : > { %v1829_v45 = vpop.permute.xlu1 %1828 }
 0xecb   : > { %3000 = vmatpush3.bf16.msra.mxu1 %v1829_v45 }
 0xecc   : > { %3013 = vmatprep.subr.bf16.mxu1 %v3259_v19 }
 0xece   : > { %v1988_v57 = vpop.permute.xlu1 %1987 }
 0xecf   : > { %v1993_v1 = vsel %vm685_vm1, %v1988_v57, 0 }
 0xed1   : > { %v3236_v46 = vpop.eup %3235 }
 0xed2   : > { %v1825_v47 = vmul.f32 %v3236_v46, %v3232_v33  ;;  %v1986_v3 = vpop.permute.xlu1 %1985 }
 0xed4   : > { %v1826_v50 = vpack.c.bf16 %v1825_v47, %v1825_v47 }
 0xed6   : > { %3002 = vmatmul.mubr.msk.bf16.vlgmr.msra.gmra.mrb[36].mxu1 %vm1706_vm4, %v1826_v50 }
 0xed7   : > { %3014 = vmatpush3.bf16.msra.mxu1 %v3187_v48  ;;  %3017 = vmatprep.mubr.msk.bf16.mxu1 %vm3260_vm0, %v3259_v19 }
 0xed8   : > { %3015 = vmatprep.subr.bf16.mxu1 %v3259_v19 }
 0xedb   : > { %3016 = vmatpush3.bf16.msra.mxu1 %v3188_v4 }
 0xedc   : > { %3027 = vmatprep.subr.bf16.mxu1 %v3259_v19 }
 0xf36   : > { %v1756_v51 = vpop.f32.mrb[32].mxu1 }
 0xf37   : > { %v1762_v52 = vpack.c.bf16 %v1756_v51, %v1756_v51  ;;  %v2991_v53 = vpop.f32.mrb[33].mxu1 }
 0xf38   : > { %v1759_v54 = vpop.f32.mrb[34].mxu1 }
 0xf39   : > { %v2992_v55 = vpop.f32.mrb[35].mxu1  ;;  %3018 = vmatmul.mubr.msk.bf16.vlgmr.msra.gmra.mrb[40].mxu1 %vm685_vm1, %v1762_v52  ;;  %v3193_v54 = vld [vmem:[%s3914_s6 + $0x30] sm:$0xff]  }
 0xf3a   : > { %3029 = vmatprep.mubr.msk.bf16.mxu1 %vm3260_vm0, %v3259_v19 }
 0xfa9   : > { %v1868_v58 = vpop.f32.mrb[36].mxu1 }
 0xfaa   : > { %v1874_v59 = vpack.c.bf16 %v1868_v58, %v1868_v58  ;;  %v3003_v62 = vpop.f32.mrb[37].mxu1 }
 0xfab   : > { %v1871_v0 = vpop.f32.mrb[38].mxu1 }
 0xfac   : > { %v3004_v2 = vpop.f32.mrb[39].mxu1  ;;  %3010 = vmatmul.mubr.msk.bf16.vlgmr.msra.gmra.mrb[40].mxu0 %vm685_vm1, %v1874_v59 }
 0xfad   : > { %3022 = vmatpush3.bf16.xpose.msra.mxu0 %v1993_v1  ;;  %3023 = vmatprep.mubr.msk.bf16.mxu0 %vm3260_vm0, %v3259_v19 }
 0xfae   : > { %3033 = vmatprep.subr.bf16.mxu0 %v3259_v19 }
 0xfb4   : > { %3024 = vmatmul.mubr.msk.bf16.vlgmr.msra.gmra.mrb[44].mxu0 %vm685_vm1, %v1986_v3 }
 0xfb5   : > { %3037 = vmatprep.mubr.msk.bf16.mxu0 %vm3260_vm0, %v3259_v19  ;;  %3034 = vmatpush3.bf16.msra.mxu0 %v3191_v29 }
 0xfb6   : > { %3035 = vmatprep.subr.bf16.mxu0 %v3259_v19 }
 0xfb9   : > { %3036 = vmatpush3.bf16.msra.mxu0 %v3192_v37  ;;  %v3204_v37 = vld [vmem:[%s3916_s8 + $0x8] sm:$0xff]  }
 0xfba   : > { %3047 = vmatprep.subr.bf16.mxu0 %v3259_v19 }
0x100c   : > { %v1979_v5 = vpop.f32.mrb[40].mxu1 }
0x100d   : > { %v3019_v17 = vpop.f32.mrb[41].mxu1 }
0x100e   : > { %v1982_v6 = vpop.f32.mrb[42].mxu1 }
0x100f   : > { %v3020_v8 = vpop.f32.mrb[43].mxu1 }
0x107f   : > { %v1924_v10 = vpop.f32.mrb[40].mxu0 }
0x1080   : > { %v3765_v23 = vadd.f32 %v1979_v5, %v1924_v10  ;;  %v3011_v11 = vpop.f32.mrb[41].mxu0  ;;  %v3194_v5 = vld [vmem:[%s3914_s6 + $0x38] sm:$0xff]  }
0x1081   : > { %v1927_v12 = vpop.f32.mrb[42].mxu0  ;;  %v2317_v11 = vsub.s32 7, %v3402_v21 }
0x1082   : > { %v3012_v13 = vpop.f32.mrb[43].mxu0  ;;  %v3249_v12 = vld [vmem:[%s3917_s9] sm:$0xff] }
0x1083   : > { %v2318_v13 = vrot.slane %v3249_v12, %v2317_v11 }
0x1087   : > { %v2029_v14 = vpop.f32.mrb[44].mxu0 }
0x1088   : > { %v3025_v15 = vpop.f32.mrb[45].mxu0  ;;  %v2035_v34 = vsel %vm1706_vm4, %v2029_v14, -inf }
0x1089   : > { %2036 = vmax.xlane.f32.xlu0 %v2035_v34  ;;  %v2032_v36 = vpop.f32.mrb[46].mxu0 }
0x108a   : > { %v3026_v16 = vpop.f32.mrb[47].mxu0 }
0x109f   : > { %2047 = vrot.lane.b32.xlu0 %v3695_v61, %s3262_s26 }
0x10a3   : > { %2152 = vrot.lane.b32.xlu0 %v3693_v60, %s3263_s19 }
0x10a7   : > { %2150 = vrot.lane.b32.xlu0 %v3708_v9, %s3263_s19 }
0x1116   : > { %v2037_v18 = vpop.xlane.xlu0 %2036 }
0x1117   : > { %v2038_v20 = vsub.f32 %v2029_v14, %v2037_v18 }
0x1119   : > { %v2039_v25 = vmul.f32 1.442695, %v2038_v20 }
0x111a   : > { %v2048_v26 = vpop.permute.xlu0 %2047 }
0x111b   : > { %3237 = vpow2.f32 %v2039_v25  ;;  %3028 = vmatpush3.bf16.msra.mxu1 %v2048_v26  ;;  %v3195_v25 = vld [vmem:[%s3915_s7] sm:$0xff]   ;;  %v3196_v26 = vld [vmem:[%s3915_s7 + $0x8] sm:$0xff]  }
0x111c   : > { %3041 = vmatprep.subr.bf16.mxu1 %v3259_v19 }
0x111e   : > { %v2153_v31 = vpop.permute.xlu0 %2152 }
0x111f   : > { %v2158_v33 = vsel %vm685_vm1, %v2153_v31, 0  ;;  %v3200_v31 = vld [vmem:[%s3915_s7 + $0x28] sm:$0xff]  }
0x1122   : > { %v2151_v35 = vpop.permute.xlu0 %2150 }
0x1125   : > { %v3238_v27 = vpop.eup %3237 }
0x1126   : > { %v2041_v28 = vsel %vm1706_vm4, %v3238_v27, 0.0 }
0x1127   : > { %2042 = vadd.xlane.f32.xlu1 %v2041_v28 }
0x11b4   : > { %v2043_v60 = vpop.xlane.xlu1 %2042 }
0x11b5   : > { %3239 = vrcp.f32 %v2043_v60 }
0x11bf   : > { %v3240_v9 = vpop.eup %3239 }
0x11c0   : > { %v2045_v30 = vmul.f32 %v3240_v9, %v3238_v27  ;;  %v3198_v9 = vld [vmem:[%s3915_s7 + $0x18] sm:$0xff]  }
0x11c2   : > { %v2046_v32 = vpack.c.bf16 %v2045_v30, %v2045_v30  ;;  %v3199_v30 = vld [vmem:[%s3915_s7 + $0x20] sm:$0xff]  }
0x11c4   : > { %3030 = vmatmul.mubr.msk.bf16.vlgmr.msra.gmra.mrb[44].mxu1 %vm1706_vm4, %v2046_v32  ;;  %v3201_v32 = vld [vmem:[%s3915_s7 + $0x30] sm:$0xff]  }
0x11c5   : > { %3042 = vmatpush3.bf16.xpose.msra.mxu1 %v2158_v33  ;;  %3043 = vmatprep.mubr.msk.bf16.mxu1 %vm3260_vm0, %v3259_v19  ;;  %v3202_v33 = vld [vmem:[%s3915_s7 + $0x38] sm:$0xff]  }
0x11c6   : > { %3053 = vmatprep.subr.bf16.mxu1 %v3259_v19 }
0x11cc   : > { %3044 = vmatmul.mubr.msk.bf16.vlgmr.msra.gmra.mrb[48].mxu1 %vm685_vm1, %v2151_v35  ;;  %v3203_v35 = vld [vmem:[%s3916_s8] sm:$0xff]  }
0x11cd   : > { %3057 = vmatprep.mubr.msk.bf16.mxu1 %vm3260_vm0, %v3259_v19  ;;  %3054 = vmatpush3.bf16.msra.mxu1 %v3193_v54 }
0x11ce   : > { %3055 = vmatprep.subr.bf16.mxu1 %v3259_v19 }
0x11d1   : > { %3056 = vmatpush3.bf16.msra.mxu1 %v3194_v5 }
0x11d2   : > { %3081 = vmatprep.subr.bf16.mxu1 %v3259_v19 }
0x1297   : > { %v2087_v38 = vpop.f32.mrb[44].mxu1 }
0x1298   : > { %v2093_v39 = vpack.c.bf16 %v2087_v38, %v2087_v38  ;;  %v3031_v40 = vpop.f32.mrb[45].mxu1  ;;  %v3205_v38 = vld [vmem:[%s3916_s8 + $0x10] sm:$0xff]  }
0x1299   : > { %v2090_v41 = vpop.f32.mrb[46].mxu1  ;;  %v3207_v40 = vld [vmem:[%s3916_s8 + $0x20] sm:$0xff]  }
0x129a   : > { %v3032_v43 = vpop.f32.mrb[47].mxu1  ;;  %3038 = vmatmul.mubr.msk.bf16.vlgmr.msra.gmra.mrb[48].mxu0 %vm685_vm1, %v2093_v39  ;;  %v3206_v39 = vld [vmem:[%s3916_s8 + $0x18] sm:$0xff]   ;;  %v3208_v41 = vld [vmem:[%s3916_s8 + $0x28] sm:$0xff]  }
0x129b   : > { %3049 = vmatprep.mubr.msk.bf16.mxu0 %vm3260_vm0, %v3259_v19 }
0x129f   : > { %v2194_v44 = vpop.f32.mrb[48].mxu1 }
0x12a0   : > { %v3045_v45 = vpop.f32.mrb[49].mxu1  ;;  %v2200_v46 = vsel %vm1706_vm4, %v2194_v44, -inf }
0x12a1   : > { %2201 = vmax.xlane.f32.xlu0 %v2200_v46  ;;  %v2197_v47 = vpop.f32.mrb[50].mxu1  ;;  %v2335_v46 = vrot.slane %v3671_v42, %v1398_v63  ;;  %v3210_v63 = vld [vmem:[%s3916_s8 + $0x38] sm:$0xff]  }
0x12a2   : > { %v3046_v48 = vpop.f32.mrb[51].mxu1 }
0x12a3   : > { %v2340_v48 = vrot.slane %v3671_v42, %v1631_v49  ;;  %v2749_v49 = vld [vmem:[%s3918_s10] ss:$0 sm:$0xff] }
0x132e   : > { %v2202_v50 = vpop.xlane.xlu0 %2201 }
0x132f   : > { %v2203_v4 = vsub.f32 %v2194_v44, %v2202_v50 }
0x1331   : > { %v2204_v51 = vmul.f32 1.442695, %v2203_v4 }
0x1333   : > { %3241 = vpow2.f32 %v2204_v51 }
0x133d   : > { %v3242_v52 = vpop.eup %3241 }
0x133e   : > { %v2206_v53 = vsel %vm1706_vm4, %v3242_v52, 0.0 }
0x133f   : > { %2207 = vadd.xlane.f32.xlu1 %v2206_v53  ;;  %v3209_v53 = vld [vmem:[%s3916_s8 + $0x30] sm:$0xff]  }
0x1350   : > { %2212 = vrot.lane.b32.xlu1 %v3695_v61, %s3263_s19 }
0x136d   : > { %v2143_v55 = vpop.f32.mrb[48].mxu0 }
0x136e   : > { %v2149_v57 = vadd.f32 %v2143_v55, %v3765_v23  ;;  %v3039_v58 = vpop.f32.mrb[49].mxu0 }
0x136f   : > { %v2146_v59 = vpop.f32.mrb[50].mxu0 }
0x1370   : > { %v3040_v62 = vpop.f32.mrb[51].mxu0 }
0x13cc   : > { %v2208_v0 = vpop.xlane.xlu1 %2207 }
0x13cd   : > { %3243 = vrcp.f32 %v2208_v0 }
0x13d0   : > { %v2213_v1 = vpop.permute.xlu1 %2212 }
0x13d1   : > { %3048 = vmatpush3.bf16.msra.mxu0 %v2213_v1 }
0x13d2   : > { %3061 = vmatprep.subr.bf16.mxu0 %v3259_v19 }
0x13d7   : > { %v3244_v61 = vpop.eup %3243 }
0x13d8   : > { %v2210_v2 = vmul.f32 %v3244_v61, %v3242_v52 }
0x13da   : > { %v2211_v3 = vpack.c.bf16 %v2210_v2, %v2210_v2 }
0x13dc   : > { %3050 = vmatmul.mubr.msk.bf16.vlgmr.msra.gmra.mrb[52].mxu0 %vm1706_vm4, %v2211_v3 }
0x13dd   : > { %3077 = vmatprep.mubr.msk.bf16.mxu0 %vm3260_vm0, %v3259_v19  ;;  %3062 = vmatpush3.bf16.msra.mxu0 %v3195_v25 }
0x13de   : > { %3063 = vmatprep.subr.bf16.mxu0 %v3259_v19 }
0x13e1   : > { %3064 = vmatpush3.bf16.msra.mxu0 %v3196_v26 }
0x13e2   : > { %3065 = vmatprep.subr.bf16.mxu0 %v3259_v19 }
0x14af   : > { %v2252_v17 = vpop.f32.mrb[52].mxu0 }
0x14b0   : > { %v2258_v6 = vpack.c.bf16 %v2252_v17, %v2252_v17  ;;  %v3051_v8 = vpop.f32.mrb[53].mxu0 }
0x14b1   : > { %v2255_v10 = vpop.f32.mrb[54].mxu0 }
0x14b2   : > { %v3052_v23 = vpop.f32.mrb[55].mxu0  ;;  %3058 = vmatmul.mubr.msk.bf16.vlgmr.msra.gmra.mrb[52].mxu1 %vm685_vm1, %v2258_v6 }
0x14b3   : > { %3097 = vmatprep.mubr.msk.bf16.mxu1 %vm3260_vm0, %v3259_v19  ;;  %3082 = vmatpush3.bf16.msra.mxu1 %v3203_v35 }
0x14b4   : > { %3083 = vmatprep.subr.bf16.mxu1 %v3259_v19 }
0x14b7   : > { %3084 = vmatpush3.bf16.msra.mxu1 %v3204_v37 }
0x14b8   : > { %3085 = vmatprep.subr.bf16.mxu1 %v3259_v19 }
0x14bb   : > { %3086 = vmatpush3.bf16.msra.mxu1 %v3205_v38 }
0x14bc   : > { %3087 = vmatprep.subr.bf16.mxu1 %v3259_v19 }
0x14bf   : > { %3088 = vmatpush3.bf16.msra.mxu1 %v3206_v39 }
0x14c0   : > { %3089 = vmatprep.subr.bf16.mxu1 %v3259_v19 }
0x14c3   : > { %3090 = vmatpush3.bf16.msra.mxu1 %v3207_v40 }
0x14c4   : > { %3091 = vmatprep.subr.bf16.mxu1 %v3259_v19 }
0x14c7   : > { %3092 = vmatpush3.bf16.msra.mxu1 %v3208_v41 }
0x14c8   : > { %3093 = vmatprep.subr.bf16.mxu1 %v3259_v19 }
0x14cb   : > { %3094 = vmatpush3.bf16.msra.mxu1 %v3209_v53 }
0x14cc   : > { %3095 = vmatprep.subr.bf16.mxu1 %v3259_v19 }
0x14cf   : > { %3096 = vmatpush3.bf16.msra.mxu1 %v3210_v63 }
0x1585   : > { %v2308_v14 = vpop.f32.mrb[52].mxu1 }
0x1586   : > { %v2314_v15 = vadd.f32 %v2308_v14, %v2149_v57  ;;  %v3059_v34 = vpop.f32.mrb[53].mxu1 }
0x1587   : > { %v2311_v36 = vpop.f32.mrb[54].mxu1 }
0x1588   : > { %v2319_v16 = vadd.f32 %v2318_v13, %v2314_v15  ;;  %v3060_v18 = vpop.f32.mrb[55].mxu1  ;;  %v2584_v15 = vrot.slane %v3671_v42, %v1353_v56 }
0x158a   : > { %v2320_v20 = vadd.f32 %v2319_v16, %v3679_v7  ;;  %v3197_v7 = vld [vmem:[%s3915_s7 + $0x10] sm:$0xff]  }
0x158b   : > { %3066 = vmatpush3.bf16.msra.mxu0 %v3197_v7 }
0x158c   : > { %2321 = vadd.xlane.f32.xlu1 %v2320_v20  ;;  %3067 = vmatprep.subr.bf16.mxu0 %v3259_v19 }
0x158f   : > { %3068 = vmatpush3.bf16.msra.mxu0 %v3198_v9 }
0x1590   : > { %3069 = vmatprep.subr.bf16.mxu0 %v3259_v19 }
0x1593   : > { %3070 = vmatpush3.bf16.msra.mxu0 %v3199_v30 }
0x1594   : > { %3071 = vmatprep.subr.bf16.mxu0 %v3259_v19 }
0x1597   : > { %3072 = vmatpush3.bf16.msra.mxu0 %v3200_v31 }
0x1598   : > { %3073 = vmatprep.subr.bf16.mxu0 %v3259_v19 }
0x159b   : > { %3074 = vmatpush3.bf16.msra.mxu0 %v3201_v32 }
0x159c   : > { %3075 = vmatprep.subr.bf16.mxu0 %v3259_v19  ;;  %v2475_v19 = vrot.slane %v3671_v42, %v652_v22  ;;  %v2579_v22 = vrot.slane %v3671_v42, %v1637_v24 }
0x159f   : > { %3076 = vmatpush3.bf16.msra.mxu0 %v3202_v33 }
0x1619   : > { %v2322_v27 = vpop.xlane.xlu1 %2321 }
0x161a   : > { %v2323_v28 = vmul.f32 0.0078125, %v2322_v27 }
0x161c   : > { %v2324_v29 = vsub.f32 %v2320_v20, %v2323_v28 }
0x161e   : > { %v2325_v60 = vmul.f32 %v2324_v29, %v2324_v29 }
0x1620   : > { %2326 = vadd.xlane.f32.xlu0 %v2325_v60 }
0x16ad   : > { %v2327_v43 = vpop.xlane.xlu0 %2326 }
0x16ae   : > { %v2328_v44 = vmul.f32 0.0078125, %v2327_v43 }
0x16b0   : > { %v2329_v45 = vadd.f32 1e-05, %v2328_v44 }
0x16b2   : > { %3245 = vrsqrt.f32 %v2329_v45 }
0x16bc   : > { %v3246_v47 = vpop.eup %3245 }
0x16bd   : > { %v2331_v50 = vmul.f32 %v3246_v47, %v2324_v29 }
0x16bf   : > { %v2336_v4 = vmul.f32 %v2335_v46, %v2331_v50 }
0x16c1   : > { %v2341_v51 = vadd.f32 %v2340_v48, %v2336_v4 }
0x16c3   : > { %v2358_v52 = vpack.c.bf16 %v2341_v51, %v2341_v51 }
0x16c5   : > { %3078 = vmatmul.mubr.bf16.vlgmr.msra.gmra.mrb[56].mxu0 %v2358_v52 }
0x1798   : > { %v2448_v54 = vpop.f32.mrb[56].mxu0 }
0x1799   : > { %v2449_v55 = vadd.f32 %v2749_v49, %v2448_v54  ;;  %v3079_v57 = vpop.f32.mrb[57].mxu0 }
0x179a   : > { %v2451_v58 = vpop.f32.mrb[58].mxu0 }
0x179b   : > { %v2454_v59 = vmax.f32 %v2449_v55, 0.0  ;;  %v3080_v62 = vpop.f32.mrb[59].mxu0 }
0x179d   : > { %v2471_v0 = vpack.c.bf16 %v2454_v59, %v2454_v59 }
0x179f   : > { %3098 = vmatmul.mubr.bf16.vlgmr.msra.gmra.mrb[56].mxu1 %v2471_v0 }
0x1872   : > { %v2558_v1 = vpop.f32.mrb[56].mxu1 }
0x1873   : > { %v2559_v61 = vadd.f32 %v2558_v1, %v2475_v19  ;;  %v3099_v2 = vpop.f32.mrb[57].mxu1 }
0x1874   : > { %v2561_v3 = vpop.f32.mrb[58].mxu1 }
0x1875   : > { %v3100_v5 = vpop.f32.mrb[59].mxu1  ;;  %v2564_v17 = vadd.f32 %v2559_v61, %v2341_v51 }
0x1877   : > { %2565 = vadd.xlane.f32.xlu0 %v2564_v17 }
0x1904   : > { %v2566_v6 = vpop.xlane.xlu0 %2565 }
0x1905   : > { %v2567_v8 = vmul.f32 0.0078125, %v2566_v6 }
0x1907   : > { %v2568_v10 = vsub.f32 %v2564_v17, %v2567_v8 }
0x1909   : > { %v2569_v23 = vmul.f32 %v2568_v10, %v2568_v10 }
0x190b   : > { %2570 = vadd.xlane.f32.xlu0 %v2569_v23 }
0x1998   : > { %v2571_v11 = vpop.xlane.xlu0 %2570 }
0x1999   : > { %v2572_v12 = vmul.f32 0.0078125, %v2571_v11 }
0x199b   : > { %v2573_v13 = vadd.f32 1e-05, %v2572_v12 }
0x199d   : > { %3247 = vrsqrt.f32 %v2573_v13 }
0x19a7   : > { %v3248_v14 = vpop.eup %3247 }
0x19a8   : > { %v2575_v34 = vmul.f32 %v3248_v14, %v2568_v10 }
0x19aa   : > { %v2580_v36 = vmul.f32 %v2579_v22, %v2575_v34 }
0x19ac   : > { %v2585_v16 = vadd.f32 %v2584_v15, %v2580_v36 }
0x19ae   : > { %2586 = vst [vmem:[%s401_s22] sm:$0xff] %v2585_v16 }
0x19af PF: > { %s21_s17 = sadd.s32 1, %s3256_s17  }
0x19b0   : > { %p18_p4 = scmp.ge.s32.totalorder %s21_s17, 4  }
0x19b2   :  { %20 = sbr.rel (!%p18_p4) target bundleno = 1 (0x1), region = 97 }

// kernel: decoder.3
= control target key start
LH: loop header
LB: loop body
LE: loop exit
PB: predicated region body
PF: predicated region fallthrough
CT: control target
= control target key end

     0   :  { %s4648_s0 = inlined_call_operand.hbm [shape: f32[2,8,128], index: 0, kind: input, shape index: {}]   ;;  %s4649_s1 = inlined_call_operand.vmem [shape: f32[2,16,128], index: 1, kind: input, shape index: {}]   ;;  %s4650_s2 = inlined_call_operand.hbm [shape: bf16[128,384], index: 2, kind: input, shape index: {}]   ;;  %s4651_s3 = inlined_call_operand.hbm [shape: bf16[128,128], index: 3, kind: input, shape index: {}]   ;;  %s4652_s4 = inlined_call_operand.hbm [shape: bf16[128,128], index: 4, kind: input, shape index: {}]   ;;  %s4653_s5 = inlined_call_operand.hbm [shape: bf16[128,256], index: 5, kind: input, shape index: {}]   ;;  %s4654_s6 = inlined_call_operand.hbm [shape: bf16[128,128], index: 6, kind: input, shape index: {}]   ;;  %s4655_s7 = inlined_call_operand.hbm [shape: bf16[128,128], index: 7, kind: input, shape index: {}]   ;;  %s4656_s8 = inlined_call_operand.hbm [shape: bf16[128,128], index: 8, kind: input, shape index: {}]   ;;  %s4657_s9 = inlined_call_operand.hbm [shape: f32[16,128], index: 9, kind: input, shape index: {}]   ;;  %s4658_s10 = inlined_call_operand.vmem [shape: f32[1,128], index: 10, kind: input, shape index: {}]   ;;  %s4659_s11 = inlined_call_operand.vmem [shape: f32[2,8,128], index: 11, kind: output, shape index: {}]  }
   0x1   :  { %4663 = sst [smem:[#allocation21_spill]] %s4649_s1 }
   0x2   :  { %4664 = sst [smem:[#allocation22_spill]] %s4650_s2 }
   0x3   :  { %4665 = sst [smem:[#allocation23_spill]] %s4658_s10 }
   0x4   :  { %4666 = sst [smem:[#allocation24_spill]] %s4659_s11 }
   0x5   :  { %16 = vsyncpa [#allocation3], 0 }
   0x6   :  { %18 = vsyncpa [#allocation3 + $0x1], 0 }
   0x7   :  { %19 = vsyncpa [#allocation5], 0 }
   0x8   :  { %20 = vsyncpa [#allocation8], 0 }
   0x9   :  { %21 = vsyncpa [#allocation11], 0 }
   0xa   :  { %22 = vsyncpa [#allocation14], 0  ;;  %s3996_s17 = smov 0   ;;  %s3998_s18 = smov 0  }
   0xb   :  { %s4000_s19 = smov 0   ;;  %s4002_s20 = smov 0  }
   0xc LB: > { %s3915_s21 = smov [#allocation4]   ;;  %s4017_s23 = sadd.s32 4294967295, %s3913_s20   ;;  %s3913_s20 = sphi %s4002_s20, %s4690_s20   ;;  %s3909_s19 = sphi %s4000_s19, %s4689_s19   ;;  %s3905_s18 = sphi %s3998_s18, %s4688_s18   ;;  %s3901_s17 = sphi %s3996_s17, %s4687_s17  }
   0xd   : > { %s312_s22 = sshll.u32 %s3915_s21, 4  ;;  %p2877_p0 = scmp.ge.s32.totalorder %s3913_s20, 1  ;;  %s4022_s22 = int_to_ptr.vmem [resolvable:$true] %s312_s22 }
   0xe   : > { %p4660_p1 = scmp.eq.s32.totalorder %s4017_s23, 0  ;;  %p300_p2 = scmp.lt.s32.totalorder %s3913_s20, 3 }
   0xf   : > { %s3916_s26 = smov [#allocation7]   ;;  %s3917_s28 = smov [#allocation10]  }
  0x10   : > { %p4024_p3 = pnand %p2877_p0, %p300_p2  ;;  %s338_s27 = sshll.u32 %s3916_s26, 4  ;;  %s4036_s27 = int_to_ptr.vmem [resolvable:$true] %s338_s27 }
  0x11   : > { %s4038_s29 = sshll.u32 %s3917_s28, 4  ;;  %s4669_s2 = sld [smem:[#allocation22_spill]]  ;;  %s365_s29 = int_to_ptr.vmem [resolvable:$true] %s4038_s29 }
  0x12   : > { %s4667_s24 = scalar_select %p4024_p3, 1, 0 }
  0x13   : > { %p3376_p4 = pneg %p4024_p3 }
  0x15   : > { %p4032_p5 = pnand %p3376_p4, %p4660_p1 }
  0x17   : > { %s3609_s13 = scalar_lea.hbm %s4669_s2, 3072  ;;  %p4048_p7 = pneg %p4032_p5 }
  0x18   : > { %p3610_p6 = scmp.ne.s32.totalorder %s4669_s2, %s3609_s13  ;;  %p3616_p10 = scmp.lt.u32.totalorder %s3609_s13, %s4669_s2 }
  0x1a   : > { %p3612_p8 = pnand %p4048_p7, %p3610_p6 }
  0x1c   : > { %p3613_p9 = pneg %p3612_p8 }
  0x1e   : > { %p3618_p11 = pnand %p3616_p10, %p3613_p9 }
  0x20   : > { %3621 = shalt.err (!%p3618_p11)
}
  0x21   : > { %s3622_s28 = scalar_lea.vmem %s4022_s22, 3072  ;;  %p3630_p2 = scmp.lt.s32.totalorder %s4022_s22, %s4022_s22 }
  0x22   : > { %p3623_p12 = scmp.ne.s32.totalorder %s4022_s22, %s3622_s28  ;;  %p3631_p4 = scmp.lt.s32.totalorder %s3622_s28, %s3622_s28 }
  0x24   : > { %p3625_p13 = pnand %p3623_p12, %p4048_p7  ;;  %p3632_p6 = por %p3631_p4, %p3630_p2 }
  0x26   : > { %p3626_p0 = pneg %p3625_p13 }
  0x28   : > { %p3633_p8 = pnand %p3632_p6, %p3626_p0 }
  0x2a   : > { %3636 = shalt.err (!%p3633_p8)
}
  0x2b   : > { %s3918_s30 = smov 192   ;;  %s3919_s12 = smov 12  }
  0x2c   : > { %3379 = dma.hbm_to_vmem [thread:$0]  (!%p4032_p5), %s4669_s2, 3072, %s4022_s22, [#allocation5], %s3918_s30, %s3918_s30, %s3919_s12  }
  0x2d   : > { %s3637_s26 = scalar_lea.hbm %s4652_s4, 1024 }
  0x2e   : > { %p3638_p9 = scmp.ne.s32.totalorder %s4652_s4, %s3637_s26  ;;  %p3644_p12 = scmp.lt.u32.totalorder %s3637_s26, %s4652_s4 }
  0x30   : > { %p3640_p10 = pnand %p3638_p9, %p4048_p7 }
  0x32   : > { %p3641_p11 = pneg %p3640_p10 }
  0x34   : > { %p3646_p13 = pnand %p3644_p12, %p3641_p11 }
  0x36   : > { %3649 = shalt.err (!%p3646_p13)
}
  0x37   : > { %s3650_s22 = scalar_lea.vmem %s4036_s27, 1024  ;;  %p3658_p6 = scmp.lt.s32.totalorder %s4036_s27, %s4036_s27 }
  0x38   : > { %p3651_p0 = scmp.ne.s32.totalorder %s4036_s27, %s3650_s22  ;;  %p3659_p8 = scmp.lt.s32.totalorder %s3650_s22, %s3650_s22 }
  0x3a   : > { %p3653_p2 = pnand %p3651_p0, %p4048_p7  ;;  %p3660_p9 = por %p3659_p8, %p3658_p6 }
  0x3c   : > { %p3654_p4 = pneg %p3653_p2 }
  0x3e   : > { %p3661_p10 = pnand %p3660_p9, %p3654_p4 }
  0x40   : > { %3664 = shalt.err (!%p3661_p10)
}
  0x41   : > { %s4662_s10 = smov 64   ;;  %s3921_s1 = smov 4  }
  0x42   : > { %3385 = dma.hbm_to_vmem [thread:$0]  (!%p4032_p5), %s4652_s4, 1024, %s4036_s27, [#allocation8], %s4662_s10, %s4662_s10, %s3921_s1  }
  0x43   : > { %s3665_s14 = scalar_lea.hbm %s4654_s6, 1024 }
  0x44   : > { %p3666_p11 = scmp.ne.s32.totalorder %s4654_s6, %s3665_s14  ;;  %p3672_p0 = scmp.lt.u32.totalorder %s3665_s14, %s4654_s6 }
  0x46   : > { %p3668_p12 = pnand %p3666_p11, %p4048_p7 }
  0x48   : > { %p3669_p13 = pneg %p3668_p12 }
  0x4a   : > { %p3674_p2 = pnand %p3672_p0, %p3669_p13 }
  0x4c   : > { %3677 = shalt.err (!%p3674_p2)
}
  0x4d   : > { %s3678_s22 = scalar_lea.vmem %s365_s29, 1024  ;;  %p3686_p9 = scmp.lt.s32.totalorder %s365_s29, %s365_s29 }
  0x4e   : > { %p3679_p4 = scmp.ne.s32.totalorder %s365_s29, %s3678_s22  ;;  %p3687_p10 = scmp.lt.s32.totalorder %s3678_s22, %s3678_s22 }
  0x50   : > { %p3681_p6 = pnand %p3679_p4, %p4048_p7  ;;  %p3688_p1 = por %p3687_p10, %p3686_p9 }
  0x52   : > { %p3682_p8 = pneg %p3681_p6 }
  0x54   : > { %p3689_p3 = pnand %p3688_p1, %p3682_p8 }
  0x56   : > { %3692 = shalt.err (!%p3689_p3)
}
  0x57   : > { %3391 = dma.hbm_to_vmem [thread:$0]  (!%p4032_p5), %s4654_s6, 1024, %s365_s29, [#allocation11], %s4662_s10, %s4662_s10, %s3921_s1  }
  0x58   : > { %s3922_s30 = smov [#allocation13]   ;;  %s3923_s13 = smov [#allocation6]  }
  0x59   : > { %s390_s12 = sshll.u32 %s3922_s30, 4  ;;  %s325_s14 = sshll.u32 %s3923_s13, 4  ;;  %s391_s12 = int_to_ptr.vmem [resolvable:$true] %s390_s12  ;;  %s326_s14 = int_to_ptr.vmem [resolvable:$true] %s325_s14 }
  0x5a   : > { %s3693_s26 = scalar_lea.hbm %s4656_s8, 1024 }
  0x5b   : > { %p3694_p1 = scmp.ne.s32.totalorder %s4656_s8, %s3693_s26  ;;  %p3700_p12 = scmp.lt.u32.totalorder %s3693_s26, %s4656_s8 }
  0x5d   : > { %p3696_p3 = pnand %p3694_p1, %p4048_p7 }
  0x5f   : > { %p3697_p11 = pneg %p3696_p3 }
  0x61   : > { %p3702_p13 = pnand %p3700_p12, %p3697_p11 }
  0x63   : > { %3705 = shalt.err (!%p3702_p13)
}
  0x64   : > { %s3706_s29 = scalar_lea.vmem %s391_s12, 1024  ;;  %p3714_p6 = scmp.lt.s32.totalorder %s391_s12, %s391_s12 }
  0x65   : > { %p3707_p0 = scmp.ne.s32.totalorder %s391_s12, %s3706_s29  ;;  %p3715_p8 = scmp.lt.s32.totalorder %s3706_s29, %s3706_s29 }
  0x67   : > { %p3709_p2 = pnand %p3707_p0, %p4048_p7  ;;  %p3716_p9 = por %p3715_p8, %p3714_p6 }
  0x69   : > { %p3710_p4 = pneg %p3709_p2 }
  0x6b   : > { %p3717_p10 = pnand %p3716_p9, %p3710_p4 }
  0x6d   : > { %3720 = shalt.err (!%p3717_p10)
}
  0x6e   : > { %3397 = dma.hbm_to_vmem [thread:$0]  (!%p4032_p5), %s4656_s8, 1024, %s391_s12, [#allocation14], %s4662_s10, %s4662_s10, %s3921_s1  }
  0x6f   : > { %s3721_s15 = scalar_lea.hbm %s4651_s3, 1024 }
  0x70   : > { %p3722_p1 = scmp.ne.s32.totalorder %s4651_s3, %s3721_s15  ;;  %p3728_p12 = scmp.lt.u32.totalorder %s3721_s15, %s4651_s3 }
  0x72   : > { %p3724_p3 = pnand %p3722_p1, %p4048_p7 }
  0x74   : > { %p3725_p11 = pneg %p3724_p3 }
  0x76   : > { %p3730_p13 = pnand %p3728_p12, %p3725_p11 }
  0x78   : > { %3733 = shalt.err (!%p3730_p13)
}
  0x79   : > { %s3734_s27 = scalar_lea.vmem %s326_s14, 1024  ;;  %p3742_p6 = scmp.lt.s32.totalorder %s326_s14, %s326_s14 }
  0x7a   : > { %p3735_p0 = scmp.ne.s32.totalorder %s326_s14, %s3734_s27  ;;  %p3743_p8 = scmp.lt.s32.totalorder %s3734_s27, %s3734_s27 }
  0x7c   : > { %p3737_p2 = pnand %p3735_p0, %p4048_p7  ;;  %p3744_p9 = por %p3743_p8, %p3742_p6 }
  0x7e   : > { %p3738_p4 = pneg %p3737_p2 }
  0x80   : > { %p3745_p10 = pnand %p3744_p9, %p3738_p4 }
  0x82   : > { %3748 = shalt.err (!%p3745_p10)
}
  0x83   : > { %3382 = dma.hbm_to_vmem [thread:$0]  (!%p4032_p5), %s4651_s3, 1024, %s326_s14, [#allocation5], %s4662_s10, %s4662_s10, %s3921_s1  }
  0x84   : > { %s3924_s2 = smov [#allocation9]   ;;  %s3749_s15 = scalar_lea.hbm %s4653_s5, 2048 }
  0x85   : > { %s351_s11 = sshll.u32 %s3924_s2, 4  ;;  %p3750_p1 = scmp.ne.s32.totalorder %s4653_s5, %s3749_s15  ;;  %s352_s11 = int_to_ptr.vmem [resolvable:$true] %s351_s11 }
  0x86   : > { %p3756_p12 = scmp.lt.u32.totalorder %s3749_s15, %s4653_s5 }
  0x87   : > { %p3752_p3 = pnand %p3750_p1, %p4048_p7 }
  0x89   : > { %p3753_p11 = pneg %p3752_p3 }
  0x8b   : > { %p3758_p13 = pnand %p3756_p12, %p3753_p11 }
  0x8d   : > { %3761 = shalt.err (!%p3758_p13)
}
  0x8e   : > { %s3762_s14 = scalar_lea.vmem %s352_s11, 2048  ;;  %p3770_p6 = scmp.lt.s32.totalorder %s352_s11, %s352_s11 }
  0x8f   : > { %p3763_p0 = scmp.ne.s32.totalorder %s352_s11, %s3762_s14  ;;  %p3771_p8 = scmp.lt.s32.totalorder %s3762_s14, %s3762_s14 }
  0x91   : > { %p3765_p2 = pnand %p3763_p0, %p4048_p7  ;;  %p3772_p9 = por %p3771_p8, %p3770_p6 }
  0x93   : > { %p3766_p4 = pneg %p3765_p2 }
  0x95   : > { %p3773_p10 = pnand %p3772_p9, %p3766_p4 }
  0x97   : > { %3776 = shalt.err (!%p3773_p10)
}
  0x98   : > { %s3925_s27 = smov 128   ;;  %s3926_s12 = smov 8  }
  0x99   : > { %3388 = dma.hbm_to_vmem [thread:$0]  (!%p4032_p5), %s4653_s5, 2048, %s352_s11, [#allocation8], %s3925_s27, %s3925_s27, %s3926_s12  }
  0x9a   : > { %s3927_s30 = smov [#allocation12]   ;;  %s3928_s15 = smov [#allocation15]  }
  0x9b   : > { %s377_s13 = sshll.u32 %s3927_s30, 4  ;;  %s403_s21 = sshll.u32 %s3928_s15, 4  ;;  %s378_s13 = int_to_ptr.vmem [resolvable:$true] %s377_s13  ;;  %s4180_s21 = int_to_ptr.vmem [resolvable:$true] %s403_s21 }
  0x9c   : > { %s3777_s22 = scalar_lea.hbm %s4655_s7, 1024 }
  0x9d   : > { %p3778_p1 = scmp.ne.s32.totalorder %s4655_s7, %s3777_s22  ;;  %p3784_p12 = scmp.lt.u32.totalorder %s3777_s22, %s4655_s7 }
  0x9f   : > { %p3780_p3 = pnand %p3778_p1, %p4048_p7 }
  0xa1   : > { %p3781_p11 = pneg %p3780_p3 }
  0xa3   : > { %p3786_p13 = pnand %p3784_p12, %p3781_p11 }
  0xa5   : > { %3789 = shalt.err (!%p3786_p13)
}
  0xa6   : > { %s3790_s2 = scalar_lea.vmem %s378_s13, 1024  ;;  %p3798_p6 = scmp.lt.s32.totalorder %s378_s13, %s378_s13 }
  0xa7   : > { %p3791_p0 = scmp.ne.s32.totalorder %s378_s13, %s3790_s2  ;;  %p3799_p8 = scmp.lt.s32.totalorder %s3790_s2, %s3790_s2 }
  0xa9   : > { %p3793_p2 = pnand %p3791_p0, %p4048_p7  ;;  %p3800_p9 = por %p3799_p8, %p3798_p6 }
  0xab   : > { %p3794_p4 = pneg %p3793_p2 }
  0xad   : > { %p3801_p10 = pnand %p3800_p9, %p3794_p4 }
  0xaf   : > { %3804 = shalt.err (!%p3801_p10)
}
  0xb0   : > { %s4671_s10 = smov 64   ;;  %s3805_s22 = scalar_lea.hbm %s4657_s9, 256 }
  0xb1   : > { %3394 = dma.hbm_to_vmem [thread:$0]  (!%p4032_p5), %s4655_s7, 1024, %s378_s13, [#allocation11], %s4671_s10, %s4671_s10, %s3921_s1  }
  0xb2   : > { %p3806_p1 = scmp.ne.s32.totalorder %s4657_s9, %s3805_s22  ;;  %p3812_p12 = scmp.lt.u32.totalorder %s3805_s22, %s4657_s9 }
  0xb4   : > { %p3808_p3 = pnand %p3806_p1, %p4048_p7 }
  0xb6   : > { %p3809_p11 = pneg %p3808_p3 }
  0xb8   : > { %p3814_p13 = pnand %p3812_p12, %p3809_p11 }
  0xba   : > { %3817 = shalt.err (!%p3814_p13)
}
  0xbb   : > { %s3818_s1 = scalar_lea.vmem %s4180_s21, 256  ;;  %p3826_p6 = scmp.lt.s32.totalorder %s4180_s21, %s4180_s21 }
  0xbc   : > { %p3819_p0 = scmp.ne.s32.totalorder %s4180_s21, %s3818_s1  ;;  %p3827_p8 = scmp.lt.s32.totalorder %s3818_s1, %s3818_s1 }
  0xbe   : > { %p3821_p2 = pnand %p3819_p0, %p4048_p7  ;;  %p3828_p9 = por %p3827_p8, %p3826_p6 }
  0xc0   : > { %p3822_p4 = pneg %p3821_p2 }
  0xc2   : > { %p3829_p10 = pnand %p3828_p9, %p3822_p4 }
  0xc4   : > { %3832 = shalt.err (!%p3829_p10)
}
  0xc5   : > { %3400 = dma.hbm_to_vmem [thread:$0]  (!%p4032_p5), %s4657_s9, 256, %s4180_s21, [#allocation14], %s3925_s27, %s3925_s27, %s3926_s12  }
  0xc6   : > { %s4230_s25 = sadd.s32 1, %s3913_s20   ;;  %s35_s16 = sadd.s32 1, %s3909_s19 }
  0xc7   : > { %s32_s30 = ssub.s32 %s3913_s20, %s4230_s25  ;;  %p42_p7 = scmp.ne.s32.totalorder %s3909_s19, %s3905_s18 }
  0xc8   : > { %p33_p1 = scmp.eq.s32.totalorder %s32_s30, 0  ;;  %p43_p3 = scmp.eq.s32.totalorder %s3913_s20, 0 }
  0xc9   : > { %p48_p11 = scmp.ne.s32.totalorder %s3905_s18, %s3901_s17  ;;  %p3413_p12 = scmp.lt.s32.totalorder %s3913_s20, 2 }
  0xca   : > { %s4242_s15 = scalar_select %p33_p1, %s3909_s19, %s35_s16  }
  0xcb   : > { %p44_p13 = por %p43_p3, %p42_p7  ;;  %p4672_p0 = scmp.eq.s32.totalorder %s4017_s23, 0 }
  0xcc   : > { %s420_s28 = sand.u32 1, %s3909_s19   ;;  %s2888_s27 = sshll.u32 %s3913_s20, 7 }
  0xcd   : > { %p4246_p2 = por %p4672_p0, %p48_p11  ;;  %s2887_s12 = sshll.u32 %s420_s28, 3 }
  0xce   : > { %s4255_s14 = scalar_lea.hbm %s4648_s0, %s2888_s27  ;;  %s424_s17 = scalar_lea.vmem [#allocation2], %s2887_s12 }
  0xcf   : > { %s431_s29 = sshll.u32 %s424_s17, 4  ;;  %p4257_p5 = pnand %p3413_p12, %p44_p13  ;;  %s4261_s29 = int_to_ptr.vmem [resolvable:$true] %s431_s29 }
  0xd0   : > { %s421_s20 = scalar_lea.sflag [#allocation3], %s420_s28  ;;  %s3833_s2 = scalar_lea.hbm %s4255_s14, 128 }
  0xd1   : > { %p3834_p4 = scmp.ne.s32.totalorder %s4255_s14, %s3833_s2  ;;  %p3835_p6 = pneg %p4257_p5 }
  0xd2   : > { %s3838_s10 = scalar_lea.hbm %s4648_s0, 256  ;;  %p3839_p10 = scmp.lt.u32.totalorder %s4255_s14, %s4648_s0 }
  0xd3   : > { %p3836_p8 = pnand %p3835_p6, %p3834_p4  ;;  %p3840_p7 = scmp.lt.u32.totalorder %s3838_s10, %s3833_s2 }
  0xd4   : > { %p3842_p3 = scmp.lt.u32.totalorder %s3833_s2, %s4255_s14 }
  0xd5   : > { %p3837_p9 = pneg %p3836_p8  ;;  %p3841_p1 = por %p3840_p7, %p3839_p10 }
  0xd7   : > { %p3843_p11 = por %p3842_p3, %p3841_p1 }
  0xd9   : > { %p3844_p12 = pnand %p3843_p11, %p3837_p9 }
  0xdb   : > { %3847 = shalt.err (!%p3844_p12)
}
  0xdc   : > { %s3848_s28 = scalar_lea.vmem %s4261_s29, 128  ;;  %s3929_s27 = smov [#allocation2]  }
  0xdd   : > { %p3849_p13 = scmp.ne.s32.totalorder %s4261_s29, %s3848_s28  ;;  %s3853_s12 = sshll.u32 %s3929_s27, 4  ;;  %s3854_s12 = int_to_ptr.vmem [resolvable:$false] %s3853_s12 }
  0xde   : > { %s3855_s21 = scalar_lea.vmem %s3854_s12, 256  ;;  %p3856_p8 = scmp.lt.s32.totalorder %s4261_s29, %s3854_s12 }
  0xdf   : > { %p3851_p0 = pnand %p3849_p13, %p3835_p6  ;;  %p3857_p10 = scmp.lt.s32.totalorder %s3855_s21, %s3848_s28 }
  0xe1   : > { %p3852_p4 = pneg %p3851_p0  ;;  %p3858_p7 = por %p3857_p10, %p3856_p8 }
  0xe3   : > { %p3859_p1 = pnand %p3858_p7, %p3852_p4 }
  0xe5   : > { %3862 = shalt.err (!%p3859_p1)
}
  0xe6   : > { %3404 = dma.hbm_to_vmem [thread:$0]  (!%p4257_p5), %s4255_s14, 128, %s4261_s29, %s421_s20  }
  0xe7   : > { %p4675_p9 = scmp.ne.s32.totalorder %s4667_s24, 0 }
  0xe8   : > { %s450_s22 = sand.u32 (!%p4675_p9), 1, %s3905_s18  }
  0xe9   : > { %448 = sbr.rel (%p4675_p9) target bundleno = 6824 (0x1aa8), region = 64  ;;  %s4291_s17 = sshll.u32 (!%p4675_p9), %s450_s22, 3 }
  0xea   : > { %s451_s2 = scalar_lea.sflag (!%p4675_p9), [#allocation3], %s450_s22  ;;  %s454_s1 = scalar_lea.vmem (!%p4675_p9), [#allocation2], %s4291_s17 }
  0xf0   : > { %3880 = dma.done.wait (%p4246_p2), %s451_s2, 128  }
  0xf1   : > { %3882 = vsyncadd (%p4246_p2), %s451_s2, 4294967168  ;;  %p4676_p6 = scmp.eq.s32.totalorder %s4017_s23, 0 }
  0xf3   : > { %3884 = dma.done.wait (%p4676_p6), [#allocation5], 4096   ;;  %p4677_p5 = pmov %p4676_p6 }
  0xf5   : > { %3886 = vsyncadd (%p4677_p5), [#allocation5], 4294963200  ;;  %p4678_p3 = pmov %p4677_p5 }
  0xf7   : > { %3888 = dma.done.wait (%p4678_p3), [#allocation8], 3072   ;;  %p4679_p11 = pmov %p4678_p3 }
  0xf8   : > { %p4680_p12 = pmov %p4678_p3 }
  0xf9   : > { %3890 = vsyncadd (%p4679_p11), [#allocation8], 4294964224 }
  0xfa   : > { %3892 = dma.done.wait (%p4680_p12), [#allocation11], 2048   ;;  %p4681_p13 = pmov %p4678_p3 }
  0xfb   : > { %p4682_p2 = pmov %p4678_p3 }
  0xfc   : > { %3894 = vsyncadd (%p4681_p13), [#allocation11], 4294965248 }
  0xfd   : > { %3896 = dma.done.wait (%p4682_p2), [#allocation14], 1280   ;;  %p4683_p0 = pmov %p4682_p2 }
  0xfe   : > { %v3930_v0 = vmov 0   ;;  %v3474_v1 = vld [vmem:[#allocation4 + $0x4] ss:$12 sps:$4 sm:$0xff]   ;;  %v3476_v2 = vld [vmem:[#allocation4] ss:$12 sps:$4 sm:$0xff]   ;;  %v3931_v19 = vmov 0.0   ;;  %v786_v20 = vlaneseq }
  0xff   : > { %3898 = vsyncadd (%p4683_p0), [#allocation14], 4294966016  ;;  %737 = vmatprep.mubr.bf16.mxu0 %v3930_v0  ;;  %705 = vmatprep.subr.bf16.mxu0 %v3474_v1  ;;  %v3477_v3 = vld [vmem:[#allocation4 + $0x1c] ss:$12 sps:$4 sm:$0xff]   ;;  %v3479_v4 = vld [vmem:[#allocation4 + $0x18] ss:$12 sps:$4 sm:$0xff]  }
 0x100   : > { %706 = vmatpush1.bf16.msra.mxu0 %v3476_v2  ;;  %v3480_v5 = vld [vmem:[#allocation4 + $0x34] ss:$12 sps:$4 sm:$0xff]   ;;  %v3482_v6 = vld [vmem:[#allocation4 + $0x30] ss:$12 sps:$4 sm:$0xff]   ;;  %v3483_v7 = vld [vmem:[#allocation4 + $0x4c] ss:$12 sps:$4 sm:$0xff]   ;;  %3102 = vmatprep.subr.bf16.mxu1 %v3931_v19 }
 0x101   : > { %707 = vmatprep.subr.bf16.mxu0 %v3477_v3  ;;  %v3485_v8 = vld [vmem:[#allocation4 + $0x48] ss:$12 sps:$4 sm:$0xff]   ;;  %v3486_v9 = vld [vmem:[#allocation4 + $0x64] ss:$12 sps:$4 sm:$0xff]   ;;  %v3488_v10 = vld [vmem:[#allocation4 + $0x60] ss:$12 sps:$4 sm:$0xff]  }
 0x102   : > { %v3489_v11 = vld [vmem:[#allocation4 + $0x7c] ss:$12 sps:$4 sm:$0xff]   ;;  %v3491_v12 = vld [vmem:[#allocation4 + $0x78] ss:$12 sps:$4 sm:$0xff]   ;;  %v3492_v13 = vld [vmem:[#allocation4 + $0x94] ss:$12 sps:$4 sm:$0xff]  }
 0x103   : > { %v3494_v14 = vld [vmem:[#allocation4 + $0x90] ss:$12 sps:$4 sm:$0xff]   ;;  %v3495_v15 = vld [vmem:[#allocation4 + $0xac] ss:$12 sps:$4 sm:$0xff]   ;;  %v3497_v16 = vld [vmem:[#allocation4 + $0xa8] ss:$12 sps:$4 sm:$0xff]  }
 0x104   : > { %708 = vmatpush1.bf16.msra.mxu0 %v3479_v4  ;;  %v4317_v17 = vld [vmem:[%s454_s1] sm:$0xff]  ;;  %vm3932_vm0 = vmmov 0   ;;  %v4330_v21 = vshrl.u32 %v786_v20, 7  ;;  %v4333_v23 = vld [vmem:[#allocation15] sm:$0xff]  ;;  %vm821_vm1 = vcmask 261120   ;;  %s3933_s24 = smov 96  }
 0x105   : > { %709 = vmatprep.subr.bf16.mxu0 %v3480_v5  ;;  %v4321_v18 = vpack.c.bf16 %v4317_v17, %v4317_v17  ;;  %3118 = vmatprep.mubr.msk.bf16.mxu1 %vm3932_vm0, %v3931_v19  ;;  %v3498_v37 = vld [vmem:[#allocation4 + $0x8] ss:$12 sps:$4 sm:$0xff]   ;;  %v3499_v38 = vld [vmem:[#allocation4 + $0x20] ss:$12 sps:$4 sm:$0xff]   ;;  %v3500_v39 = vld [vmem:[#allocation4 + $0x38] ss:$12 sps:$4 sm:$0xff]  }
 0x106   : > { %v788_v22 = vsub.s32 0, %v4330_v21  ;;  %v794_v24 = vsub.s32 1, %v4330_v21  ;;  %3103 = vmatpush3.bf16.msra.mxu1 %v3498_v37  ;;  %v3501_v40 = vld [vmem:[#allocation4 + $0x50] ss:$12 sps:$4 sm:$0xff]   ;;  %v3502_v41 = vld [vmem:[#allocation4 + $0x68] ss:$12 sps:$4 sm:$0xff]  }
 0x107   : > { %3104 = vmatprep.subr.bf16.mxu1 %v3931_v19  ;;  %v3503_v42 = vld [vmem:[#allocation4 + $0x80] ss:$12 sps:$4 sm:$0xff]   ;;  %v3504_v45 = vld [vmem:[#allocation4 + $0x98] ss:$12 sps:$4 sm:$0xff]   ;;  %v3505_v46 = vld [vmem:[#allocation4 + $0xb0] ss:$12 sps:$4 sm:$0xff]  }
 0x108   : > { %710 = vmatpush1.bf16.msra.mxu0 %v3482_v6  ;;  %v789_v25 = vrot.slane %v4333_v23, %v788_v22  ;;  %v795_v26 = vrot.slane %v4333_v23, %v794_v24  ;;  %vm868_vm2 = vcmask 64512   ;;  %v799_v4 = vsub.s32 2, %v4330_v21  ;;  %s3934_s26 = smov 64   ;;  %v3508_v20 = vld [vmem:[#allocation6 + $0x10] sm:$0xff]   ;;  %s3935_s14 = smov 32  }
 0x109   : > { %711 = vmatprep.subr.bf16.mxu0 %v3483_v7  ;;  %vm884_vm3 = vcmask 1043456   ;;  %p529_p4 = scmp.lt.s32.totalorder %s4017_s23, 1  ;;  %s4684_s13 = sld [smem:[#allocation21_spill]]  ;;  %vm1842_vm4 = vcmask 130048  }
 0x10a   : > { %3105 = vmatpush3.bf16.msra.mxu1 %v3499_v38  ;;  %v800_v5 = vrot.slane %v4333_v23, %v799_v4  ;;  %s4685_s28 = sld [smem:[#allocation23_spill]]  ;;  %s4686_s22 = sld [smem:[#allocation24_spill]] }
 0x10b   : > { %3106 = vmatprep.subr.bf16.mxu1 %v3931_v19  ;;  %s4692_s23 = smov (!%p529_p4, %s4017_s23), 1 }
 0x10c   : > { %712 = vmatpush1.bf16.msra.mxu0 %v3485_v8  ;;  %s3009_s29 = sshll.u32 %s4692_s23, 4  ;;  %s2901_s27 = sshll.u32 %s4692_s23, 3 }
 0x10d   : > { %713 = vmatprep.subr.bf16.mxu0 %v3486_v9 }
 0x10e   : > { %3107 = vmatpush3.bf16.msra.mxu1 %v3500_v39 }
 0x10f   : > { %3108 = vmatprep.subr.bf16.mxu1 %v3931_v19  ;;  %s533_s10 = scalar_lea.vmem %s4684_s13, %s3009_s29 }
 0x110   : > { %714 = vmatpush1.bf16.msra.mxu0 %v3488_v10  ;;  %s537_s17 = scalar_lea.vmem %s4686_s22, %s2901_s27 }
 0x111   : > { %715 = vmatprep.subr.bf16.mxu0 %v3489_v11 }
 0x112   : > { %3109 = vmatpush3.bf16.msra.mxu1 %v3501_v40 }
 0x113   : > { %3110 = vmatprep.subr.bf16.mxu1 %v3931_v19 }
 0x114   : > { %716 = vmatpush1.bf16.msra.mxu0 %v3491_v12 }
 0x115   : > { %717 = vmatprep.subr.bf16.mxu0 %v3492_v13 }
 0x116   : > { %3111 = vmatpush3.bf16.msra.mxu1 %v3502_v41 }
 0x117   : > { %3112 = vmatprep.subr.bf16.mxu1 %v3931_v19 }
 0x118   : > { %718 = vmatpush1.bf16.msra.mxu0 %v3494_v14 }
 0x119   : > { %719 = vmatprep.subr.bf16.mxu0 %v3495_v15 }
 0x11a   : > { %3113 = vmatpush3.bf16.msra.mxu1 %v3503_v42 }
 0x11b   : > { %3114 = vmatprep.subr.bf16.mxu1 %v3931_v19 }
 0x11c   : > { %720 = vmatpush1.bf16.msra.mxu0 %v3497_v16 }
 0x11d   : > { %3122 = vmatprep.subr.bf16.mxu0 %v3931_v19 }
 0x11e   : > { %3115 = vmatpush3.bf16.msra.mxu1 %v3504_v45 }
 0x11f   : > { %738 = vmatmul.mubr.bf16.vlgmr.msra.gmra.mrb[0].mxu0 %v4321_v18  ;;  %3116 = vmatprep.subr.bf16.mxu1 %v3931_v19 }
 0x120   : > { %3124 = vmatprep.mubr.msk.bf16.mxu0 %vm3932_vm0, %v3931_v19 }
 0x122   : > { %3117 = vmatpush3.bf16.msra.mxu1 %v3505_v46 }
 0x123   : > { %3128 = vmatprep.subr.bf16.mxu1 %v3931_v19 }
 0x125   : > { %3119 = vmatmul.mubr.bf16.vlgmr.msra.gmra.mrb[0].mxu1 %v4321_v18 }
 0x126   : > { %3130 = vmatprep.mubr.msk.bf16.mxu1 %vm3932_vm0, %v3931_v19 }
 0x1f2   : > { %v739_v27 = vpop.f32.mrb[0].mxu0 }
 0x1f3   : > { %v790_v28 = vadd.f32 %v789_v25, %v739_v27  ;;  %v741_v29 = vpop.f32.mrb[1].mxu0  ;;  %v3509_v25 = vld [vmem:[#allocation6 + $0x18] sm:$0xff]  }
 0x1f4   : > { %v796_v30 = vadd.f32 %v795_v26, %v741_v29  ;;  %v743_v31 = vpop.f32.mrb[2].mxu0 }
 0x1f5   : > { %v744_v32 = vpop.f32.mrb[3].mxu0  ;;  %v791_v33 = vmul.f32 0.17677669, %v790_v28  ;;  %v3506_v31 = vld [vmem:[#allocation6] sm:$0xff]  }
 0x1f6   : > { %v4342_v34 = vpack.c.bf16 %v796_v30, %v796_v30 }
 0x1f7   : > { %v4348_v36 = vpack.c.bf16 %v791_v33, %v791_v33  ;;  %v3507_v33 = vld [vmem:[#allocation6 + $0x8] sm:$0xff]  }
 0x1f8   : > { %933 = vrot.lane.b32.xlu0 %v4342_v34, %s3933_s24  ;;  %v826_v35 = vsel %vm821_vm1, %v4342_v34, 0  ;;  %v780_v61 = vpop.f32.mrb[0].mxu1 }
 0x1f9   : > { %3123 = vmatpush3.bf16.xpose.msra.mxu0 %v826_v35  ;;  %v3120_v62 = vpop.f32.mrb[1].mxu1  ;;  %v801_v6 = vadd.f32 %v800_v5, %v780_v61 }
 0x1fa   : > { %3134 = vmatprep.subr.bf16.mxu0 %v3931_v19  ;;  %v783_v63 = vpop.f32.mrb[2].mxu1 }
 0x1fb   : > { %v3121_v1 = vpop.f32.mrb[3].mxu1  ;;  %v4380_v7 = vpack.c.bf16 %v801_v6, %v801_v6 }
 0x1fc   : > { %930 = vrot.lane.b32.xlu0 %v4348_v36, %s3933_s24 }
 0x1fd   : > { %v886_v8 = vsel %vm884_vm3, %v4380_v7, 0 }
 0x1fe   : > { %3129 = vmatpush3.bf16.msra.mxu1 %v886_v8 }
 0x1ff   : > { %3140 = vmatprep.subr.bf16.mxu1 %v3931_v19 }
 0x200   : > { %3125 = vmatmul.mubr.msk.bf16.vlgmr.msra.gmra.mrb[4].mxu0 %vm821_vm1, %v4348_v36 }
 0x201   : > { %3136 = vmatprep.mubr.msk.bf16.mxu0 %vm3932_vm0, %v3931_v19 }
 0x26a   : > { %v934_v43 = vpop.permute.xlu0 %933 }
 0x26b   : > { %v939_v44 = vsel %vm821_vm1, %v934_v43, 0 }
 0x26c   : > { %3135 = vmatpush3.bf16.xpose.msra.mxu0 %v939_v44 }
 0x26d   : > { %3146 = vmatprep.subr.bf16.mxu0 %v3931_v19 }
 0x26e   : > { %v931_v47 = vpop.permute.xlu0 %930 }
 0x273   : > { %3137 = vmatmul.mubr.msk.bf16.vlgmr.msra.gmra.mrb[8].mxu0 %vm821_vm1, %v931_v47 }
 0x274   : > { %3150 = vmatprep.mubr.msk.bf16.mxu0 %vm3932_vm0, %v3931_v19  ;;  %3147 = vmatpush3.bf16.msra.mxu0 %v3508_v20 }
 0x275   : > { %3148 = vmatprep.subr.bf16.mxu0 %v3931_v19 }
 0x278   : > { %3149 = vmatpush3.bf16.msra.mxu0 %v3509_v25 }
 0x279   : > { %3162 = vmatprep.subr.bf16.mxu0 %v3931_v19 }
 0x2d3   : > { %v862_v48 = vpop.f32.mrb[4].mxu0 }
 0x2d4   : > { %v3126_v49 = vpop.f32.mrb[5].mxu0  ;;  %v869_v50 = vsel %vm868_vm2, %v862_v48, -inf }
 0x2d5   : > { %870 = vmax.xlane.f32.xlu1 %v869_v50  ;;  %v865_v51 = vpop.f32.mrb[6].mxu0 }
 0x2d6   : > { %v3127_v52 = vpop.f32.mrb[7].mxu0 }
 0x346   : > { %v975_v53 = vpop.f32.mrb[8].mxu0 }
 0x347   : > { %v3138_v54 = vpop.f32.mrb[9].mxu0  ;;  %v981_v55 = vsel %vm868_vm2, %v975_v53, -inf }
 0x348   : > { %982 = vmax.xlane.f32.xlu1 %v981_v55  ;;  %v978_v56 = vpop.f32.mrb[10].mxu0 }
 0x349   : > { %v3139_v57 = vpop.f32.mrb[11].mxu0 }
 0x362   : > { %v871_v58 = vpop.xlane.xlu1 %870 }
 0x363   : > { %v872_v59 = vsub.f32 %v862_v48, %v871_v58 }
 0x365   : > { %v873_v60 = vmul.f32 1.442695, %v872_v59 }
 0x367   : > { %3570 = vpow2.f32 %v873_v60 }
 0x371   : > { %v3571_v2 = vpop.eup %3570 }
 0x372   : > { %v875_v3 = vsel %vm868_vm2, %v3571_v2, 0.0 }
 0x373   : > { %876 = vadd.xlane.f32.xlu0 %v875_v3 }
 0x389   : > { %1215 = vrot.lane.b32.xlu0 %v4380_v7, %s3934_s26 }
 0x3d5   : > { %v983_v9 = vpop.xlane.xlu1 %982 }
 0x3d6   : > { %v984_v10 = vsub.f32 %v975_v53, %v983_v9  ;;  %v3510_v9 = vld [vmem:[#allocation6 + $0x20] sm:$0xff]  }
 0x3d8   : > { %v985_v11 = vmul.f32 1.442695, %v984_v10 }
 0x3da   : > { %3572 = vpow2.f32 %v985_v11 }
 0x3e4   : > { %v3573_v12 = vpop.eup %3572 }
 0x3e5   : > { %v987_v13 = vsel %vm868_vm2, %v3573_v12, 0.0 }
 0x3e6   : > { %988 = vadd.xlane.f32.xlu1 %v987_v13 }
 0x3f7   : > { %994 = vrot.lane.b32.xlu1 %v4380_v7, %s3933_s24 }
 0x3fb   : > { %1155 = vrot.lane.b32.xlu1 %v4342_v34, %s3934_s26 }
 0x3ff   : > { %1153 = vrot.lane.b32.xlu1 %v4348_v36, %s3934_s26 }
 0x400   : > { %v877_v14 = vpop.xlane.xlu0 %876 }
 0x401   : > { %3574 = vrcp.f32 %v877_v14 }
 0x404   : > { %v1216_v35 = vpop.permute.xlu0 %1215 }
 0x405   : > { %v1221_v41 = vsel %vm884_vm3, %v1216_v35, 0 }
 0x40b   : > { %v3575_v15 = vpop.eup %3574 }
 0x40c   : > { %v879_v16 = vmul.f32 %v3575_v15, %v3571_v2 }
 0x40e   : > { %v880_v18 = vpack.c.bf16 %v879_v16, %v879_v16 }
 0x410   : > { %3131 = vmatmul.mubr.msk.bf16.vlgmr.msra.gmra.mrb[4].mxu1 %vm868_vm2, %v880_v18 }
 0x411   : > { %3142 = vmatprep.mubr.msk.bf16.mxu1 %vm3932_vm0, %v3931_v19 }
 0x473   : > { %v989_v26 = vpop.xlane.xlu1 %988 }
 0x474   : > { %3576 = vrcp.f32 %v989_v26 }
 0x477   : > { %v995_v27 = vpop.permute.xlu1 %994 }
 0x478   : > { %v1000_v28 = vsel %vm884_vm3, %v995_v27, 0 }
 0x479   : > { %3141 = vmatpush3.bf16.msra.mxu1 %v1000_v28 }
 0x47a   : > { %3154 = vmatprep.subr.bf16.mxu1 %v3931_v19 }
 0x47b   : > { %v1156_v43 = vpop.permute.xlu1 %1155 }
 0x47c   : > { %v1161_v48 = vsel %vm821_vm1, %v1156_v43, 0 }
 0x47e   : > { %v3577_v29 = vpop.eup %3576 }
 0x47f   : > { %v991_v30 = vmul.f32 %v3577_v29, %v3573_v12  ;;  %v1154_v50 = vpop.permute.xlu1 %1153 }
 0x481   : > { %v992_v32 = vpack.c.bf16 %v991_v30, %v991_v30 }
 0x483   : > { %3143 = vmatmul.mubr.msk.bf16.vlgmr.msra.gmra.mrb[8].mxu1 %vm868_vm2, %v992_v32 }
 0x484   : > { %3155 = vmatpush3.bf16.msra.mxu1 %v3506_v31  ;;  %3158 = vmatprep.mubr.msk.bf16.mxu1 %vm3932_vm0, %v3931_v19 }
 0x485   : > { %3156 = vmatprep.subr.bf16.mxu1 %v3931_v19 }
 0x488   : > { %3157 = vmatpush3.bf16.msra.mxu1 %v3507_v33 }
 0x489   : > { %3168 = vmatprep.subr.bf16.mxu1 %v3931_v19 }
 0x4e3   : > { %v922_v37 = vpop.f32.mrb[4].mxu1 }
 0x4e4   : > { %v928_v38 = vpack.c.bf16 %v922_v37, %v922_v37  ;;  %v3132_v39 = vpop.f32.mrb[5].mxu1 }
 0x4e5   : > { %v925_v40 = vpop.f32.mrb[6].mxu1  ;;  %v3512_v39 = vld [vmem:[#allocation6 + $0x30] sm:$0xff]  }
 0x4e6   : > { %v3133_v42 = vpop.f32.mrb[7].mxu1  ;;  %3159 = vmatmul.mubr.msk.bf16.vlgmr.msra.gmra.mrb[12].mxu1 %vm821_vm1, %v928_v38 }
 0x4e7   : > { %3169 = vmatpush3.bf16.msra.mxu1 %v1221_v41  ;;  %3170 = vmatprep.mubr.msk.bf16.mxu1 %vm3932_vm0, %v3931_v19 }
 0x4e8   : > { %3182 = vmatprep.subr.bf16.mxu1 %v3931_v19 }
 0x556   : > { %v1036_v44 = vpop.f32.mrb[8].mxu1 }
 0x557   : > { %v1042_v45 = vpack.c.bf16 %v1036_v44, %v1036_v44  ;;  %v3144_v46 = vpop.f32.mrb[9].mxu1 }
 0x558   : > { %v1039_v47 = vpop.f32.mrb[10].mxu1 }
 0x559   : > { %v3145_v49 = vpop.f32.mrb[11].mxu1  ;;  %3151 = vmatmul.mubr.msk.bf16.vlgmr.msra.gmra.mrb[12].mxu0 %vm821_vm1, %v1042_v45 }
 0x55a   : > { %3163 = vmatpush3.bf16.xpose.msra.mxu0 %v1161_v48  ;;  %3164 = vmatprep.mubr.msk.bf16.mxu0 %vm3932_vm0, %v3931_v19 }
 0x55b   : > { %3174 = vmatprep.subr.bf16.mxu0 %v3931_v19 }
 0x561   : > { %3165 = vmatmul.mubr.msk.bf16.vlgmr.msra.gmra.mrb[16].mxu0 %vm821_vm1, %v1154_v50  ;;  %v3513_v50 = vld [vmem:[#allocation6 + $0x38] sm:$0xff]  }
 0x562   : > { %3178 = vmatprep.mubr.msk.bf16.mxu0 %vm3932_vm0, %v3931_v19  ;;  %3175 = vmatpush3.bf16.msra.mxu0 %v3510_v9  ;;  %v3527_v9 = vld [vmem:[#allocation7 + $0x8] sm:$0xff]  }
 0x563   : > { %3176 = vmatprep.subr.bf16.mxu0 %v3931_v19 }
 0x5b9   : > { %v1147_v51 = vpop.f32.mrb[12].mxu1 }
 0x5ba   : > { %v3160_v52 = vpop.f32.mrb[13].mxu1 }
 0x5bb   : > { %v1150_v53 = vpop.f32.mrb[14].mxu1 }
 0x5bc   : > { %v3161_v54 = vpop.f32.mrb[15].mxu1 }
 0x62c   : > { %v1092_v55 = vpop.f32.mrb[12].mxu0 }
 0x62d   : > { %v4419_v56 = vadd.f32 %v1147_v51, %v1092_v55  ;;  %v3152_v57 = vpop.f32.mrb[13].mxu0 }
 0x62e   : > { %v1095_v58 = vpop.f32.mrb[14].mxu0 }
 0x62f   : > { %v3153_v59 = vpop.f32.mrb[15].mxu0 }
 0x634   : > { %v1197_v60 = vpop.f32.mrb[16].mxu0 }
 0x635   : > { %v3166_v61 = vpop.f32.mrb[17].mxu0  ;;  %v1203_v62 = vsel %vm868_vm2, %v1197_v60, -inf }
 0x636   : > { %1204 = vmax.xlane.f32.xlu1 %v1203_v62  ;;  %v1200_v63 = vpop.f32.mrb[18].mxu0 }
 0x637   : > { %v3167_v1 = vpop.f32.mrb[19].mxu0 }
 0x6c3   : > { %v1205_v2 = vpop.xlane.xlu1 %1204 }
 0x6c4   : > { %v1206_v3 = vsub.f32 %v1197_v60, %v1205_v2  ;;  %v3514_v2 = vld [vmem:[#allocation9] ss:$8 sps:$4 sm:$0xff]  }
 0x6c6   : > { %v1207_v5 = vmul.f32 1.442695, %v1206_v3  ;;  %v3516_v3 = vld [vmem:[#allocation9 + $0x4] ss:$8 sps:$4 sm:$0xff]  }
 0x6c8   : > { %3578 = vpow2.f32 %v1207_v5  ;;  %v3519_v5 = vld [vmem:[#allocation9 + $0x14] ss:$8 sps:$4 sm:$0xff]  }
 0x6d2   : > { %v3579_v6 = vpop.eup %3578 }
 0x6d3   : > { %v1209_v8 = vsel %vm868_vm2, %v3579_v6, 0.0 }
 0x6d4   : > { %1210 = vadd.xlane.f32.xlu0 %v1209_v8  ;;  %v3522_v8 = vld [vmem:[#allocation9 + $0x24] ss:$8 sps:$4 sm:$0xff]  }
 0x6ea   : > { %1322 = vrot.lane.b32.xlu0 %v4342_v34, %s3935_s14 }
 0x6ee   : > { %1320 = vrot.lane.b32.xlu0 %v4348_v36, %s3935_s14  ;;  %v3511_v36 = vld [vmem:[#allocation6 + $0x28] sm:$0xff]  }
 0x6ef   : > { %3177 = vmatpush3.bf16.msra.mxu0 %v3511_v36 }
 0x6f0   : > { %3188 = vmatprep.subr.bf16.mxu0 %v3931_v19 }
 0x761   : > { %v1211_v10 = vpop.xlane.xlu0 %1210 }
 0x762   : > { %3580 = vrcp.f32 %v1211_v10  ;;  %v3520_v10 = vld [vmem:[#allocation9 + $0x20] ss:$8 sps:$4 sm:$0xff]  }
 0x765   : > { %v1323_v13 = vpop.permute.xlu0 %1322 }
 0x766   : > { %v1328_v15 = vsel %vm821_vm1, %v1323_v13, 0  ;;  %v3528_v13 = vld [vmem:[#allocation9 + $0x40] ss:$8 sps:$4 sm:$0xff]  }
 0x769   : > { %v1321_v34 = vpop.permute.xlu0 %1320 }
 0x76c   : > { %v3581_v11 = vpop.eup %3580 }
 0x76d   : > { %v1213_v12 = vmul.f32 %v3581_v11, %v3579_v6  ;;  %v3517_v6 = vld [vmem:[#allocation9 + $0x10] ss:$8 sps:$4 sm:$0xff]   ;;  %v3526_v11 = vld [vmem:[#allocation9 + $0x34] ss:$8 sps:$4 sm:$0xff]  }
 0x76f   : > { %v1214_v14 = vpack.c.bf16 %v1213_v12, %v1213_v12  ;;  %v3530_v12 = vld [vmem:[#allocation9 + $0x44] ss:$8 sps:$4 sm:$0xff]  }
 0x771   : > { %3171 = vmatmul.mubr.msk.bf16.vlgmr.msra.gmra.mrb[16].mxu1 %vm868_vm2, %v1214_v14 }
 0x772   : > { %3183 = vmatpush3.bf16.xpose.msra.mxu1 %v1328_v15  ;;  %3184 = vmatprep.mubr.msk.bf16.mxu1 %vm3932_vm0, %v3931_v19 }
 0x773   : > { %3194 = vmatprep.subr.bf16.mxu1 %v3931_v19 }
 0x779   : > { %3185 = vmatmul.mubr.msk.bf16.vlgmr.msra.gmra.mrb[20].mxu1 %vm821_vm1, %v1321_v34 }
 0x77a   : > { %3198 = vmatprep.mubr.msk.bf16.mxu1 %vm3932_vm0, %v3931_v19  ;;  %3195 = vmatpush3.bf16.msra.mxu1 %v3512_v39 }
 0x77b   : > { %3196 = vmatprep.subr.bf16.mxu1 %v3931_v19 }
 0x77e   : > { %3197 = vmatpush3.bf16.msra.mxu1 %v3513_v50 }
 0x77f   : > { %1722 = vmatprep.subr.bf16.mxu1 %v3516_v3 }
 0x844   : > { %v1257_v16 = vpop.f32.mrb[16].mxu1 }
 0x845   : > { %v1263_v18 = vpack.c.bf16 %v1257_v16, %v1257_v16  ;;  %v3172_v20 = vpop.f32.mrb[17].mxu1  ;;  %v3531_v16 = vld [vmem:[#allocation7 + $0x10] sm:$0xff]  }
 0x846   : > { %v1260_v25 = vpop.f32.mrb[18].mxu1  ;;  %v3532_v20 = vld [vmem:[#allocation9 + $0x50] ss:$8 sps:$4 sm:$0xff]  }
 0x847   : > { %v3173_v26 = vpop.f32.mrb[19].mxu1  ;;  %3179 = vmatmul.mubr.msk.bf16.vlgmr.msra.gmra.mrb[20].mxu0 %vm821_vm1, %v1263_v18  ;;  %v3534_v18 = vld [vmem:[#allocation9 + $0x54] ss:$8 sps:$4 sm:$0xff]  }
 0x848   : > { %3190 = vmatprep.mubr.msk.bf16.mxu0 %vm3932_vm0, %v3931_v19  ;;  %v3535_v25 = vld [vmem:[#allocation7 + $0x18] sm:$0xff]   ;;  %v3538_v26 = vld [vmem:[#allocation9 + $0x64] ss:$8 sps:$4 sm:$0xff]  }
 0x84c   : > { %v1364_v27 = vpop.f32.mrb[20].mxu1 }
 0x84d   : > { %v3186_v28 = vpop.f32.mrb[21].mxu1  ;;  %v1370_v29 = vsel %vm868_vm2, %v1364_v27, -inf }
 0x84e   : > { %1371 = vmax.xlane.f32.xlu0 %v1370_v29  ;;  %v1367_v30 = vpop.f32.mrb[22].mxu1  ;;  %v3539_v28 = vld [vmem:[#allocation7 + $0x20] sm:$0xff]   ;;  %v3542_v29 = vld [vmem:[#allocation9 + $0x74] ss:$8 sps:$4 sm:$0xff]  }
 0x84f   : > { %v3187_v31 = vpop.f32.mrb[23].mxu1  ;;  %v3540_v30 = vld [vmem:[#allocation9 + $0x70] ss:$8 sps:$4 sm:$0xff]  }
 0x850   : > { %v540_v31 = vld [vmem:[%s533_s10] sm:$0xff] }
 0x8db   : > { %v1372_v32 = vpop.xlane.xlu0 %1371 }
 0x8dc   : > { %v1373_v33 = vsub.f32 %v1364_v27, %v1372_v32  ;;  %v3536_v27 = vld [vmem:[#allocation9 + $0x60] ss:$8 sps:$4 sm:$0xff]   ;;  %v541_v32 = vld [vmem:[%s533_s10 + $0x8] sm:$0xff] }
 0x8de   : > { %v1374_v35 = vmul.f32 1.442695, %v1373_v33  ;;  %v3543_v33 = vld [vmem:[#allocation7 + $0x28] sm:$0xff]  }
 0x8e0   : > { %3582 = vpow2.f32 %v1374_v35  ;;  %v1641_v35 = vpack.c.bf16 %v541_v32, %v540_v31 }
 0x8ea   : > { %v3583_v37 = vpop.eup %3582 }
 0x8eb   : > { %v1376_v38 = vsel %vm868_vm2, %v3583_v37, 0.0 }
 0x8ec   : > { %1377 = vadd.xlane.f32.xlu1 %v1376_v38  ;;  %v3545_v38 = vld [vmem:[#allocation7 + $0x38] sm:$0xff]  }
 0x8fd   : > { %1382 = vrot.lane.b32.xlu1 %v4380_v7, %s3935_s14 }
 0x91a   : > { %v1313_v40 = vpop.f32.mrb[20].mxu0 }
 0x91b   : > { %v1319_v41 = vadd.f32 %v1313_v40, %v4419_v56  ;;  %v3180_v42 = vpop.f32.mrb[21].mxu0  ;;  %v1489_v56 = vsub.s32 6, %v4330_v21 }
 0x91c   : > { %v1316_v43 = vpop.f32.mrb[22].mxu0  ;;  %v4477_v42 = vld [vmem:[#allocation15 + $0x8] sm:$0xff] }
 0x91d   : > { %v3181_v44 = vpop.f32.mrb[23].mxu0  ;;  %v1490_v57 = vrot.slane %v4333_v23, %v1489_v56  ;;  %v1508_v43 = vrot.slane %v4477_v42, %v794_v24  ;;  %v1773_v24 = vsub.s32 5, %v4330_v21 }
 0x979   : > { %v1378_v45 = vpop.xlane.xlu1 %1377 }
 0x97a   : > { %3584 = vrcp.f32 %v1378_v45  ;;  %v1513_v45 = vrot.slane %v4477_v42, %v799_v4  ;;  %v1774_v4 = vrot.slane %v4333_v23, %v1773_v24 }
 0x97d   : > { %v1383_v46 = vpop.permute.xlu1 %1382 }
 0x97e   : > { %v1388_v47 = vsel %vm884_vm3, %v1383_v46, 0 }
 0x97f   : > { %3189 = vmatpush3.bf16.msra.mxu0 %v1388_v47 }
 0x980   : > { %3202 = vmatprep.subr.bf16.mxu0 %v3931_v19 }
 0x984   : > { %v3585_v48 = vpop.eup %3584 }
 0x985   : > { %v1380_v7 = vmul.f32 %v3585_v48, %v3583_v37  ;;  %v3544_v37 = vld [vmem:[#allocation7 + $0x30] sm:$0xff]  }
 0x987   : > { %v1381_v49 = vpack.c.bf16 %v1380_v7, %v1380_v7 }
 0x989   : > { %3191 = vmatmul.mubr.msk.bf16.vlgmr.msra.gmra.mrb[24].mxu0 %vm868_vm2, %v1381_v49  ;;  %v1767_v49 = vsub.s32 4, %v4330_v21 }
 0x98a   : > { %3218 = vmatprep.mubr.msk.bf16.mxu0 %vm3932_vm0, %v3931_v19 }
 0x98b   : > { %v1768_v50 = vrot.slane %v4333_v23, %v1767_v49 }
 0xa5c   : > { %v1424_v51 = vpop.f32.mrb[24].mxu0 }
 0xa5d   : > { %v1430_v52 = vpack.c.bf16 %v1424_v51, %v1424_v51  ;;  %v3192_v53 = vpop.f32.mrb[25].mxu0 }
 0xa5e   : > { %v1427_v54 = vpop.f32.mrb[26].mxu0 }
 0xa5f   : > { %v3193_v55 = vpop.f32.mrb[27].mxu0  ;;  %3199 = vmatmul.mubr.msk.bf16.vlgmr.msra.gmra.mrb[24].mxu1 %vm821_vm1, %v1430_v52 }
 0xa60   : > { %1754 = vmatprep.mubr.bf16.mxu1 %v3930_v0  ;;  %v3523_v0 = vld [vmem:[#allocation7] sm:$0xff]   ;;  %1723 = vmatpush1.bf16.msra.mxu1 %v3514_v2 }
 0xa61   : > { %1724 = vmatprep.subr.bf16.mxu1 %v3519_v5  ;;  %3203 = vmatpush3.bf16.msra.mxu0 %v3523_v0 }
 0xa62   : > { %3204 = vmatprep.subr.bf16.mxu0 %v3931_v19 }
 0xa64   : > { %1725 = vmatpush1.bf16.msra.mxu1 %v3517_v6 }
 0xa65   : > { %1726 = vmatprep.subr.bf16.mxu1 %v3522_v8  ;;  %3205 = vmatpush3.bf16.msra.mxu0 %v3527_v9 }
 0xa66   : > { %3206 = vmatprep.subr.bf16.mxu0 %v3931_v19 }
 0xa68   : > { %1727 = vmatpush1.bf16.msra.mxu1 %v3520_v10 }
 0xa69   : > { %1728 = vmatprep.subr.bf16.mxu1 %v3526_v11  ;;  %3207 = vmatpush3.bf16.msra.mxu0 %v3531_v16 }
 0xa6a   : > { %3208 = vmatprep.subr.bf16.mxu0 %v3931_v19 }
 0xa6d   : > { %3209 = vmatpush3.bf16.msra.mxu0 %v3535_v25 }
 0xa6e   : > { %3210 = vmatprep.subr.bf16.mxu0 %v3931_v19 }
 0xa71   : > { %3211 = vmatpush3.bf16.msra.mxu0 %v3539_v28 }
 0xa72   : > { %3212 = vmatprep.subr.bf16.mxu0 %v3931_v19 }
 0xa75   : > { %3213 = vmatpush3.bf16.msra.mxu0 %v3543_v33 }
 0xa76   : > { %3214 = vmatprep.subr.bf16.mxu0 %v3931_v19 }
 0xa79   : > { %3215 = vmatpush3.bf16.msra.mxu0 %v3544_v37 }
 0xa7a   : > { %3216 = vmatprep.subr.bf16.mxu0 %v3931_v19 }
 0xa7d   : > { %3217 = vmatpush3.bf16.msra.mxu0 %v3545_v38 }
 0xa7e   : > { %3222 = vmatprep.subr.bf16.mxu0 %v3931_v19 }
 0xb32   : > { %v1480_v58 = vpop.f32.mrb[24].mxu1 }
 0xb33   : > { %v1486_v59 = vadd.f32 %v1480_v58, %v1319_v41  ;;  %v3200_v60 = vpop.f32.mrb[25].mxu1 }
 0xb34   : > { %v1483_v61 = vpop.f32.mrb[26].mxu1 }
 0xb35   : > { %v1491_v62 = vadd.f32 %v1490_v57, %v1486_v59  ;;  %v3201_v63 = vpop.f32.mrb[27].mxu1 }
 0xb36   : > { %v1534_v63 = vsub.s32 3, %v4330_v21 }
 0xb37   : > { %v1492_v1 = vadd.f32 %v1491_v62, %v4317_v17  ;;  %v3524_v17 = vld [vmem:[#allocation9 + $0x30] ss:$8 sps:$4 sm:$0xff]  }
 0xb38   : > { %1729 = vmatpush1.bf16.msra.mxu1 %v3524_v17 }
 0xb39   : > { %1493 = vadd.xlane.f32.xlu1 %v1492_v1  ;;  %1730 = vmatprep.subr.bf16.mxu1 %v3530_v12 }
 0xb3c   : > { %1731 = vmatpush1.bf16.msra.mxu1 %v3528_v13 }
 0xb3d   : > { %1732 = vmatprep.subr.bf16.mxu1 %v3534_v18 }
 0xb40   : > { %1733 = vmatpush1.bf16.msra.mxu1 %v3532_v20 }
 0xb41   : > { %1734 = vmatprep.subr.bf16.mxu1 %v3538_v26 }
 0xb44   : > { %1735 = vmatpush1.bf16.msra.mxu1 %v3536_v27 }
 0xb45   : > { %1736 = vmatprep.subr.bf16.mxu1 %v3542_v29 }
 0xb48   : > { %1737 = vmatpush1.bf16.msra.mxu1 %v3540_v30 }
 0xb49   : > { %3228 = vmatprep.subr.bf16.mxu1 %v3931_v19 }
 0xb4b   : > { %1755 = vmatmul.mubr.bf16.vlgmr.msra.gmra.mrb[28].mxu1 %v1641_v35 }
 0xb4c   : > { %3230 = vmatprep.mubr.msk.bf16.mxu1 %vm3932_vm0, %v3931_v19 }
 0xbc6   : > { %v1494_v14 = vpop.xlane.xlu1 %1493 }
 0xbc7   : > { %v1496_v15 = vmul.f32 0.0078125, %v1494_v14 }
 0xbc9   : > { %v1497_v34 = vsub.f32 %v1492_v1, %v1496_v15  ;;  %v1535_v1 = vrot.slane %v4333_v23, %v1534_v63 }
 0xbcb   : > { %v1498_v36 = vmul.f32 %v1497_v34, %v1497_v34 }
 0xbcd   : > { %1499 = vadd.xlane.f32.xlu0 %v1498_v36 }
 0xc1e   : > { %v1756_v51 = vpop.f32.mrb[28].mxu1 }
 0xc1f   : > { %v1769_v52 = vadd.f32 %v1768_v50, %v1756_v51  ;;  %v1758_v53 = vpop.f32.mrb[29].mxu1 }
 0xc20   : > { %v1775_v54 = vadd.f32 %v1774_v4, %v1758_v53  ;;  %v1760_v55 = vpop.f32.mrb[30].mxu1 }
 0xc21   : > { %v1770_v57 = vadd.f32 %v1768_v50, %v1760_v55  ;;  %v1762_v58 = vpop.f32.mrb[31].mxu1 }
 0xc22   : > { %v1776_v59 = vadd.f32 %v1774_v4, %v1762_v58  ;;  %v3547_v4 = vld [vmem:[#allocation10 + $0x8] sm:$0xff]  }
 0xc23   : > { %v4499_v60 = vpack.c.bf16 %v1770_v57, %v1769_v52 }
 0xc24   : > { %v4501_v61 = vpack.c.bf16 %v1776_v59, %v1775_v54 }
 0xc25   : > { %1903 = vrot.lane.b32.xlu0 %v4499_v60, %s3933_s24  ;;  %v1800_v62 = vsel %vm821_vm1, %v4499_v60, 0 }
 0xc26   : > { %3229 = vmatpush3.bf16.msra.mxu1 %v4501_v61 }
 0xc27   : > { %3240 = vmatprep.subr.bf16.mxu1 %v3931_v19 }
 0xc5a   : > { %v1500_v39 = vpop.xlane.xlu0 %1499 }
 0xc5b   : > { %v1501_v40 = vmul.f32 0.0078125, %v1500_v39 }
 0xc5d   : > { %v1502_v41 = vadd.f32 1e-05, %v1501_v40 }
 0xc5f   : > { %3586 = vrsqrt.f32 %v1502_v41  ;;  %v3548_v41 = vld [vmem:[#allocation10 + $0x10] sm:$0xff]  }
 0xc69   : > { %v3587_v44 = vpop.eup %3586 }
 0xc6a   : > { %v1504_v46 = vmul.f32 %v3587_v44, %v1497_v34 }
 0xc6c   : > { %v1509_v47 = vmul.f32 %v1508_v43, %v1504_v46  ;;  %v3549_v43 = vld [vmem:[#allocation10 + $0x18] sm:$0xff]  }
 0xc6e   : > { %v4485_v48 = vadd.f32 %v1513_v45, %v1509_v47 }
 0xc70   : > { %v1531_v7 = vpack.c.bf16 %v4485_v48, %v4485_v48 }
 0xc72   : > { %3219 = vmatmul.mubr.bf16.vlgmr.msra.gmra.mrb[28].mxu0 %v1531_v7  ;;  %v3546_v7 = vld [vmem:[#allocation10] sm:$0xff]  }
 0xc73   : > { %3224 = vmatprep.mubr.msk.bf16.mxu0 %vm3932_vm0, %v3931_v19  ;;  %3223 = vmatpush3.bf16.xpose.msra.mxu0 %v1800_v62 }
 0xc74   : > { %3234 = vmatprep.subr.bf16.mxu0 %v3931_v19 }
 0xc97   : > { %v1904_v6 = vpop.permute.xlu0 %1903 }
 0xc98   : > { %v1909_v11 = vsel %vm821_vm1, %v1904_v6, 0 }
 0xd45   : > { %v1618_v2 = vpop.f32.mrb[28].mxu0 }
 0xd46   : > { %v1619_v3 = vadd.f32 %v1618_v2, %v1535_v1  ;;  %v3220_v5 = vpop.f32.mrb[29].mxu0 }
 0xd47   : > { %v1621_v0 = vpop.f32.mrb[30].mxu0 }
 0xd48   : > { %v1624_v8 = vmul.f32 0.17677669, %v1619_v3  ;;  %v3221_v9 = vpop.f32.mrb[31].mxu0 }
 0xd4a   : > { %v4514_v10 = vpack.c.bf16 %v1624_v8, %v1624_v8 }
 0xd4c   : > { %1900 = vrot.lane.b32.xlu0 %v4514_v10, %s3933_s24  ;;  %3225 = vmatmul.mubr.msk.bf16.vlgmr.msra.gmra.mrb[32].mxu0 %vm821_vm1, %v4514_v10 }
 0xd4d   : > { %3235 = vmatpush3.bf16.xpose.msra.mxu0 %v1909_v11  ;;  %3236 = vmatprep.mubr.msk.bf16.mxu0 %vm3932_vm0, %v3931_v19 }
 0xd4e   : > { %3246 = vmatprep.subr.bf16.mxu0 %v3931_v19 }
 0xdbe   : > { %v1901_v23 = vpop.permute.xlu0 %1900 }
 0xdbf   : > { %3237 = vmatmul.mubr.msk.bf16.vlgmr.msra.gmra.mrb[36].mxu0 %vm821_vm1, %v1901_v23 }
 0xdc0   : > { %3250 = vmatprep.mubr.msk.bf16.mxu0 %vm3932_vm0, %v3931_v19  ;;  %3247 = vmatpush3.bf16.msra.mxu0 %v3548_v41 }
 0xdc1   : > { %3248 = vmatprep.subr.bf16.mxu0 %v3931_v19 }
 0xdc4   : > { %3249 = vmatpush3.bf16.msra.mxu0 %v3549_v43 }
 0xdc5   : > { %3262 = vmatprep.subr.bf16.mxu0 %v3931_v19 }
 0xe1f   : > { %v1836_v17 = vpop.f32.mrb[32].mxu0 }
 0xe20   : > { %v3226_v12 = vpop.f32.mrb[33].mxu0  ;;  %v1843_v13 = vsel %vm1842_vm4, %v1836_v17, -inf }
 0xe21   : > { %1844 = vmax.xlane.f32.xlu1 %v1843_v13  ;;  %v1839_v14 = vpop.f32.mrb[34].mxu0 }
 0xe22   : > { %v3227_v15 = vpop.f32.mrb[35].mxu0 }
 0xe92   : > { %v1945_v34 = vpop.f32.mrb[36].mxu0 }
 0xe93   : > { %v3238_v36 = vpop.f32.mrb[37].mxu0  ;;  %v1951_v16 = vsel %vm1842_vm4, %v1945_v34, -inf }
 0xe94   : > { %1952 = vmax.xlane.f32.xlu0 %v1951_v16  ;;  %v1948_v18 = vpop.f32.mrb[38].mxu0 }
 0xe95   : > { %v3239_v20 = vpop.f32.mrb[39].mxu0 }
 0xeae   : > { %v1845_v25 = vpop.xlane.xlu1 %1844 }
 0xeaf   : > { %v1846_v26 = vsub.f32 %v1836_v17, %v1845_v25 }
 0xeb1   : > { %v1847_v27 = vmul.f32 1.442695, %v1846_v26 }
 0xeb3   : > { %3588 = vpow2.f32 %v1847_v27 }
 0xebd   : > { %v3589_v28 = vpop.eup %3588 }
 0xebe   : > { %v1849_v29 = vsel %vm1842_vm4, %v3589_v28, 0.0 }
 0xebf   : > { %1850 = vadd.xlane.f32.xlu1 %v1849_v29  ;;  %v3550_v29 = vld [vmem:[#allocation10 + $0x20] sm:$0xff]  }
 0xf21   : > { %v1953_v30 = vpop.xlane.xlu0 %1952 }
 0xf22   : > { %v1954_v31 = vsub.f32 %v1945_v34, %v1953_v30 }
 0xf24   : > { %v1955_v32 = vmul.f32 1.442695, %v1954_v31 }
 0xf26   : > { %3590 = vpow2.f32 %v1955_v32 }
 0xf30   : > { %v3591_v33 = vpop.eup %3590 }
 0xf31   : > { %v1957_v35 = vsel %vm1842_vm4, %v3591_v33, 0.0 }
 0xf32   : > { %1958 = vadd.xlane.f32.xlu1 %v1957_v35 }
 0xf43   : > { %1964 = vrot.lane.b32.xlu1 %v4501_v61, %s3933_s24 }
 0xf47   : > { %2123 = vrot.lane.b32.xlu1 %v4499_v60, %s3934_s26 }
 0xf4b   : > { %2121 = vrot.lane.b32.xlu1 %v4514_v10, %s3934_s26 }
 0xf4c   : > { %v1851_v37 = vpop.xlane.xlu1 %1850 }
 0xf4d   : > { %3592 = vrcp.f32 %v1851_v37  ;;  %v3551_v37 = vld [vmem:[#allocation10 + $0x28] sm:$0xff]  }
 0xf57   : > { %v3593_v38 = vpop.eup %3592 }
 0xf58   : > { %v1853_v39 = vmul.f32 %v3593_v38, %v3589_v28 }
 0xf5a   : > { %v1854_v40 = vpack.c.bf16 %v1853_v39, %v1853_v39 }
 0xf5c   : > { %3231 = vmatmul.mubr.msk.bf16.vlgmr.msra.gmra.mrb[32].mxu1 %vm1842_vm4, %v1854_v40 }
 0xf5d   : > { %3242 = vmatprep.mubr.msk.bf16.mxu1 %vm3932_vm0, %v3931_v19 }
 0xfbf   : > { %v1959_v44 = vpop.xlane.xlu1 %1958 }
 0xfc0   : > { %3594 = vrcp.f32 %v1959_v44 }
 0xfc3   : > { %v1965_v45 = vpop.permute.xlu1 %1964 }
 0xfc4   : > { %3241 = vmatpush3.bf16.msra.mxu1 %v1965_v45 }
 0xfc5   : > { %3254 = vmatprep.subr.bf16.mxu1 %v3931_v19 }
 0xfc7   : > { %v2124_v57 = vpop.permute.xlu1 %2123 }
 0xfc8   : > { %v2129_v2 = vsel %vm821_vm1, %v2124_v57, 0 }
 0xfca   : > { %v3595_v46 = vpop.eup %3594 }
 0xfcb   : > { %v1961_v47 = vmul.f32 %v3595_v46, %v3591_v33  ;;  %v2122_v5 = vpop.permute.xlu1 %2121 }
 0xfcd   : > { %v1962_v50 = vpack.c.bf16 %v1961_v47, %v1961_v47 }
 0xfcf   : > { %3243 = vmatmul.mubr.msk.bf16.vlgmr.msra.gmra.mrb[36].mxu1 %vm1842_vm4, %v1962_v50 }
 0xfd0   : > { %3255 = vmatpush3.bf16.msra.mxu1 %v3546_v7  ;;  %3258 = vmatprep.mubr.msk.bf16.mxu1 %vm3932_vm0, %v3931_v19 }
 0xfd1   : > { %3256 = vmatprep.subr.bf16.mxu1 %v3931_v19 }
 0xfd4   : > { %3257 = vmatpush3.bf16.msra.mxu1 %v3547_v4 }
 0xfd5   : > { %3268 = vmatprep.subr.bf16.mxu1 %v3931_v19 }
0x102f   : > { %v1892_v51 = vpop.f32.mrb[32].mxu1 }
0x1030   : > { %v1898_v52 = vpack.c.bf16 %v1892_v51, %v1892_v51  ;;  %v3232_v53 = vpop.f32.mrb[33].mxu1 }
0x1031   : > { %v1895_v54 = vpop.f32.mrb[34].mxu1 }
0x1032   : > { %v3233_v55 = vpop.f32.mrb[35].mxu1  ;;  %3259 = vmatmul.mubr.msk.bf16.vlgmr.msra.gmra.mrb[40].mxu1 %vm821_vm1, %v1898_v52  ;;  %v3552_v54 = vld [vmem:[#allocation10 + $0x30] sm:$0xff]  }
0x1033   : > { %3270 = vmatprep.mubr.msk.bf16.mxu1 %vm3932_vm0, %v3931_v19 }
0x10a2   : > { %v2004_v58 = vpop.f32.mrb[36].mxu1 }
0x10a3   : > { %v2010_v59 = vpack.c.bf16 %v2004_v58, %v2004_v58  ;;  %v3244_v62 = vpop.f32.mrb[37].mxu1 }
0x10a4   : > { %v2007_v1 = vpop.f32.mrb[38].mxu1 }
0x10a5   : > { %v3245_v3 = vpop.f32.mrb[39].mxu1  ;;  %3251 = vmatmul.mubr.msk.bf16.vlgmr.msra.gmra.mrb[40].mxu0 %vm821_vm1, %v2010_v59 }
0x10a6   : > { %3263 = vmatpush3.bf16.xpose.msra.mxu0 %v2129_v2  ;;  %3264 = vmatprep.mubr.msk.bf16.mxu0 %vm3932_vm0, %v3931_v19 }
0x10a7   : > { %3274 = vmatprep.subr.bf16.mxu0 %v3931_v19 }
0x10ad   : > { %3265 = vmatmul.mubr.msk.bf16.vlgmr.msra.gmra.mrb[44].mxu0 %vm821_vm1, %v2122_v5 }
0x10ae   : > { %3278 = vmatprep.mubr.msk.bf16.mxu0 %vm3932_vm0, %v3931_v19  ;;  %3275 = vmatpush3.bf16.msra.mxu0 %v3550_v29 }
0x10af   : > { %3276 = vmatprep.subr.bf16.mxu0 %v3931_v19 }
0x10b2   : > { %3277 = vmatpush3.bf16.msra.mxu0 %v3551_v37  ;;  %v3563_v37 = vld [vmem:[#allocation13 + $0x8] sm:$0xff]  }
0x10b3   : > { %3288 = vmatprep.subr.bf16.mxu0 %v3931_v19 }
0x1105   : > { %v2115_v0 = vpop.f32.mrb[40].mxu1 }
0x1106   : > { %v3260_v6 = vpop.f32.mrb[41].mxu1 }
0x1107   : > { %v2118_v8 = vpop.f32.mrb[42].mxu1 }
0x1108   : > { %v3261_v9 = vpop.f32.mrb[43].mxu1 }
0x1178   : > { %v2060_v11 = vpop.f32.mrb[40].mxu0 }
0x1179   : > { %v4559_v23 = vadd.f32 %v2115_v0, %v2060_v11  ;;  %v3252_v17 = vpop.f32.mrb[41].mxu0 }
0x117a   : > { %v2063_v12 = vpop.f32.mrb[42].mxu0  ;;  %v2453_v17 = vsub.s32 7, %v4330_v21 }
0x117b   : > { %v3253_v13 = vpop.f32.mrb[43].mxu0  ;;  %v3608_v12 = vld [vmem:[#allocation15] sm:$0xff] }
0x117c   : > { %v2454_v13 = vrot.slane %v3608_v12, %v2453_v17 }
0x1180   : > { %v2165_v14 = vpop.f32.mrb[44].mxu0 }
0x1181   : > { %v3266_v15 = vpop.f32.mrb[45].mxu0  ;;  %v2171_v34 = vsel %vm1842_vm4, %v2165_v14, -inf }
0x1182   : > { %2172 = vmax.xlane.f32.xlu0 %v2171_v34  ;;  %v2168_v36 = vpop.f32.mrb[46].mxu0 }
0x1183   : > { %v3267_v16 = vpop.f32.mrb[47].mxu0 }
0x1198   : > { %2183 = vrot.lane.b32.xlu0 %v4501_v61, %s3934_s26 }
0x119c   : > { %2288 = vrot.lane.b32.xlu0 %v4499_v60, %s3935_s14 }
0x11a0   : > { %2286 = vrot.lane.b32.xlu0 %v4514_v10, %s3935_s14 }
0x120f   : > { %v2173_v18 = vpop.xlane.xlu0 %2172 }
0x1210   : > { %v2174_v20 = vsub.f32 %v2165_v14, %v2173_v18 }
0x1212   : > { %v2175_v25 = vmul.f32 1.442695, %v2174_v20 }
0x1213   : > { %v2184_v26 = vpop.permute.xlu0 %2183 }
0x1214   : > { %3596 = vpow2.f32 %v2175_v25  ;;  %3269 = vmatpush3.bf16.msra.mxu1 %v2184_v26  ;;  %v3554_v25 = vld [vmem:[#allocation12] sm:$0xff]   ;;  %v3555_v26 = vld [vmem:[#allocation12 + $0x8] sm:$0xff]  }
0x1215   : > { %3282 = vmatprep.subr.bf16.mxu1 %v3931_v19 }
0x1217   : > { %v2289_v31 = vpop.permute.xlu0 %2288 }
0x1218   : > { %v2294_v33 = vsel %vm821_vm1, %v2289_v31, 0  ;;  %v3559_v31 = vld [vmem:[#allocation12 + $0x28] sm:$0xff]  }
0x121b   : > { %v2287_v35 = vpop.permute.xlu0 %2286 }
0x121e   : > { %v3597_v27 = vpop.eup %3596 }
0x121f   : > { %v2177_v28 = vsel %vm1842_vm4, %v3597_v27, 0.0 }
0x1220   : > { %2178 = vadd.xlane.f32.xlu1 %v2177_v28 }
0x12ad   : > { %v2179_v60 = vpop.xlane.xlu1 %2178 }
0x12ae   : > { %3598 = vrcp.f32 %v2179_v60 }
0x12b8   : > { %v3599_v30 = vpop.eup %3598 }
0x12b9   : > { %v2181_v10 = vmul.f32 %v3599_v30, %v3597_v27  ;;  %v3556_v30 = vld [vmem:[#allocation12 + $0x10] sm:$0xff]  }
0x12bb   : > { %v2182_v32 = vpack.c.bf16 %v2181_v10, %v2181_v10  ;;  %v3557_v10 = vld [vmem:[#allocation12 + $0x18] sm:$0xff]  }
0x12bd   : > { %3271 = vmatmul.mubr.msk.bf16.vlgmr.msra.gmra.mrb[44].mxu1 %vm1842_vm4, %v2182_v32  ;;  %v3560_v32 = vld [vmem:[#allocation12 + $0x30] sm:$0xff]  }
0x12be   : > { %3283 = vmatpush3.bf16.xpose.msra.mxu1 %v2294_v33  ;;  %3284 = vmatprep.mubr.msk.bf16.mxu1 %vm3932_vm0, %v3931_v19  ;;  %v3561_v33 = vld [vmem:[#allocation12 + $0x38] sm:$0xff]  }
0x12bf   : > { %3294 = vmatprep.subr.bf16.mxu1 %v3931_v19 }
0x12c5   : > { %3285 = vmatmul.mubr.msk.bf16.vlgmr.msra.gmra.mrb[48].mxu1 %vm821_vm1, %v2287_v35  ;;  %v3562_v35 = vld [vmem:[#allocation13] sm:$0xff]  }
0x12c6   : > { %3298 = vmatprep.mubr.msk.bf16.mxu1 %vm3932_vm0, %v3931_v19  ;;  %3295 = vmatpush3.bf16.msra.mxu1 %v3552_v54  ;;  %v3569_v54 = vld [vmem:[#allocation13 + $0x38] sm:$0xff]  }
0x12c7   : > { %3296 = vmatprep.subr.bf16.mxu1 %v3931_v19 }
0x1390   : > { %v2223_v38 = vpop.f32.mrb[44].mxu1 }
0x1391   : > { %v2229_v39 = vpack.c.bf16 %v2223_v38, %v2223_v38  ;;  %v3272_v40 = vpop.f32.mrb[45].mxu1  ;;  %v3564_v38 = vld [vmem:[#allocation13 + $0x10] sm:$0xff]  }
0x1392   : > { %v2226_v41 = vpop.f32.mrb[46].mxu1  ;;  %v3566_v40 = vld [vmem:[#allocation13 + $0x20] sm:$0xff]  }
0x1393   : > { %v3273_v43 = vpop.f32.mrb[47].mxu1  ;;  %3279 = vmatmul.mubr.msk.bf16.vlgmr.msra.gmra.mrb[48].mxu0 %vm821_vm1, %v2229_v39  ;;  %v3565_v39 = vld [vmem:[#allocation13 + $0x18] sm:$0xff]   ;;  %v3567_v41 = vld [vmem:[#allocation13 + $0x28] sm:$0xff]  }
0x1394   : > { %3290 = vmatprep.mubr.msk.bf16.mxu0 %vm3932_vm0, %v3931_v19 }
0x1398   : > { %v2330_v44 = vpop.f32.mrb[48].mxu1 }
0x1399   : > { %v3286_v45 = vpop.f32.mrb[49].mxu1  ;;  %v2336_v46 = vsel %vm1842_vm4, %v2330_v44, -inf }
0x139a   : > { %2337 = vmax.xlane.f32.xlu0 %v2336_v46  ;;  %v2333_v47 = vpop.f32.mrb[50].mxu1  ;;  %v2471_v46 = vrot.slane %v4477_v42, %v1534_v63  ;;  %v2990_v63 = vld [vmem:[%s4685_s28] ss:$0 sm:$0xff] }
0x139b   : > { %v3287_v7 = vpop.f32.mrb[51].mxu1 }
0x139c   : > { %v2476_v7 = vrot.slane %v4477_v42, %v1767_v49 }
0x1427   : > { %v2338_v50 = vpop.xlane.xlu0 %2337 }
0x1428   : > { %v2339_v4 = vsub.f32 %v2330_v44, %v2338_v50 }
0x142a   : > { %v2340_v51 = vmul.f32 1.442695, %v2339_v4 }
0x142c   : > { %3600 = vpow2.f32 %v2340_v51 }
0x1436   : > { %v3601_v52 = vpop.eup %3600 }
0x1437   : > { %v2342_v53 = vsel %vm1842_vm4, %v3601_v52, 0.0 }
0x1438   : > { %2343 = vadd.xlane.f32.xlu1 %v2342_v53  ;;  %v3568_v53 = vld [vmem:[#allocation13 + $0x30] sm:$0xff]  }
0x1449   : > { %2348 = vrot.lane.b32.xlu1 %v4501_v61, %s3935_s14  ;;  %v3553_v61 = vld [vmem:[#allocation10 + $0x38] sm:$0xff]  }
0x144a   : > { %3297 = vmatpush3.bf16.msra.mxu1 %v3553_v61 }
0x144b   : > { %3322 = vmatprep.subr.bf16.mxu1 %v3931_v19 }
0x1466   : > { %v2279_v55 = vpop.f32.mrb[48].mxu0 }
0x1467   : > { %v2285_v57 = vadd.f32 %v2279_v55, %v4559_v23  ;;  %v3280_v58 = vpop.f32.mrb[49].mxu0 }
0x1468   : > { %v2282_v59 = vpop.f32.mrb[50].mxu0 }
0x1469   : > { %v3281_v62 = vpop.f32.mrb[51].mxu0 }
0x14c5   : > { %v2344_v1 = vpop.xlane.xlu1 %2343 }
0x14c6   : > { %3602 = vrcp.f32 %v2344_v1 }
0x14c9   : > { %v2349_v2 = vpop.permute.xlu1 %2348 }
0x14ca   : > { %3289 = vmatpush3.bf16.msra.mxu0 %v2349_v2  ;;  %v2611_v2 = vrot.slane %v4477_v42, %v788_v22  ;;  %v2715_v22 = vrot.slane %v4477_v42, %v1773_v24 }
0x14cb   : > { %3302 = vmatprep.subr.bf16.mxu0 %v3931_v19 }
0x14d0   : > { %v3603_v3 = vpop.eup %3602 }
0x14d1   : > { %v2346_v5 = vmul.f32 %v3603_v3, %v3601_v52 }
0x14d3   : > { %v2347_v0 = vpack.c.bf16 %v2346_v5, %v2346_v5 }
0x14d5   : > { %3291 = vmatmul.mubr.msk.bf16.vlgmr.msra.gmra.mrb[52].mxu0 %vm1842_vm4, %v2347_v0 }
0x14d6   : > { %3318 = vmatprep.mubr.msk.bf16.mxu0 %vm3932_vm0, %v3931_v19  ;;  %3303 = vmatpush3.bf16.msra.mxu0 %v3554_v25 }
0x14d7   : > { %3304 = vmatprep.subr.bf16.mxu0 %v3931_v19 }
0x14da   : > { %3305 = vmatpush3.bf16.msra.mxu0 %v3555_v26 }
0x14db   : > { %3306 = vmatprep.subr.bf16.mxu0 %v3931_v19 }
0x14de   : > { %3307 = vmatpush3.bf16.msra.mxu0 %v3556_v30 }
0x14df   : > { %3308 = vmatprep.subr.bf16.mxu0 %v3931_v19 }
0x14e2   : > { %3309 = vmatpush3.bf16.msra.mxu0 %v3557_v10 }
0x14e3   : > { %3310 = vmatprep.subr.bf16.mxu0 %v3931_v19 }
0x15a8   : > { %v2388_v6 = vpop.f32.mrb[52].mxu0 }
0x15a9   : > { %v2394_v8 = vpack.c.bf16 %v2388_v6, %v2388_v6  ;;  %v3292_v9 = vpop.f32.mrb[53].mxu0 }
0x15aa   : > { %v2391_v11 = vpop.f32.mrb[54].mxu0 }
0x15ab   : > { %v3293_v23 = vpop.f32.mrb[55].mxu0  ;;  %3299 = vmatmul.mubr.msk.bf16.vlgmr.msra.gmra.mrb[52].mxu1 %vm821_vm1, %v2394_v8 }
0x15ac   : > { %3338 = vmatprep.mubr.msk.bf16.mxu1 %vm3932_vm0, %v3931_v19  ;;  %3323 = vmatpush3.bf16.msra.mxu1 %v3562_v35 }
0x15ad   : > { %3324 = vmatprep.subr.bf16.mxu1 %v3931_v19 }
0x15b0   : > { %3325 = vmatpush3.bf16.msra.mxu1 %v3563_v37 }
0x15b1   : > { %3326 = vmatprep.subr.bf16.mxu1 %v3931_v19 }
0x15b4   : > { %3327 = vmatpush3.bf16.msra.mxu1 %v3564_v38 }
0x15b5   : > { %3328 = vmatprep.subr.bf16.mxu1 %v3931_v19 }
0x15b8   : > { %3329 = vmatpush3.bf16.msra.mxu1 %v3565_v39 }
0x15b9   : > { %3330 = vmatprep.subr.bf16.mxu1 %v3931_v19 }
0x15bc   : > { %3331 = vmatpush3.bf16.msra.mxu1 %v3566_v40 }
0x15bd   : > { %3332 = vmatprep.subr.bf16.mxu1 %v3931_v19 }
0x15c0   : > { %3333 = vmatpush3.bf16.msra.mxu1 %v3567_v41 }
0x15c1   : > { %3334 = vmatprep.subr.bf16.mxu1 %v3931_v19 }
0x15c4   : > { %3335 = vmatpush3.bf16.msra.mxu1 %v3568_v53 }
0x15c5   : > { %3336 = vmatprep.subr.bf16.mxu1 %v3931_v19 }
0x15c8   : > { %3337 = vmatpush3.bf16.msra.mxu1 %v3569_v54 }
0x167e   : > { %v2444_v14 = vpop.f32.mrb[52].mxu1 }
0x167f   : > { %v2450_v15 = vadd.f32 %v2444_v14, %v2285_v57  ;;  %v3300_v34 = vpop.f32.mrb[53].mxu1 }
0x1680   : > { %v2447_v36 = vpop.f32.mrb[54].mxu1 }
0x1681   : > { %v2455_v16 = vadd.f32 %v2454_v13, %v2450_v15  ;;  %v3301_v18 = vpop.f32.mrb[55].mxu1  ;;  %v2720_v15 = vrot.slane %v4477_v42, %v1489_v56 }
0x1683   : > { %v2456_v20 = vadd.f32 %v2455_v16, %v4485_v48  ;;  %v3558_v48 = vld [vmem:[#allocation12 + $0x20] sm:$0xff]  }
0x1684   : > { %3311 = vmatpush3.bf16.msra.mxu0 %v3558_v48 }
0x1685   : > { %2457 = vadd.xlane.f32.xlu1 %v2456_v20  ;;  %3312 = vmatprep.subr.bf16.mxu0 %v3931_v19 }
0x1688   : > { %3313 = vmatpush3.bf16.msra.mxu0 %v3559_v31 }
0x1689   : > { %3314 = vmatprep.subr.bf16.mxu0 %v3931_v19 }
0x168c   : > { %3315 = vmatpush3.bf16.msra.mxu0 %v3560_v32 }
0x168d   : > { %3316 = vmatprep.subr.bf16.mxu0 %v3931_v19 }
0x1690   : > { %3317 = vmatpush3.bf16.msra.mxu0 %v3561_v33 }
0x1712   : > { %v2458_v27 = vpop.xlane.xlu1 %2457 }
0x1713   : > { %v2459_v28 = vmul.f32 0.0078125, %v2458_v27 }
0x1715   : > { %v2460_v29 = vsub.f32 %v2456_v20, %v2459_v28 }
0x1717   : > { %v2461_v60 = vmul.f32 %v2460_v29, %v2460_v29 }
0x1719   : > { %2462 = vadd.xlane.f32.xlu0 %v2461_v60 }
0x17a6   : > { %v2463_v43 = vpop.xlane.xlu0 %2462 }
0x17a7   : > { %v2464_v44 = vmul.f32 0.0078125, %v2463_v43 }
0x17a9   : > { %v2465_v45 = vadd.f32 1e-05, %v2464_v44 }
0x17ab   : > { %3604 = vrsqrt.f32 %v2465_v45 }
0x17b5   : > { %v3605_v47 = vpop.eup %3604 }
0x17b6   : > { %v2467_v50 = vmul.f32 %v3605_v47, %v2460_v29 }
0x17b8   : > { %v2472_v4 = vmul.f32 %v2471_v46, %v2467_v50 }
0x17ba   : > { %v2477_v51 = vadd.f32 %v2476_v7, %v2472_v4 }
0x17bc   : > { %v2494_v52 = vpack.c.bf16 %v2477_v51, %v2477_v51 }
0x17be   : > { %3319 = vmatmul.mubr.bf16.vlgmr.msra.gmra.mrb[56].mxu0 %v2494_v52 }
0x1891   : > { %v2584_v55 = vpop.f32.mrb[56].mxu0 }
0x1892   : > { %v2585_v57 = vadd.f32 %v2990_v63, %v2584_v55  ;;  %v3320_v58 = vpop.f32.mrb[57].mxu0 }
0x1893   : > { %v2587_v59 = vpop.f32.mrb[58].mxu0 }
0x1894   : > { %v2590_v49 = vmax.f32 %v2585_v57, 0.0  ;;  %v3321_v62 = vpop.f32.mrb[59].mxu0 }
0x1896   : > { %v2607_v1 = vpack.c.bf16 %v2590_v49, %v2590_v49 }
0x1898   : > { %3339 = vmatmul.mubr.bf16.vlgmr.msra.gmra.mrb[56].mxu1 %v2607_v1 }
0x196b   : > { %v2694_v3 = vpop.f32.mrb[56].mxu1 }
0x196c   : > { %v2695_v19 = vadd.f32 %v2694_v3, %v2611_v2  ;;  %v3340_v5 = vpop.f32.mrb[57].mxu1 }
0x196d   : > { %v2697_v0 = vpop.f32.mrb[58].mxu1 }
0x196e   : > { %v3341_v61 = vpop.f32.mrb[59].mxu1  ;;  %v2700_v6 = vadd.f32 %v2695_v19, %v2477_v51 }
0x1970   : > { %2701 = vadd.xlane.f32.xlu0 %v2700_v6 }
0x19fd   : > { %v2702_v8 = vpop.xlane.xlu0 %2701 }
0x19fe   : > { %v2703_v9 = vmul.f32 0.0078125, %v2702_v8 }
0x1a00   : > { %v2704_v11 = vsub.f32 %v2700_v6, %v2703_v9 }
0x1a02   : > { %v2705_v23 = vmul.f32 %v2704_v11, %v2704_v11 }
0x1a04   : > { %2706 = vadd.xlane.f32.xlu0 %v2705_v23 }
0x1a91   : > { %v2707_v17 = vpop.xlane.xlu0 %2706 }
0x1a92   : > { %v2708_v12 = vmul.f32 0.0078125, %v2707_v17 }
0x1a94   : > { %v2709_v13 = vadd.f32 1e-05, %v2708_v12 }
0x1a96   : > { %3606 = vrsqrt.f32 %v2709_v13 }
0x1aa0   : > { %v3607_v14 = vpop.eup %3606 }
0x1aa1   : > { %v2711_v34 = vmul.f32 %v3607_v14, %v2704_v11 }
0x1aa3   : > { %v2716_v36 = vmul.f32 %v2715_v22, %v2711_v34 }
0x1aa5   : > { %v2721_v16 = vadd.f32 %v2720_v15, %v2716_v36 }
0x1aa7   : > { %2722 = vst [vmem:[%s537_s17] sm:$0xff] %v2721_v16 }
0x1aa8 PF: > { %p25_p8 = scmp.ge.s32.totalorder %s4230_s25, 4   ;;  %s4687_s17 = smov %s3905_s18 }
0x1aa9   : > { %s4688_s18 = smov %s3909_s19  ;;  %s4689_s19 = smov %s4242_s15 }
0x1aaa   : > { %s4690_s20 = smov %s4230_s25  ;;  %27 = sbr.rel (!%p25_p8) target bundleno = 12 (0xc), region = 139 }
0x1ab1   :  { %2742 = vsyncpa [#allocation3], 1 }
0x1ab2   :  { %2744 = vsyncpa [#allocation3 + $0x1], 1 }
0x1ab3   :  { %2745 = vsyncpa [#allocation5], 1 }
0x1ab4   :  { %2746 = vsyncpa [#allocation8], 1 }
0x1ab5   :  { %2747 = vsyncpa [#allocation11], 1 }
0x1ab6   :  { %2748 = vsyncpa [#allocation14], 1 }

</bundles_post_ra>
